<compile_context>
chip_gen: v7x
topology: tpu7x:2x2x1
jax: 0.10.0
libtpu: 0.0.40
codegen_flags: <defaults>
</compile_context>

<pallas_src>
import jax
import jax.numpy as jnp
import numpy as np
from jax import lax
from jax.experimental import pallas as pl
from jax.experimental.pallas import tpu as pltpu

TILE_B = 8     # sublane-aligned batch tile
LANE = 128     # lane width


def _round_up(x, m):
    return (x + m - 1) // m * m


def _text_transform_kernel(meta_ref, len_ref, tok_ref, vocab_ref, out_ref):
    """One batch tile: out[b] = [SOS, vocab[tok[b, 0..len-1]], EOS, PAD...].

    meta_ref : SMEM (4,)  int32  [sos_idx, eos_idx, pad_idx, vocab_size]
    len_ref  : VMEM (TILE_B, 1)      int32  true token count per row
    tok_ref  : VMEM (TILE_B, W)      int32  token indices, pre-shifted so that
                                            column j (1 <= j <= len) holds the
                                            (j-1)-th token of the sentence
    vocab_ref: VMEM (1, V_PAD)       int32  token-index -> token-id table
    out_ref  : VMEM (TILE_B, W)      int32  lane-dense output
    """
    tile_b, width = out_ref.shape
    v_pad = vocab_ref.shape[1]

    sos = meta_ref[0]
    eos = meta_ref[1]
    pad = meta_ref[2]
    vocab_size = meta_ref[3]

    # Clamp indices so padded / bad positions never read outside the table
    # (Pallas does not bounds-check VMEM reads).  Masked out of the output.
    tok = jnp.clip(tok_ref[...], 0, vocab_size - 1)            # (TILE_B, W)

    # Vectorized gather: one-hot compare against the vocab lane index, select
    # the table value, integer-reduce over the vocab (lane) axis.  Exact.
    vrow = vocab_ref[0, :]                                     # (V_PAD,)
    v_iota = lax.broadcasted_iota(jnp.int32, (tile_b, width, v_pad), 2)
    onehot = tok[:, :, None] == v_iota                         # (TILE_B, W, V_PAD)
    ids = jnp.sum(jnp.where(onehot, vrow[None, None, :], 0), axis=-1)

    # Assemble [SOS, ids_1..ids_len, EOS, PAD...] with iota lane masks
    # (handles variable per-sentence lengths).
    col = lax.broadcasted_iota(jnp.int32, (tile_b, width), 1)  # column index
    length = len_ref[...]                                      # (TILE_B, 1)
    out = jnp.where(col == 0, sos,
          jnp.where(col == length + 1, eos,
          jnp.where(col <= length, ids, pad)))
    out_ref[...] = out


def text_transform_batch(token_indices, lengths, vocab_table,
                         sos_idx, eos_idx, pad_idx):
    """Batched TextTransform.forward on pre-tokenized, padded input.

    token_indices: (B, L_MAX) int32 (entries past lengths[b] are ignored)
    lengths:       (B,)       int32 true token count per sentence (<= L_MAX)
    vocab_table:   (V,)       int32 token-index -> token-id
    returns:       (B, L_MAX + 2) int32, row b = [SOS, ids..., EOS, PAD...]
    """
    token_indices = jnp.asarray(token_indices, jnp.int32)
    lengths = jnp.asarray(lengths, jnp.int32)
    vocab_table = jnp.asarray(vocab_table, jnp.int32)

    b, l_max = token_indices.shape
    v = vocab_table.shape[0]

    width = _round_up(l_max + 2, LANE)      # lane-dense output width
    v_pad = _round_up(v, LANE)
    b_pad = _round_up(b, TILE_B)

    # Layout plumbing (padding + one-column shift so tokens line up with output
    # columns 1..len; column 0 is SOS).
    tok_p = jnp.zeros((b_pad, width), jnp.int32).at[:b, 1:1 + l_max].set(token_indices)
    len_p = jnp.zeros((b_pad, 1), jnp.int32).at[:b, 0].set(lengths)
    vocab_p = jnp.zeros((1, v_pad), jnp.int32).at[0, :v].set(vocab_table)
    meta = jnp.array([sos_idx, eos_idx, pad_idx, v], jnp.int32)

    grid = (b_pad // TILE_B,)
    out = pl.pallas_call(
        _text_transform_kernel,
        out_shape=jax.ShapeDtypeStruct((b_pad, width), jnp.int32),
        grid_spec=pltpu.PrefetchScalarGridSpec(
            num_scalar_prefetch=0,
            grid=grid,
            in_specs=[
                pl.BlockSpec(memory_space=pltpu.SMEM),             # meta scalars
                pl.BlockSpec((TILE_B, 1), lambda i: (i, 0)),       # lengths
                pl.BlockSpec((TILE_B, width), lambda i: (i, 0)),   # token indices
                pl.BlockSpec((1, v_pad), lambda i: (0, 0)),        # vocab (VMEM)
            ],
            out_specs=pl.BlockSpec((TILE_B, width), lambda i: (i, 0)),
        ),
        compiler_params=pltpu.CompilerParams(
            dimension_semantics=("parallel",)),   # batch tiles -> both TCs on v7x
    )(meta, len_p, tok_p, vocab_p)

    return out[:b, : l_max + 2]


def text_transform(token_indices, vocab_table, sos_idx, eos_idx):
    """Single-sentence path matching the original module's forward exactly."""
    seq = token_indices.shape[0]
    out = text_transform_batch(token_indices[None, :],
                               jnp.array([seq], jnp.int32),
                               vocab_table, sos_idx, eos_idx, pad_idx=0)
    return out[0]   # (seq + 2,) = [SOS, ids..., EOS]


if __name__ == "__main__":
    key = jax.random.PRNGKey(0)

    # Config consistent with the module's __init__.
    conf = {
        "sos_token": "<sos>", "eos_token": "<eos>", "pad_token": "<pad>",
        "special_tokens": {"<unk>": 0, "<pad>": 1, "<sos>": 2, "<eos>": 3},
    }
    SOS_IDX = conf["special_tokens"][conf["sos_token"]]
    EOS_IDX = conf["special_tokens"][conf["eos_token"]]
    PAD_IDX = conf["special_tokens"][conf["pad_token"]]

    VOCAB_SIZE = 32
    B, L_MAX = 4, 8

    # Deterministic synthetic "vocab": index i -> id (i*3 + 4) % 100.
    vocab_table = (jnp.arange(VOCAB_SIZE, dtype=jnp.int32) * 3 + 4) % 100
    # Pre-tokenized sentences (padded), with variable true lengths.
    token_indices = jax.random.randint(key, (B, L_MAX), 0, VOCAB_SIZE,
                                       dtype=jnp.int32)
    lengths = jnp.array([8, 5, 8, 3], jnp.int32)

    out = jax.block_until_ready(
        text_transform_batch(token_indices, lengths, vocab_table,
                             SOS_IDX, EOS_IDX, PAD_IDX))

    # Pure numpy reference (mirrors cat([SOS], vocab(tokens), [EOS]) per row).
    tok_np = np.asarray(token_indices)
    len_np = np.asarray(lengths)
    voc_np = np.asarray(vocab_table)
    exp = np.full((B, L_MAX + 2), PAD_IDX, np.int32)
    for bb in range(B):
        n = int(len_np[bb])
        exp[bb, 0] = SOS_IDX
        exp[bb, 1:1 + n] = voc_np[tok_np[bb, :n]]
        exp[bb, 1 + n] = EOS_IDX

    assert out.shape == (B, L_MAX + 2), out.shape
    assert out.dtype == jnp.int32, out.dtype
    assert np.array_equal(np.asarray(out), exp), (out, exp)

    # Single-sentence path (exact analogue of the original forward).
    single = jax.block_until_ready(
        text_transform(token_indices[0], vocab_table, SOS_IDX, EOS_IDX))
    exp_single = np.concatenate([[SOS_IDX], voc_np[tok_np[0]],
                                 [EOS_IDX]]).astype(np.int32)
    assert np.array_equal(np.asarray(single), exp_single), (single, exp_single)

    print("KERNEL_OK")
</pallas_src>

<mosaic_0001>
module attributes {stable_mosaic.version = 11 : i64} {
  func.func @_text_transform_kernel(%arg0: i32, %arg1: memref<4xi32, #tpu.memory_space<smem>>, %arg2: memref<8x1xi32, #tpu.memory_space<vmem>>, %arg3: memref<8x128xi32, #tpu.memory_space<vmem>>, %arg4: memref<1x128xi32, #tpu.memory_space<vmem>>, %arg5: memref<8x128xi32, #tpu.memory_space<vmem>>) attributes {dimension_semantics = [#tpu.dimension_semantics<parallel>], iteration_bounds = array<i64: 1>, scalar_prefetch = 0 : i64, scratch_operands = 0 : i64, tpu.core_type = #tpu.core_type<tc>, window_params = [{transform_indices = @transform_0, window_bounds = array<i64: 4>}, {transform_indices = @transform_1, window_bounds = array<i64: 8, 1>}, {transform_indices = @transform_2, window_bounds = array<i64: 8, 128>}, {pipeline_mode = #tpu.pipeline_mode<synchronous>, transform_indices = @transform_3, window_bounds = array<i64: 1, 128>}, {transform_indices = @transform_4, window_bounds = array<i64: 8, 128>}]} {
    %c0 = arith.constant 0 : index
    %0 = memref.load %arg1[%c0] : memref<4xi32, #tpu.memory_space<smem>>
    %c1 = arith.constant 1 : index
    %1 = memref.load %arg1[%c1] : memref<4xi32, #tpu.memory_space<smem>>
    %c2 = arith.constant 2 : index
    %2 = memref.load %arg1[%c2] : memref<4xi32, #tpu.memory_space<smem>>
    %c3 = arith.constant 3 : index
    %3 = memref.load %arg1[%c3] : memref<4xi32, #tpu.memory_space<smem>>
    %c0_0 = arith.constant 0 : index
    %c0_1 = arith.constant 0 : index
    %4 = vector.load %arg3[%c0_0, %c0_1] : memref<8x128xi32, #tpu.memory_space<vmem>>, vector<8x128xi32>
    %c1_i32 = arith.constant 1 : i32
    %5 = arith.subi %3, %c1_i32 : i32
    %c0_i32 = arith.constant 0 : i32
    %6 = vector.broadcast %c0_i32 : i32 to vector<8x128xi32>
    %7 = arith.maxsi %6, %4 : vector<8x128xi32>
    %8 = vector.broadcast %5 : i32 to vector<8x128xi32>
    %9 = arith.minsi %8, %7 : vector<8x128xi32>
    %c0_2 = arith.constant 0 : index
    %c0_3 = arith.constant 0 : index
    %10 = vector.load %arg4[%c0_2, %c0_3] : memref<1x128xi32, #tpu.memory_space<vmem>>, vector<1x128xi32>
    %11 = vector.shape_cast %10 : vector<1x128xi32> to vector<128xi32>
    %12 = tpu.iota {dimensions = array<i32: 2>} : vector<8x128x128xi32>
    %13 = vector.shape_cast %9 : vector<8x128xi32> to vector<8x128x1xi32>
    %14 = vector.broadcast %13 : vector<8x128x1xi32> to vector<8x128x128xi32>
    %15 = arith.cmpi eq, %14, %12 : vector<8x128x128xi32>
    %16 = vector.shape_cast %11 : vector<128xi32> to vector<1x1x128xi32>
    %c0_i32_4 = arith.constant 0 : i32
    %17 = vector.shape_cast %16 : vector<1x1x128xi32> to vector<1x1x128xi32>
    %18 = vector.broadcast %17 : vector<1x1x128xi32> to vector<8x128x128xi32>
    %19 = vector.broadcast %c0_i32_4 : i32 to vector<8x128x128xi32>
    %20 = arith.select %15, %18, %19 : vector<8x128x128xi1>, vector<8x128x128xi32>
    %cst = arith.constant dense<0> : vector<8x128xi32>
    %21 = vector.multi_reduction <add>, %20, %cst [2] : vector<8x128x128xi32> to vector<8x128xi32>
    %22 = tpu.iota {dimensions = array<i32: 1>} : vector<8x128xi32>
    %c0_5 = arith.constant 0 : index
    %c0_6 = arith.constant 0 : index
    %23 = vector.load %arg2[%c0_5, %c0_6] : memref<8x1xi32, #tpu.memory_space<vmem>>, vector<8x1xi32>
    %c0_i32_7 = arith.constant 0 : i32
    %24 = vector.broadcast %c0_i32_7 : i32 to vector<8x128xi32>
    %25 = arith.cmpi eq, %22, %24 : vector<8x128xi32>
    %c1_i32_8 = arith.constant 1 : i32
    %26 = vector.broadcast %c1_i32_8 : i32 to vector<8x1xi32>
    %27 = arith.addi %23, %26 : vector<8x1xi32>
    %28 = vector.broadcast %27 : vector<8x1xi32> to vector<8x128xi32>
    %29 = arith.cmpi eq, %22, %28 : vector<8x128xi32>
    %30 = vector.broadcast %23 : vector<8x1xi32> to vector<8x128xi32>
    %31 = arith.cmpi sle, %22, %30 : vector<8x128xi32>
    %32 = vector.broadcast %2 : i32 to vector<8x128xi32>
    %33 = arith.select %31, %21, %32 : vector<8x128xi1>, vector<8x128xi32>
    %34 = vector.broadcast %1 : i32 to vector<8x128xi32>
    %35 = arith.select %29, %34, %33 : vector<8x128xi1>, vector<8x128xi32>
    %36 = vector.broadcast %0 : i32 to vector<8x128xi32>
    %37 = arith.select %25, %36, %35 : vector<8x128xi1>, vector<8x128xi32>
    %c0_9 = arith.constant 0 : index
    %c0_10 = arith.constant 0 : index
    %38 = vector.load %arg5[%c0_9, %c0_10] : memref<8x128xi32, #tpu.memory_space<vmem>>, vector<8x128xi32>
    tpu.vector_store %arg5[%c0_9, %c0_10], %37 {strides = array<i32>} : memref<8x128xi32, #tpu.memory_space<vmem>>, vector<8x128xi32>,
    return
  }
  func.func @transform_0(%arg0: i32) -> i32 {
    %c0_i32 = arith.constant 0 : i32
    %c0_i32_0 = arith.constant 0 : i32
    return %c0_i32 : i32
  }
  func.func @transform_1(%arg0: i32) -> (i32, i32) {
    %c0_i32 = arith.constant 0 : i32
    %c0_i32_0 = arith.constant 0 : i32
    return %arg0, %c0_i32 : i32, i32
  }
  func.func @transform_2(%arg0: i32) -> (i32, i32) {
    %c0_i32 = arith.constant 0 : i32
    %c0_i32_0 = arith.constant 0 : i32
    return %arg0, %c0_i32 : i32, i32
  }
  func.func @transform_3(%arg0: i32) -> (i32, i32) {
    %c0_i32 = arith.constant 0 : i32
    %c0_i32_0 = arith.constant 0 : i32
    %c0_i32_1 = arith.constant 0 : i32
    return %c0_i32, %c0_i32_0 : i32, i32
  }
  func.func @transform_4(%arg0: i32) -> (i32, i32) {
    %c0_i32 = arith.constant 0 : i32
    %c0_i32_0 = arith.constant 0 : i32
    return %arg0, %c0_i32 : i32, i32
  }
}

</mosaic_0001>

<bundles_post_ra>
// kernel: tpu_custom_call.1
= control target key start
LH: loop header
LB: loop body
LE: loop exit
PB: predicated region body
PF: predicated region fallthrough
CT: control target
= control target key end

     0   :  { %9 = vsyncpa [#allocation4], 0  ;;  %s4317_s0 = inlined_call_operand.vmem [shape: s32[4], index: 0, kind: input, shape index: {}]   ;;  %s4318_s1 = inlined_call_operand.vmem [shape: s32[8,1], index: 1, kind: input, shape index: {}]   ;;  %s4319_s2 = inlined_call_operand.vmem [shape: s32[8,128], index: 2, kind: input, shape index: {}]   ;;  %s4320_s3 = inlined_call_operand.vmem [shape: s32[1,128], index: 3, kind: input, shape index: {}]   ;;  %s4321_s4 = inlined_call_operand.hbm [shape: s32[8,128], index: 4, kind: output, shape index: {}]  }
   0x1   :  { %10 = vsyncpa [#allocation3], 0  ;;  %s17_s17 = sshll.u32 %s4317_s0, 4  ;;  %s18_s17 = int_to_ptr.vmem [resolvable:$true] %s17_s17 }
   0x2   :  { %s3099_s18 = scalar_lea.vmem %s18_s17, 16  ;;  %p3104_p1 = scmp.lt.s32.totalorder %s18_s17, %s18_s17 }
   0x3   :  { %p3100_p0 = scmp.ne.s32.totalorder %s18_s17, %s3099_s18  ;;  %p3105_p2 = scmp.lt.s32.totalorder %s3099_s18, %s3099_s18 }
   0x5   :  { %p3106_p3 = por %p3105_p2, %p3104_p1 }
   0x7   :  { %p3107_p4 = pnand %p3106_p3, %p3100_p0 }
   0x9   :  { %3110 = shalt.err (!%p3107_p4)
}
   0xa   :  { %s3137_s19 = smov [#allocation2]  }
   0xb   :  { %20 = dma.vmem_to_smem %s18_s17, 16, %s3137_s19, [#allocation4]  }
   0xc   :  { %3133 = dma.done.wait [#allocation4], 16  }
   0xd   :  { %3134 = vsyncadd [#allocation4], 4294967280 }
   0xe   :  { %30 = sfence }
   0xf   :  { %s3088_s20 = sld [smem:[#allocation2 + $0x3]]  ;;  %v35_v0 = vld [vmem:[%s4319_s2] sm:$0xff]  ;;  %v4322_v1 = vlaneseq  ;;  %s4279_s5 = sld [smem:[#allocation2 + $0x1]] }
  0x10   :  { %vm37_vm0 = vcmp.gt.s32.totalorder %v35_v0, 0  ;;  %s4283_s6 = sld [smem:[#allocation2]]  ;;  %s3139_s7 = smov [#allocation5]  }
  0x11   :  { %v3172_v2 = vshrl.u32 %v4322_v1, 7  ;;  %v38_v3 = vsel %vm37_vm0, %v35_v0, 0  ;;  %s3077_s8 = sshll.u32 %s3139_s7, 4  ;;  %s3078_s8 = int_to_ptr.vmem [resolvable:$true] %s3077_s8 }
  0x12   :  { %s3111_s9 = scalar_lea.vmem %s3078_s8, 128  ;;  %p3116_p6 = scmp.lt.s32.totalorder %s3078_s8, %s3078_s8 }
  0x13   :  { %v47_v4 = vsub.s32 0, %v3172_v2  ;;  %v114_v8 = vsub.s32 1, %v3172_v2  ;;  %v181_v10 = vsub.s32 2, %v3172_v2  ;;  %v248_v12 = vsub.s32 3, %v3172_v2  ;;  %p3112_p5 = scmp.ne.s32.totalorder %s3078_s8, %s3111_s9  ;;  %p3117_p7 = scmp.lt.s32.totalorder %s3111_s9, %s3111_s9 }
  0x14   :  { %v315_v18 = vsub.s32 4, %v3172_v2  ;;  %v382_v36 = vsub.s32 5, %v3172_v2  ;;  %v449_v54 = vsub.s32 6, %v3172_v2 }
  0x15   :  { %s3089_s0 = sadd.s32 4294967295, %s3088_s20  ;;  %p3118_p8 = por %p3117_p7, %p3116_p6 }
  0x16   :  { %v39_v5 = vstv %s3089_s0 }
  0x17   :  { %vm40_vm1 = vcmp.lt.s32.totalorder %v39_v5, %v38_v3  ;;  %p3119_p9 = pnand %p3118_p8, %p3112_p5 }
  0x18   :  { %v3175_v6 = vsel %vm40_vm1, %v39_v5, %v38_v3 }
  0x19   :  { %v48_v7 = vrot.slane %v3175_v6, %v47_v4  ;;  %v115_v9 = vrot.slane %v3175_v6, %v114_v8  ;;  %v182_v11 = vrot.slane %v3175_v6, %v181_v10  ;;  %v249_v13 = vrot.slane %v3175_v6, %v248_v12 }
  0x1a   :  { %v316_v21 = vrot.slane %v3175_v6, %v315_v18  ;;  %v383_v39 = vrot.slane %v3175_v6, %v382_v36  ;;  %v450_v57 = vrot.slane %v3175_v6, %v449_v54 }
  0x1b   :  { %58 = vbcast.lane.b32.xlu1 %v48_v7, 272  ;;  %50 = vbcast.lane.b32.xlu0 %v48_v7, 256 }
  0x1f   :  { %62 = vbcast.lane.b32.xlu1 %v48_v7, 280  ;;  %54 = vbcast.lane.b32.xlu0 %v48_v7, 264 }
  0x23   :  { %70 = vbcast.lane.b32.xlu1 %v48_v7, 296  ;;  %66 = vbcast.lane.b32.xlu0 %v48_v7, 288 }
  0x27   :  { %78 = vbcast.lane.b32.xlu1 %v48_v7, 312  ;;  %74 = vbcast.lane.b32.xlu0 %v48_v7, 304 }
  0x2b   :  { %86 = vbcast.lane.b32.xlu1 %v48_v7, 328  ;;  %82 = vbcast.lane.b32.xlu0 %v48_v7, 320 }
  0x2f   :  { %94 = vbcast.lane.b32.xlu1 %v48_v7, 344  ;;  %90 = vbcast.lane.b32.xlu0 %v48_v7, 336 }
  0x33   :  { %102 = vbcast.lane.b32.xlu1 %v48_v7, 360  ;;  %98 = vbcast.lane.b32.xlu0 %v48_v7, 352 }
  0x37   :  { %110 = vbcast.lane.b32.xlu1 %v48_v7, 376  ;;  %106 = vbcast.lane.b32.xlu0 %v48_v7, 368 }
  0x3b   :  { %121 = vbcast.lane.b32.xlu1 %v115_v9, 264  ;;  %117 = vbcast.lane.b32.xlu0 %v115_v9, 256 }
  0x3f   :  { %129 = vbcast.lane.b32.xlu1 %v115_v9, 280  ;;  %125 = vbcast.lane.b32.xlu0 %v115_v9, 272 }
  0x43   :  { %137 = vbcast.lane.b32.xlu1 %v115_v9, 296  ;;  %133 = vbcast.lane.b32.xlu0 %v115_v9, 288 }
  0x47   :  { %145 = vbcast.lane.b32.xlu1 %v115_v9, 312  ;;  %141 = vbcast.lane.b32.xlu0 %v115_v9, 304 }
  0x4b   :  { %153 = vbcast.lane.b32.xlu1 %v115_v9, 328  ;;  %149 = vbcast.lane.b32.xlu0 %v115_v9, 320 }
  0x4f   :  { %161 = vbcast.lane.b32.xlu1 %v115_v9, 344  ;;  %157 = vbcast.lane.b32.xlu0 %v115_v9, 336 }
  0x53   :  { %169 = vbcast.lane.b32.xlu1 %v115_v9, 360  ;;  %165 = vbcast.lane.b32.xlu0 %v115_v9, 352 }
  0x57   :  { %177 = vbcast.lane.b32.xlu1 %v115_v9, 376  ;;  %173 = vbcast.lane.b32.xlu0 %v115_v9, 368 }
  0x5b   :  { %188 = vbcast.lane.b32.xlu1 %v182_v11, 264  ;;  %184 = vbcast.lane.b32.xlu0 %v182_v11, 256 }
  0x5f   :  { %196 = vbcast.lane.b32.xlu1 %v182_v11, 280  ;;  %192 = vbcast.lane.b32.xlu0 %v182_v11, 272 }
  0x63   :  { %204 = vbcast.lane.b32.xlu1 %v182_v11, 296  ;;  %200 = vbcast.lane.b32.xlu0 %v182_v11, 288 }
  0x67   :  { %212 = vbcast.lane.b32.xlu1 %v182_v11, 312  ;;  %208 = vbcast.lane.b32.xlu0 %v182_v11, 304 }
  0x6b   :  { %220 = vbcast.lane.b32.xlu1 %v182_v11, 328  ;;  %216 = vbcast.lane.b32.xlu0 %v182_v11, 320 }
  0x6f   :  { %228 = vbcast.lane.b32.xlu1 %v182_v11, 344  ;;  %224 = vbcast.lane.b32.xlu0 %v182_v11, 336 }
  0x73   :  { %236 = vbcast.lane.b32.xlu1 %v182_v11, 360  ;;  %232 = vbcast.lane.b32.xlu0 %v182_v11, 352 }
  0x77   :  { %244 = vbcast.lane.b32.xlu1 %v182_v11, 376  ;;  %240 = vbcast.lane.b32.xlu0 %v182_v11, 368  ;;  %v516_v11 = vsub.s32 7, %v3172_v2 }
  0x79   :  { %v517_v18 = vrot.slane %v3175_v6, %v516_v11 }
  0x7b   :  { %255 = vbcast.lane.b32.xlu1 %v249_v13, 264  ;;  %251 = vbcast.lane.b32.xlu0 %v249_v13, 256 }
  0x7f   :  { %263 = vbcast.lane.b32.xlu1 %v249_v13, 280  ;;  %259 = vbcast.lane.b32.xlu0 %v249_v13, 272 }
  0x83   :  { %271 = vbcast.lane.b32.xlu1 %v249_v13, 296  ;;  %267 = vbcast.lane.b32.xlu0 %v249_v13, 288 }
  0x87   :  { %279 = vbcast.lane.b32.xlu1 %v249_v13, 312  ;;  %275 = vbcast.lane.b32.xlu0 %v249_v13, 304 }
  0x8b   :  { %287 = vbcast.lane.b32.xlu1 %v249_v13, 328  ;;  %283 = vbcast.lane.b32.xlu0 %v249_v13, 320 }
  0x8d   :  { %v3184_v14 = vpop.permute.xlu0 %50  ;;  %v3186_v15 = vpop.permute.xlu1 %58 }
  0x8f   :  { %295 = vbcast.lane.b32.xlu1 %v249_v13, 344  ;;  %291 = vbcast.lane.b32.xlu0 %v249_v13, 336 }
  0x91   :  { %v3188_v16 = vpop.permute.xlu0 %54  ;;  %v3190_v17 = vpop.permute.xlu1 %62 }
  0x93   :  { %303 = vbcast.lane.b32.xlu1 %v249_v13, 360  ;;  %299 = vbcast.lane.b32.xlu0 %v249_v13, 352 }
  0x95   :  { %v3193_v19 = vpop.permute.xlu0 %66  ;;  %v3195_v20 = vpop.permute.xlu1 %70 }
  0x97   :  { %311 = vbcast.lane.b32.xlu1 %v249_v13, 376  ;;  %307 = vbcast.lane.b32.xlu0 %v249_v13, 368 }
  0x99   :  { %v3198_v22 = vpop.permute.xlu0 %74  ;;  %v3200_v23 = vpop.permute.xlu1 %78 }
  0x9b   :  { %322 = vbcast.lane.b32.xlu1 %v316_v21, 264  ;;  %318 = vbcast.lane.b32.xlu0 %v316_v21, 256 }
  0x9d   :  { %v3202_v24 = vpop.permute.xlu0 %82  ;;  %v3204_v25 = vpop.permute.xlu1 %86 }
  0x9f   :  { %330 = vbcast.lane.b32.xlu1 %v316_v21, 280  ;;  %326 = vbcast.lane.b32.xlu0 %v316_v21, 272 }
  0xa1   :  { %v3206_v26 = vpop.permute.xlu0 %90  ;;  %v3208_v27 = vpop.permute.xlu1 %94 }
  0xa3   :  { %338 = vbcast.lane.b32.xlu1 %v316_v21, 296  ;;  %334 = vbcast.lane.b32.xlu0 %v316_v21, 288 }
  0xa5   :  { %v3210_v28 = vpop.permute.xlu0 %98  ;;  %v3212_v29 = vpop.permute.xlu1 %102 }
  0xa7   :  { %346 = vbcast.lane.b32.xlu1 %v316_v21, 312  ;;  %342 = vbcast.lane.b32.xlu0 %v316_v21, 304 }
  0xa9   :  { %v3214_v30 = vpop.permute.xlu0 %106  ;;  %v3216_v31 = vpop.permute.xlu1 %110 }
  0xab   :  { %354 = vbcast.lane.b32.xlu1 %v316_v21, 328  ;;  %350 = vbcast.lane.b32.xlu0 %v316_v21, 320 }
  0xad   :  { %v3218_v32 = vpop.permute.xlu0 %117  ;;  %v3220_v33 = vpop.permute.xlu1 %121 }
  0xaf   :  { %362 = vbcast.lane.b32.xlu1 %v316_v21, 344  ;;  %358 = vbcast.lane.b32.xlu0 %v316_v21, 336 }
  0xb1   :  { %v3222_v34 = vpop.permute.xlu0 %125  ;;  %v3224_v35 = vpop.permute.xlu1 %129 }
  0xb3   :  { %370 = vbcast.lane.b32.xlu1 %v316_v21, 360  ;;  %366 = vbcast.lane.b32.xlu0 %v316_v21, 352 }
  0xb5   :  { %v3227_v37 = vpop.permute.xlu0 %133  ;;  %v3229_v38 = vpop.permute.xlu1 %137 }
  0xb7   :  { %378 = vbcast.lane.b32.xlu1 %v316_v21, 376  ;;  %374 = vbcast.lane.b32.xlu0 %v316_v21, 368 }
  0xb9   :  { %v3232_v40 = vpop.permute.xlu0 %141  ;;  %v3234_v41 = vpop.permute.xlu1 %145 }
  0xbb   :  { %389 = vbcast.lane.b32.xlu1 %v383_v39, 264  ;;  %385 = vbcast.lane.b32.xlu0 %v383_v39, 256 }
  0xbd   :  { %v3236_v42 = vpop.permute.xlu0 %149  ;;  %v3238_v43 = vpop.permute.xlu1 %153 }
  0xbf   :  { %397 = vbcast.lane.b32.xlu1 %v383_v39, 280  ;;  %393 = vbcast.lane.b32.xlu0 %v383_v39, 272 }
  0xc1   :  { %v3240_v44 = vpop.permute.xlu0 %157  ;;  %v3242_v45 = vpop.permute.xlu1 %161 }
  0xc3   :  { %405 = vbcast.lane.b32.xlu1 %v383_v39, 296  ;;  %401 = vbcast.lane.b32.xlu0 %v383_v39, 288 }
  0xc5   :  { %v3244_v46 = vpop.permute.xlu0 %165  ;;  %v3246_v47 = vpop.permute.xlu1 %169 }
  0xc7   :  { %413 = vbcast.lane.b32.xlu1 %v383_v39, 312  ;;  %409 = vbcast.lane.b32.xlu0 %v383_v39, 304 }
  0xc9   :  { %v3248_v48 = vpop.permute.xlu0 %173  ;;  %v3250_v49 = vpop.permute.xlu1 %177 }
  0xcb   :  { %421 = vbcast.lane.b32.xlu1 %v383_v39, 328  ;;  %417 = vbcast.lane.b32.xlu0 %v383_v39, 320 }
  0xcd   :  { %v3252_v50 = vpop.permute.xlu0 %184  ;;  %v3254_v51 = vpop.permute.xlu1 %188 }
  0xcf   :  { %429 = vbcast.lane.b32.xlu1 %v383_v39, 344  ;;  %425 = vbcast.lane.b32.xlu0 %v383_v39, 336 }
  0xd1   :  { %v3256_v52 = vpop.permute.xlu0 %192  ;;  %v3258_v53 = vpop.permute.xlu1 %196 }
  0xd3   :  { %437 = vbcast.lane.b32.xlu1 %v383_v39, 360  ;;  %433 = vbcast.lane.b32.xlu0 %v383_v39, 352 }
  0xd5   :  { %v3261_v55 = vpop.permute.xlu0 %200  ;;  %v3263_v56 = vpop.permute.xlu1 %204 }
  0xd7   :  { %445 = vbcast.lane.b32.xlu1 %v383_v39, 376  ;;  %441 = vbcast.lane.b32.xlu0 %v383_v39, 368 }
  0xd9   :  { %v3266_v58 = vpop.permute.xlu0 %208  ;;  %v3268_v59 = vpop.permute.xlu1 %212 }
  0xdb   :  { %456 = vbcast.lane.b32.xlu1 %v450_v57, 264  ;;  %452 = vbcast.lane.b32.xlu0 %v450_v57, 256 }
  0xdd   :  { %v3270_v60 = vpop.permute.xlu0 %216  ;;  %v3272_v61 = vpop.permute.xlu1 %220 }
  0xdf   :  { %464 = vbcast.lane.b32.xlu1 %v450_v57, 280  ;;  %460 = vbcast.lane.b32.xlu0 %v450_v57, 272 }
  0xe1   :  { %v3274_v62 = vpop.permute.xlu0 %224  ;;  %v3276_v63 = vpop.permute.xlu1 %228 }
  0xe3   :  { %472 = vbcast.lane.b32.xlu1 %v450_v57, 296  ;;  %468 = vbcast.lane.b32.xlu0 %v450_v57, 288 }
  0xe5   :  { %v3278_v0 = vpop.permute.xlu0 %232  ;;  %v3280_v3 = vpop.permute.xlu1 %236 }
  0xe7   :  { %480 = vbcast.lane.b32.xlu1 %v450_v57, 312  ;;  %476 = vbcast.lane.b32.xlu0 %v450_v57, 304 }
  0xe9   :  { %v3282_v4 = vpop.permute.xlu0 %240  ;;  %v3284_v5 = vpop.permute.xlu1 %244 }
  0xeb   :  { %488 = vbcast.lane.b32.xlu1 %v450_v57, 328  ;;  %484 = vbcast.lane.b32.xlu0 %v450_v57, 320 }
  0xed   :  { %v3286_v7 = vpop.permute.xlu0 %251  ;;  %v3288_v8 = vpop.permute.xlu1 %255 }
  0xee   :  { %4335 = vst [vmem:[#allocation8_spill] sm:$0xff] %v3288_v8 }
  0xef   :  { %496 = vbcast.lane.b32.xlu1 %v450_v57, 344  ;;  %492 = vbcast.lane.b32.xlu0 %v450_v57, 336 }
  0xf1   :  { %v3290_v9 = vpop.permute.xlu0 %259  ;;  %v3292_v10 = vpop.permute.xlu1 %263 }
  0xf2   :  { %4336 = vst [vmem:[#allocation9_spill] sm:$0xff] %v3290_v9  ;;  %4337 = vst [vmem:[#allocation10_spill] sm:$0xff] %v3292_v10 }
  0xf3   :  { %504 = vbcast.lane.b32.xlu1 %v450_v57, 360  ;;  %500 = vbcast.lane.b32.xlu0 %v450_v57, 352 }
  0xf5   :  { %v3295_v12 = vpop.permute.xlu0 %267  ;;  %v3297_v13 = vpop.permute.xlu1 %271 }
  0xf6   :  { %4338 = vst [vmem:[#allocation11_spill] sm:$0xff] %v3295_v12  ;;  %4339 = vst [vmem:[#allocation12_spill] sm:$0xff] %v3297_v13 }
  0xf7   :  { %512 = vbcast.lane.b32.xlu1 %v450_v57, 376  ;;  %508 = vbcast.lane.b32.xlu0 %v450_v57, 368 }
  0xf9   :  { %v3300_v21 = vpop.permute.xlu0 %275  ;;  %v3302_v36 = vpop.permute.xlu1 %279 }
  0xfa   :  { %4340 = vst [vmem:[#allocation13_spill] sm:$0xff] %v3300_v21  ;;  %4341 = vst [vmem:[#allocation14_spill] sm:$0xff] %v3302_v36 }
  0xfb   :  { %523 = vbcast.lane.b32.xlu1 %v517_v18, 264  ;;  %519 = vbcast.lane.b32.xlu0 %v517_v18, 256 }
  0xfd   :  { %v3304_v39 = vpop.permute.xlu0 %283  ;;  %v3306_v54 = vpop.permute.xlu1 %287 }
  0xfe   :  { %4342 = vst [vmem:[#allocation15_spill] sm:$0xff] %v3304_v39  ;;  %4343 = vst [vmem:[#allocation16_spill] sm:$0xff] %v3306_v54 }
  0xff   :  { %531 = vbcast.lane.b32.xlu1 %v517_v18, 280  ;;  %527 = vbcast.lane.b32.xlu0 %v517_v18, 272 }
 0x101   :  { %v3308_v1 = vpop.permute.xlu0 %291  ;;  %v3310_v12 = vpop.permute.xlu1 %295 }
 0x102   :  { %4344 = vst [vmem:[#allocation17_spill] sm:$0xff] %v3308_v1  ;;  %4345 = vst [vmem:[#allocation18_spill] sm:$0xff] %v3310_v12 }
 0x103   :  { %539 = vbcast.lane.b32.xlu1 %v517_v18, 296  ;;  %535 = vbcast.lane.b32.xlu0 %v517_v18, 288 }
 0x105   :  { %v3312_v57 = vpop.permute.xlu0 %299  ;;  %v3314_v6 = vpop.permute.xlu1 %303 }
 0x106   :  { %4346 = vst [vmem:[#allocation19_spill] sm:$0xff] %v3312_v57  ;;  %4347 = vst [vmem:[#allocation20_spill] sm:$0xff] %v3314_v6 }
 0x107   :  { %547 = vbcast.lane.b32.xlu1 %v517_v18, 312  ;;  %543 = vbcast.lane.b32.xlu0 %v517_v18, 304 }
 0x109   :  { %v3316_v11 = vpop.permute.xlu0 %307  ;;  %v3318_v36 = vpop.permute.xlu1 %311 }
 0x10a   :  { %4348 = vst [vmem:[#allocation21_spill] sm:$0xff] %v3316_v11  ;;  %4349 = vst [vmem:[#allocation22_spill] sm:$0xff] %v3318_v36 }
 0x10b   :  { %555 = vbcast.lane.b32.xlu1 %v517_v18, 328  ;;  %551 = vbcast.lane.b32.xlu0 %v517_v18, 320 }
 0x10d   :  { %v3320_v54 = vpop.permute.xlu0 %318  ;;  %v3322_v39 = vpop.permute.xlu1 %322 }
 0x10e   :  { %4350 = vst [vmem:[#allocation23_spill] sm:$0xff] %v3320_v54  ;;  %4351 = vst [vmem:[#allocation24_spill] sm:$0xff] %v3322_v39 }
 0x10f   :  { %563 = vbcast.lane.b32.xlu1 %v517_v18, 344  ;;  %559 = vbcast.lane.b32.xlu0 %v517_v18, 336 }
 0x111   :  { %v3324_v12 = vpop.permute.xlu0 %326  ;;  %v3326_v1 = vpop.permute.xlu1 %330 }
 0x112   :  { %4352 = vst [vmem:[#allocation25_spill] sm:$0xff] %v3324_v12  ;;  %4353 = vst [vmem:[#allocation26_spill] sm:$0xff] %v3326_v1  ;;  %v4361_v12 = vlaneseq }
 0x113   :  { %571 = vbcast.lane.b32.xlu1 %v517_v18, 360  ;;  %567 = vbcast.lane.b32.xlu0 %v517_v18, 352 }
 0x114   :  { %v3343_v1 = vand.u32 127, %v4361_v12 }
 0x115   :  { %v3328_v6 = vpop.permute.xlu0 %334  ;;  %v3330_v57 = vpop.permute.xlu1 %338 }
 0x116   :  { %4354 = vst [vmem:[#allocation27_spill] sm:$0xff] %v3328_v6  ;;  %4355 = vst [vmem:[#allocation28_spill] sm:$0xff] %v3330_v57  ;;  %vm581_vm2 = vcmp.eq.s32.totalorder %v3184_v14, %v3343_v1  ;;  %vm582_vm3 = vcmp.eq.s32.totalorder %v3188_v16, %v3343_v1  ;;  %vm583_vm4 = vcmp.eq.s32.totalorder %v3186_v15, %v3343_v1 }
 0x117   :  { %579 = vbcast.lane.b32.xlu1 %v517_v18, 376  ;;  %575 = vbcast.lane.b32.xlu0 %v517_v18, 368  ;;  %v3352_v18 = vld [vmem:[%s4320_s3] ss:$0 sm:$0xff]  ;;  %vm584_vm5 = vcmp.eq.s32.totalorder %v3190_v17, %v3343_v1  ;;  %vm585_vm6 = vcmp.eq.s32.totalorder %v3193_v19, %v3343_v1  ;;  %vm586_vm7 = vcmp.eq.s32.totalorder %v3195_v20, %v3343_v1 }
 0x118   :  { %v715_v10 = vsel %vm583_vm4, %v3352_v18, 0  ;;  %v716_v8 = vsel %vm584_vm5, %v3352_v18, 0  ;;  %v717_v17 = vsel %vm585_vm6, %v3352_v18, 0  ;;  %vm587_vm8 = vcmp.eq.s32.totalorder %v3198_v22, %v3343_v1 }
 0x119   :  { %v3332_v36 = vpop.permute.xlu0 %342  ;;  %v3334_v11 = vpop.permute.xlu1 %346  ;;  %vm588_vm9 = vcmp.eq.s32.totalorder %v3200_v23, %v3343_v1  ;;  %vm589_vm10 = vcmp.eq.s32.totalorder %v3202_v24, %v3343_v1  ;;  %vm590_vm11 = vcmp.eq.s32.totalorder %v3204_v25, %v3343_v1  ;;  %vm591_vm12 = vcmp.eq.s32.totalorder %v3206_v26, %v3343_v1 }
 0x11a   :  { %4356 = vst [vmem:[#allocation29_spill] sm:$0xff] %v3332_v36  ;;  %4357 = vst [vmem:[#allocation30_spill] sm:$0xff] %v3334_v11  ;;  %vm592_vm13 = vcmp.eq.s32.totalorder %v3208_v27, %v3343_v1  ;;  %vm593_vm14 = vcmp.eq.s32.totalorder %v3210_v28, %v3343_v1  ;;  %vm594_vm15 = vcmp.eq.s32.totalorder %v3212_v29, %v3343_v1 }
 0x11b   :  { %vm595_vm0 = vcmp.eq.s32.totalorder %v3214_v30, %v3343_v1  ;;  %vm596_vm1 = vcmp.eq.s32.totalorder %v3216_v31, %v3343_v1  ;;  %vm599_vm4 = vcmp.eq.s32.totalorder %v3222_v34, %v3343_v1  ;;  %vm600_vm5 = vcmp.eq.s32.totalorder %v3224_v35, %v3343_v1 }
 0x11c   :  { %vm601_vm6 = vcmp.eq.s32.totalorder %v3227_v37, %v3343_v1 }
 0x11d   :  { %v3336_v54 = vpop.permute.xlu0 %350  ;;  %v3338_v39 = vpop.permute.xlu1 %354 }
 0x11e   :  { %4358 = vst [vmem:[#allocation31_spill] sm:$0xff] %v3336_v54  ;;  %4359 = vst [vmem:[#allocation32_spill] sm:$0xff] %v3338_v39  ;;  %v713_v54 = vsel %vm581_vm2, %v3352_v18, 0  ;;  %vm597_vm2 = vcmp.eq.s32.totalorder %v3218_v32, %v3343_v1 }
 0x11f   :  { %v842_v14 = vshrl.u32 %v713_v54, 16 }
 0x121   :  { %v3340_v21 = vpop.permute.xlu0 %358  ;;  %v3345_v13 = vpop.permute.xlu1 %362  ;;  %v844_v9 = vcvt.s32.f32 %v842_v14  ;;  %v889_v14 = vand.u32 65535, %v717_v17 }
 0x122   :  { %4360 = vst [vmem:[#allocation33_spill] sm:$0xff] %v3340_v21  ;;  %4362 = vst [vmem:[#allocation34_spill] sm:$0xff] %v3345_v13  ;;  %v841_v13 = vand.u32 65535, %v713_v54  ;;  %v866_v54 = vshrl.u32 %v715_v10, 16 }
 0x123   :  { %v891_v20 = vcvt.s32.f32 %v889_v14 }
 0x124   :  { %v843_v36 = vcvt.s32.f32 %v841_v13 }
 0x125   :  { %v3347_v6 = vpop.permute.xlu0 %366  ;;  %v3359_v21 = vpop.permute.xlu1 %370 }
 0x126   :  { %4363 = vst [vmem:[#allocation35_spill] sm:$0xff] %v3347_v6  ;;  %4364 = vst [vmem:[#allocation36_spill] sm:$0xff] %v3359_v21  ;;  %v714_v6 = vsel %vm582_vm3, %v3352_v18, 0  ;;  %v865_v21 = vand.u32 65535, %v715_v10  ;;  %v890_v10 = vshrl.u32 %v717_v17, 16  ;;  %vm598_vm3 = vcmp.eq.s32.totalorder %v3220_v33, %v3343_v1 }
 0x127   :  { %v853_v39 = vand.u32 65535, %v714_v6  ;;  %v854_v16 = vshrl.u32 %v714_v6, 16 }
 0x129   :  { %v3361_v12 = vpop.permute.xlu0 %374  ;;  %v3366_v11 = vpop.permute.xlu1 %378 }
 0x12a   :  { %4365 = vst [vmem:[#allocation37_spill] sm:$0xff] %v3361_v12  ;;  %4366 = vst [vmem:[#allocation38_spill] sm:$0xff] %v3366_v11  ;;  %v855_v12 = vcvt.s32.f32 %v853_v39  ;;  %v867_v11 = vcvt.s32.f32 %v865_v21  ;;  %v878_v39 = vshrl.u32 %v716_v8, 16 }
 0x12c   :  { %v880_v21 = vcvt.s32.f32 %v878_v39 }
 0x12d   :  { %v3368_v57 = vpop.permute.xlu0 %385  ;;  %v3374_v15 = vpop.permute.xlu1 %389 }
 0x12e   :  { %4367 = vst [vmem:[#allocation39_spill] sm:$0xff] %v3368_v57  ;;  %v877_v57 = vand.u32 65535, %v716_v8  ;;  %v719_v8 = vsel %vm587_vm8, %v3352_v18, 0  ;;  %vm603_vm8 = vcmp.eq.s32.totalorder %v3232_v40, %v3343_v1 }
 0x12f   :  { %v914_v17 = vshrl.u32 %v719_v8, 16 }
 0x131   :  { %v3378_v13 = vpop.permute.xlu0 %393  ;;  %v3383_v6 = vpop.permute.xlu1 %397 }
 0x132   :  { %4368 = vst [vmem:[#allocation40_spill] sm:$0xff] %v3378_v13  ;;  %v879_v13 = vcvt.s32.f32 %v877_v57 }
 0x135   :  { %v3385_v19 = vpop.permute.xlu0 %401 }
 0x136   :  { %845 = vadd.xlane.f32.xlu0 %v843_v36  ;;  %v856_v36 = vcvt.s32.f32 %v854_v16 }
 0x139   :  { %v3395_v57 = vpop.permute.xlu0 %409 }
 0x13a   :  { %857 = vadd.xlane.f32.xlu0 %v855_v12  ;;  %v868_v12 = vcvt.s32.f32 %v866_v54  ;;  %4369 = vst [vmem:[#allocation41_spill] sm:$0xff] %v3395_v57 }
 0x13b   :  { %847 = vadd.xlane.f32.xlu1 %v844_v9  ;;  %v718_v9 = vsel %vm586_vm7, %v3352_v18, 0  ;;  %vm602_vm7 = vcmp.eq.s32.totalorder %v3229_v38, %v3343_v1 }
 0x13c   :  { %v901_v16 = vand.u32 65535, %v718_v9  ;;  %v902_v54 = vshrl.u32 %v718_v9, 16  ;;  %v721_v9 = vsel %vm589_vm10, %v3352_v18, 0  ;;  %vm605_vm10 = vcmp.eq.s32.totalorder %v3236_v42, %v3343_v1 }
 0x13d   :  { %v3402_v23 = vpop.permute.xlu0 %417 }
 0x13e   :  { %859 = vadd.xlane.f32.xlu0 %v856_v36  ;;  %v892_v36 = vcvt.s32.f32 %v890_v10  ;;  %v903_v22 = vcvt.s32.f32 %v901_v16  ;;  %v904_v14 = vcvt.s32.f32 %v902_v54  ;;  %v916_v16 = vcvt.s32.f32 %v914_v17 }
 0x13f   :  { %869 = vadd.xlane.f32.xlu1 %v867_v11  ;;  %v3391_v11 = vpop.permute.xlu1 %405 }
 0x141   :  { %v3412_v54 = vpop.permute.xlu0 %425 }
 0x142   :  { %871 = vadd.xlane.f32.xlu0 %v868_v12  ;;  %v913_v12 = vand.u32 65535, %v719_v8  ;;  %v722_v8 = vsel %vm590_vm11, %v3352_v18, 0  ;;  %4370 = vst [vmem:[#allocation42_spill] sm:$0xff] %v3412_v54  ;;  %vm606_vm11 = vcmp.eq.s32.totalorder %v3238_v43, %v3343_v1 }
 0x143   :  { %881 = vadd.xlane.f32.xlu1 %v879_v13  ;;  %v720_v13 = vsel %vm588_vm9, %v3352_v18, 0  ;;  %v3400_v39 = vpop.permute.xlu1 %413  ;;  %vm604_vm9 = vcmp.eq.s32.totalorder %v3234_v41, %v3343_v1 }
 0x144   :  { %v915_v57 = vcvt.s32.f32 %v913_v12  ;;  %v926_v10 = vshrl.u32 %v720_v13, 16  ;;  %v938_v12 = vshrl.u32 %v721_v9, 16 }
 0x145   :  { %v3419_v26 = vpop.permute.xlu0 %433 }
 0x146   :  { %883 = vadd.xlane.f32.xlu0 %v880_v21  ;;  %v925_v21 = vand.u32 65535, %v720_v13  ;;  %v950_v13 = vshrl.u32 %v722_v8, 16 }
 0x147   :  { %893 = vadd.xlane.f32.xlu1 %v891_v20  ;;  %v937_v20 = vand.u32 65535, %v721_v9  ;;  %v724_v9 = vsel %vm592_vm13, %v3352_v18, 0  ;;  %vm608_vm13 = vcmp.eq.s32.totalorder %v3242_v45, %v3343_v1 }
 0x148   :  { %v927_v24 = vcvt.s32.f32 %v925_v21  ;;  %v940_v21 = vcvt.s32.f32 %v938_v12 }
 0x149   :  { %v939_v25 = vcvt.s32.f32 %v937_v20  ;;  %v952_v20 = vcvt.s32.f32 %v950_v13  ;;  %v3429_v12 = vpop.permute.xlu0 %441 }
 0x14a   :  { %895 = vadd.xlane.f32.xlu0 %v892_v36  ;;  %v3408_v36 = vpop.permute.xlu1 %421  ;;  %4371 = vst [vmem:[#allocation43_spill] sm:$0xff] %v3429_v12 }
 0x14b   :  { %905 = vadd.xlane.f32.xlu1 %v903_v22  ;;  %v928_v22 = vcvt.s32.f32 %v926_v10 }
 0x14d   :  { %v3436_v29 = vpop.permute.xlu0 %452 }
 0x14e   :  { %907 = vadd.xlane.f32.xlu0 %v904_v14  ;;  %v949_v14 = vand.u32 65535, %v722_v8  ;;  %v3417_v17 = vpop.permute.xlu1 %429  ;;  %v725_v8 = vsel %vm593_vm14, %v3352_v18, 0  ;;  %vm609_vm14 = vcmp.eq.s32.totalorder %v3244_v46, %v3343_v1 }
 0x14f   :  { %917 = vadd.xlane.f32.xlu1 %v915_v57  ;;  %v723_v57 = vsel %vm591_vm12, %v3352_v18, 0  ;;  %vm607_vm12 = vcmp.eq.s32.totalorder %v3240_v44, %v3343_v1 }
 0x150   :  { %v951_v54 = vcvt.s32.f32 %v949_v14  ;;  %v962_v10 = vshrl.u32 %v723_v57, 16  ;;  %v974_v14 = vshrl.u32 %v724_v9, 16 }
 0x152   :  { %919 = vadd.xlane.f32.xlu0 %v916_v16  ;;  %v961_v16 = vand.u32 65535, %v723_v57  ;;  %v986_v57 = vshrl.u32 %v725_v8, 16 }
 0x153   :  { %929 = vadd.xlane.f32.xlu1 %v927_v24  ;;  %v973_v24 = vand.u32 65535, %v724_v9  ;;  %v727_v9 = vsel %vm595_vm0, %v3352_v18, 0  ;;  %vm611_vm0 = vcmp.eq.s32.totalorder %v3248_v48, %v3343_v1 }
 0x154   :  { %v963_v27 = vcvt.s32.f32 %v961_v16  ;;  %v976_v16 = vcvt.s32.f32 %v974_v14  ;;  %v3446_v14 = vpop.permute.xlu0 %460 }
 0x155   :  { %v975_v28 = vcvt.s32.f32 %v973_v24  ;;  %v988_v24 = vcvt.s32.f32 %v986_v57  ;;  %4372 = vst [vmem:[#allocation44_spill] sm:$0xff] %v3446_v14 }
 0x156   :  { %931 = vadd.xlane.f32.xlu0 %v928_v22  ;;  %v3425_v22 = vpop.permute.xlu1 %437 }
 0x157   :  { %941 = vadd.xlane.f32.xlu1 %v939_v25  ;;  %v964_v25 = vcvt.s32.f32 %v962_v10 }
 0x158   :  { %v3453_v32 = vpop.permute.xlu0 %468 }
 0x15a   :  { %943 = vadd.xlane.f32.xlu0 %v940_v21  ;;  %v985_v21 = vand.u32 65535, %v725_v8  ;;  %v3434_v13 = vpop.permute.xlu1 %445  ;;  %v728_v8 = vsel %vm596_vm1, %v3352_v18, 0  ;;  %vm612_vm1 = vcmp.eq.s32.totalorder %v3250_v49, %v3343_v1 }
 0x15b   :  { %953 = vadd.xlane.f32.xlu1 %v951_v54  ;;  %v726_v54 = vsel %vm594_vm15, %v3352_v18, 0  ;;  %vm610_vm15 = vcmp.eq.s32.totalorder %v3246_v47, %v3343_v1 }
 0x15c   :  { %v987_v12 = vcvt.s32.f32 %v985_v21  ;;  %v998_v10 = vshrl.u32 %v726_v54, 16  ;;  %v1010_v21 = vshrl.u32 %v727_v9, 16 }
 0x15e   :  { %955 = vadd.xlane.f32.xlu0 %v952_v20  ;;  %v997_v20 = vand.u32 65535, %v726_v54  ;;  %v1022_v54 = vshrl.u32 %v728_v8, 16 }
 0x15f   :  { %965 = vadd.xlane.f32.xlu1 %v963_v27  ;;  %v1009_v27 = vand.u32 65535, %v727_v9  ;;  %v730_v9 = vsel %vm598_vm3, %v3352_v18, 0  ;;  %vm614_vm3 = vcmp.eq.s32.totalorder %v3254_v51, %v3343_v1 }
 0x160   :  { %v999_v30 = vcvt.s32.f32 %v997_v20  ;;  %v1012_v20 = vcvt.s32.f32 %v1010_v21  ;;  %v3463_v21 = vpop.permute.xlu0 %476 }
 0x161   :  { %v1011_v31 = vcvt.s32.f32 %v1009_v27  ;;  %v1024_v27 = vcvt.s32.f32 %v1022_v54  ;;  %4373 = vst [vmem:[#allocation45_spill] sm:$0xff] %v3463_v21 }
 0x162   :  { %967 = vadd.xlane.f32.xlu0 %v964_v25  ;;  %v3442_v25 = vpop.permute.xlu1 %456 }
 0x163   :  { %977 = vadd.xlane.f32.xlu1 %v975_v28  ;;  %v1000_v28 = vcvt.s32.f32 %v998_v10 }
 0x164   :  { %v3470_v35 = vpop.permute.xlu0 %484 }
 0x166   :  { %979 = vadd.xlane.f32.xlu0 %v976_v16  ;;  %v1021_v16 = vand.u32 65535, %v728_v8  ;;  %v3451_v57 = vpop.permute.xlu1 %464  ;;  %v731_v8 = vsel %vm599_vm4, %v3352_v18, 0  ;;  %vm615_vm4 = vcmp.eq.s32.totalorder %v3256_v52, %v3343_v1 }
 0x167   :  { %989 = vadd.xlane.f32.xlu1 %v987_v12  ;;  %v729_v12 = vsel %vm597_vm2, %v3352_v18, 0  ;;  %vm613_vm2 = vcmp.eq.s32.totalorder %v3252_v50, %v3343_v1 }
 0x168   :  { %v1023_v14 = vcvt.s32.f32 %v1021_v16  ;;  %v1034_v10 = vshrl.u32 %v729_v12, 16  ;;  %v1046_v16 = vshrl.u32 %v730_v9, 16 }
 0x16a   :  { %991 = vadd.xlane.f32.xlu0 %v988_v24  ;;  %v1033_v24 = vand.u32 65535, %v729_v12  ;;  %v1058_v12 = vshrl.u32 %v731_v8, 16 }
 0x16b   :  { %1001 = vadd.xlane.f32.xlu1 %v999_v30  ;;  %v1045_v30 = vand.u32 65535, %v730_v9  ;;  %v733_v9 = vsel %vm601_vm6, %v3352_v18, 0  ;;  %vm617_vm6 = vcmp.eq.s32.totalorder %v3261_v55, %v3343_v1 }
 0x16c   :  { %v1035_v33 = vcvt.s32.f32 %v1033_v24  ;;  %v1048_v24 = vcvt.s32.f32 %v1046_v16  ;;  %v3480_v16 = vpop.permute.xlu0 %492 }
 0x16d   :  { %v1047_v34 = vcvt.s32.f32 %v1045_v30  ;;  %v1060_v30 = vcvt.s32.f32 %v1058_v12  ;;  %4374 = vst [vmem:[#allocation46_spill] sm:$0xff] %v3480_v16 }
 0x16e   :  { %1003 = vadd.xlane.f32.xlu0 %v1000_v28  ;;  %v3459_v28 = vpop.permute.xlu1 %472 }
 0x16f   :  { %1013 = vadd.xlane.f32.xlu1 %v1011_v31  ;;  %v1036_v31 = vcvt.s32.f32 %v1034_v10 }
 0x170   :  { %v3487_v40 = vpop.permute.xlu0 %500 }
 0x171   :  { %4375 = vst [vmem:[#allocation47_spill] sm:$0xff] %v3487_v40 }
 0x172   :  { %1015 = vadd.xlane.f32.xlu0 %v1012_v20  ;;  %v1057_v20 = vand.u32 65535, %v731_v8  ;;  %v3468_v54 = vpop.permute.xlu1 %480  ;;  %v734_v8 = vsel %vm602_vm7, %v3352_v18, 0  ;;  %vm618_vm7 = vcmp.eq.s32.totalorder %v3263_v56, %v3343_v1 }
 0x173   :  { %1025 = vadd.xlane.f32.xlu1 %v1023_v14  ;;  %v732_v14 = vsel %vm600_vm5, %v3352_v18, 0  ;;  %vm616_vm5 = vcmp.eq.s32.totalorder %v3258_v53, %v3343_v1 }
 0x174   :  { %v1059_v21 = vcvt.s32.f32 %v1057_v20  ;;  %v1070_v10 = vshrl.u32 %v732_v14, 16  ;;  %v1082_v20 = vshrl.u32 %v733_v9, 16 }
 0x176   :  { %1027 = vadd.xlane.f32.xlu0 %v1024_v27  ;;  %v1069_v27 = vand.u32 65535, %v732_v14  ;;  %v1094_v14 = vshrl.u32 %v734_v8, 16 }
 0x177   :  { %1037 = vadd.xlane.f32.xlu1 %v1035_v33  ;;  %v1081_v33 = vand.u32 65535, %v733_v9  ;;  %v736_v9 = vsel %vm604_vm9, %v3352_v18, 0  ;;  %vm620_vm9 = vcmp.eq.s32.totalorder %v3268_v59, %v3343_v1 }
 0x178   :  { %v1071_v37 = vcvt.s32.f32 %v1069_v27  ;;  %v1084_v27 = vcvt.s32.f32 %v1082_v20  ;;  %v3497_v20 = vpop.permute.xlu0 %508 }
 0x179   :  { %v1083_v38 = vcvt.s32.f32 %v1081_v33  ;;  %v1096_v33 = vcvt.s32.f32 %v1094_v14  ;;  %4377 = vst [vmem:[#allocation49_spill] sm:$0xff] %v3497_v20 }
 0x17a   :  { %1039 = vadd.xlane.f32.xlu0 %v1036_v31  ;;  %v3476_v31 = vpop.permute.xlu1 %488 }
 0x17b   :  { %1049 = vadd.xlane.f32.xlu1 %v1047_v34  ;;  %v1072_v34 = vcvt.s32.f32 %v1070_v10 }
 0x17c   :  { %v3504_v43 = vpop.permute.xlu0 %519 }
 0x17d   :  { %4379 = vst [vmem:[#allocation51_spill] sm:$0xff] %v3504_v43 }
 0x17e   :  { %1051 = vadd.xlane.f32.xlu0 %v1048_v24  ;;  %v1093_v24 = vand.u32 65535, %v734_v8  ;;  %v3485_v12 = vpop.permute.xlu1 %496  ;;  %v737_v8 = vsel %vm605_vm10, %v3352_v18, 0  ;;  %vm621_vm10 = vcmp.eq.s32.totalorder %v3270_v60, %v3343_v1  ;;  %v2400_v60 = vadd.s32 4294967280, %v3343_v1 }
 0x17f   :  { %1061 = vadd.xlane.f32.xlu1 %v1059_v21  ;;  %v735_v21 = vsel %vm603_vm8, %v3352_v18, 0  ;;  %vm619_vm8 = vcmp.eq.s32.totalorder %v3266_v58, %v3343_v1 }
 0x180   :  { %v1095_v16 = vcvt.s32.f32 %v1093_v24  ;;  %v1106_v10 = vshrl.u32 %v735_v21, 16  ;;  %v1118_v24 = vshrl.u32 %v736_v9, 16 }
 0x182   :  { %1063 = vadd.xlane.f32.xlu0 %v1060_v30  ;;  %v1105_v30 = vand.u32 65535, %v735_v21  ;;  %v1130_v21 = vshrl.u32 %v737_v8, 16 }
 0x183   :  { %1073 = vadd.xlane.f32.xlu1 %v1071_v37  ;;  %v1117_v37 = vand.u32 65535, %v736_v9  ;;  %v739_v9 = vsel %vm607_vm12, %v3352_v18, 0  ;;  %vm623_vm12 = vcmp.eq.s32.totalorder %v3274_v62, %v3343_v1 }
 0x184   :  { %v1107_v41 = vcvt.s32.f32 %v1105_v30  ;;  %v1120_v30 = vcvt.s32.f32 %v1118_v24  ;;  %v3514_v24 = vpop.permute.xlu0 %527 }
 0x185   :  { %v1119_v42 = vcvt.s32.f32 %v1117_v37  ;;  %v1132_v37 = vcvt.s32.f32 %v1130_v21  ;;  %4381 = vst [vmem:[#allocation53_spill] sm:$0xff] %v3514_v24 }
 0x186   :  { %1075 = vadd.xlane.f32.xlu0 %v1072_v34  ;;  %v3493_v34 = vpop.permute.xlu1 %504 }
 0x187   :  { %1085 = vadd.xlane.f32.xlu1 %v1083_v38  ;;  %4376 = vst [vmem:[#allocation48_spill] sm:$0xff] %v3493_v34  ;;  %v1108_v38 = vcvt.s32.f32 %v1106_v10 }
 0x188   :  { %v3521_v46 = vpop.permute.xlu0 %535 }
 0x189   :  { %4383 = vst [vmem:[#allocation55_spill] sm:$0xff] %v3521_v46 }
 0x18a   :  { %1087 = vadd.xlane.f32.xlu0 %v1084_v27  ;;  %v1129_v27 = vand.u32 65535, %v737_v8  ;;  %v3502_v14 = vpop.permute.xlu1 %512  ;;  %v740_v8 = vsel %vm608_vm13, %v3352_v18, 0  ;;  %vm4334_vm13 = vcmask 130112  }
 0x18b   :  { %1097 = vadd.xlane.f32.xlu1 %v1095_v16  ;;  %v738_v16 = vsel %vm606_vm11, %v3352_v18, 0  ;;  %4378 = vst [vmem:[#allocation50_spill] sm:$0xff] %v3502_v14  ;;  %vm622_vm11 = vcmp.eq.s32.totalorder %v3272_v61, %v3343_v1 }
 0x18c   :  { %v1131_v20 = vcvt.s32.f32 %v1129_v27  ;;  %v1142_v10 = vshrl.u32 %v738_v16, 16  ;;  %v1154_v27 = vshrl.u32 %v739_v9, 16 }
 0x18e   :  { %1099 = vadd.xlane.f32.xlu0 %v1096_v33  ;;  %v1141_v33 = vand.u32 65535, %v738_v16  ;;  %v1166_v16 = vshrl.u32 %v740_v8, 16 }
 0x18f   :  { %1109 = vadd.xlane.f32.xlu1 %v1107_v41  ;;  %v1153_v41 = vand.u32 65535, %v739_v9  ;;  %v742_v9 = vsel %vm610_vm15, %v3352_v18, 0  ;;  %vm2405_vm15 = vcmask 195712  }
 0x190   :  { %v1143_v44 = vcvt.s32.f32 %v1141_v33  ;;  %v1156_v33 = vcvt.s32.f32 %v1154_v27  ;;  %v3531_v27 = vpop.permute.xlu0 %543 }
 0x191   :  { %v1155_v45 = vcvt.s32.f32 %v1153_v41  ;;  %v1168_v41 = vcvt.s32.f32 %v1166_v16  ;;  %4385 = vst [vmem:[#allocation57_spill] sm:$0xff] %v3531_v27 }
 0x192   :  { %1111 = vadd.xlane.f32.xlu0 %v1108_v38  ;;  %v3510_v38 = vpop.permute.xlu1 %523 }
 0x193   :  { %1121 = vadd.xlane.f32.xlu1 %v1119_v42  ;;  %4380 = vst [vmem:[#allocation52_spill] sm:$0xff] %v3510_v38  ;;  %v1144_v42 = vcvt.s32.f32 %v1142_v10 }
 0x194   :  { %v3538_v49 = vpop.permute.xlu0 %551 }
 0x195   :  { %4387 = vst [vmem:[#allocation59_spill] sm:$0xff] %v3538_v49 }
 0x196   :  { %1123 = vadd.xlane.f32.xlu0 %v1120_v30  ;;  %v1165_v30 = vand.u32 65535, %v740_v8  ;;  %v3519_v21 = vpop.permute.xlu1 %531  ;;  %v743_v8 = vsel %vm611_vm0, %v3352_v18, 0  ;;  %vm625_vm0 = vcmp.eq.s32.totalorder %v3278_v0, %v3343_v1 }
 0x197   :  { %1133 = vadd.xlane.f32.xlu1 %v1131_v20  ;;  %v741_v20 = vsel %vm609_vm14, %v3352_v18, 0  ;;  %4382 = vst [vmem:[#allocation54_spill] sm:$0xff] %v3519_v21  ;;  %vm624_vm14 = vcmp.eq.s32.totalorder %v3276_v63, %v3343_v1 }
 0x198   :  { %v1167_v14 = vcvt.s32.f32 %v1165_v30  ;;  %v1178_v10 = vshrl.u32 %v741_v20, 16  ;;  %v1190_v30 = vshrl.u32 %v742_v9, 16 }
 0x19a   :  { %1135 = vadd.xlane.f32.xlu0 %v1132_v37  ;;  %v1177_v37 = vand.u32 65535, %v741_v20  ;;  %v1202_v20 = vshrl.u32 %v743_v8, 16 }
 0x19b   :  { %1145 = vadd.xlane.f32.xlu1 %v1143_v44  ;;  %v1189_v44 = vand.u32 65535, %v742_v9  ;;  %v745_v9 = vsel %vm613_vm2, %v3352_v18, 0  ;;  %vm626_vm2 = vcmp.eq.s32.totalorder %v3280_v3, %v3343_v1 }
 0x19c   :  { %v1179_v47 = vcvt.s32.f32 %v1177_v37  ;;  %v1192_v37 = vcvt.s32.f32 %v1190_v30  ;;  %v3548_v30 = vpop.permute.xlu0 %559 }
 0x19d   :  { %v1191_v48 = vcvt.s32.f32 %v1189_v44  ;;  %v1204_v44 = vcvt.s32.f32 %v1202_v20  ;;  %4389 = vst [vmem:[#allocation61_spill] sm:$0xff] %v3548_v30 }
 0x19e   :  { %1147 = vadd.xlane.f32.xlu0 %v1144_v42  ;;  %v3527_v42 = vpop.permute.xlu1 %539 }
 0x19f   :  { %1157 = vadd.xlane.f32.xlu1 %v1155_v45  ;;  %4384 = vst [vmem:[#allocation56_spill] sm:$0xff] %v3527_v42  ;;  %v1180_v45 = vcvt.s32.f32 %v1178_v10 }
 0x1a0   :  { %v3555_v52 = vpop.permute.xlu0 %567 }
 0x1a1   :  { %4391 = vst [vmem:[#allocation63_spill] sm:$0xff] %v3555_v52 }
 0x1a2   :  { %1159 = vadd.xlane.f32.xlu0 %v1156_v33  ;;  %v1201_v33 = vand.u32 65535, %v743_v8  ;;  %v3536_v16 = vpop.permute.xlu1 %547  ;;  %v746_v8 = vsel %vm614_vm3, %v3352_v18, 0  ;;  %vm2419_vm3 = vcmask 326912  }
 0x1a3   :  { %1169 = vadd.xlane.f32.xlu1 %v1167_v14  ;;  %v744_v14 = vsel %vm612_vm1, %v3352_v18, 0  ;;  %4386 = vst [vmem:[#allocation58_spill] sm:$0xff] %v3536_v16  ;;  %vm2412_vm1 = vcmask 261312  }
 0x1a4   :  { %v1203_v27 = vcvt.s32.f32 %v1201_v33  ;;  %v1214_v10 = vshrl.u32 %v744_v14, 16  ;;  %v1226_v33 = vshrl.u32 %v745_v9, 16 }
 0x1a6   :  { %1171 = vadd.xlane.f32.xlu0 %v1168_v41  ;;  %v1213_v41 = vand.u32 65535, %v744_v14  ;;  %v1238_v14 = vshrl.u32 %v746_v8, 16 }
 0x1a7   :  { %1181 = vadd.xlane.f32.xlu1 %v1179_v47  ;;  %v1225_v47 = vand.u32 65535, %v745_v9  ;;  %v748_v9 = vsel %vm616_vm5, %v3352_v18, 0  ;;  %vm2426_vm5 = vcmask 392512  }
 0x1a8   :  { %v1215_v50 = vcvt.s32.f32 %v1213_v41  ;;  %v1228_v41 = vcvt.s32.f32 %v1226_v33  ;;  %v3565_v33 = vpop.permute.xlu0 %575 }
 0x1a9   :  { %v1227_v51 = vcvt.s32.f32 %v1225_v47  ;;  %v1240_v47 = vcvt.s32.f32 %v1238_v14  ;;  %4393 = vst [vmem:[#allocation65_spill] sm:$0xff] %v3565_v33 }
 0x1aa   :  { %1183 = vadd.xlane.f32.xlu0 %v1180_v45  ;;  %v3544_v45 = vpop.permute.xlu1 %555 }
 0x1ab   :  { %1193 = vadd.xlane.f32.xlu1 %v1191_v48  ;;  %4388 = vst [vmem:[#allocation60_spill] sm:$0xff] %v3544_v45  ;;  %v1216_v48 = vcvt.s32.f32 %v1214_v10 }
 0x1ae   :  { %1195 = vadd.xlane.f32.xlu0 %v1192_v37  ;;  %v1237_v37 = vand.u32 65535, %v746_v8  ;;  %v3553_v20 = vpop.permute.xlu1 %563  ;;  %v749_v8 = vsel %vm617_vm6, %v3352_v18, 0  ;;  %vm628_vm6 = vcmp.eq.s32.totalorder %v3284_v5, %v3343_v1 }
 0x1af   :  { %1205 = vadd.xlane.f32.xlu1 %v1203_v27  ;;  %v747_v27 = vsel %vm615_vm4, %v3352_v18, 0  ;;  %4390 = vst [vmem:[#allocation62_spill] sm:$0xff] %v3553_v20  ;;  %v1274_v14 = vshrl.u32 %v749_v8, 16  ;;  %vm627_vm4 = vcmp.eq.s32.totalorder %v3282_v4, %v3343_v1 }
 0x1b0   :  { %v1239_v30 = vcvt.s32.f32 %v1237_v37  ;;  %v1250_v10 = vshrl.u32 %v747_v27, 16  ;;  %v1262_v37 = vshrl.u32 %v748_v9, 16 }
 0x1b2   :  { %1207 = vadd.xlane.f32.xlu0 %v1204_v44  ;;  %v1249_v44 = vand.u32 65535, %v747_v27 }
 0x1b3   :  { %1217 = vadd.xlane.f32.xlu1 %v1215_v50  ;;  %v1261_v50 = vand.u32 65535, %v748_v9 }
 0x1b4   :  { %v1251_v53 = vcvt.s32.f32 %v1249_v44 }
 0x1b5   :  { %v1263_v55 = vcvt.s32.f32 %v1261_v50 }
 0x1b6   :  { %1219 = vadd.xlane.f32.xlu0 %v1216_v48  ;;  %v3561_v48 = vpop.permute.xlu1 %571 }
 0x1b7   :  { %1229 = vadd.xlane.f32.xlu1 %v1227_v51  ;;  %4392 = vst [vmem:[#allocation64_spill] sm:$0xff] %v3561_v48  ;;  %v1252_v51 = vcvt.s32.f32 %v1250_v10 }
 0x1ba   :  { %1231 = vadd.xlane.f32.xlu0 %v1228_v41  ;;  %v1273_v41 = vand.u32 65535, %v749_v8  ;;  %v3570_v44 = vpop.permute.xlu1 %579 }
 0x1bb   :  { %1241 = vadd.xlane.f32.xlu1 %v1239_v30  ;;  %v750_v30 = vsel %vm618_vm7, %v3352_v18, 0  ;;  %4394 = vst [vmem:[#allocation66_spill] sm:$0xff] %v3570_v44  ;;  %vm2433_vm7 = vcmask 458112  }
 0x1bc   :  { %v1285_v56 = vand.u32 65535, %v750_v30  ;;  %v1275_v48 = vcvt.s32.f32 %v1273_v41  ;;  %v1286_v10 = vshrl.u32 %v750_v30, 16 }
 0x1be   :  { %1243 = vadd.xlane.f32.xlu0 %v1240_v47  ;;  %v1264_v47 = vcvt.s32.f32 %v1262_v37  ;;  %v1287_v33 = vcvt.s32.f32 %v1285_v56  ;;  %v2393_v37 = vadd.s32 4294967288, %v3343_v1  ;;  %v1288_v52 = vcvt.s32.f32 %v1286_v10 }
 0x1bf   :  { %1253 = vadd.xlane.f32.xlu1 %v1251_v53  ;;  %v751_v53 = vsel %vm619_vm8, %v3352_v18, 0  ;;  %v753_v56 = vsel %vm621_vm10, %v3352_v18, 0  ;;  %vm629_vm8 = vcmp.eq.s32.totalorder %v3286_v7, %v3343_v1 }
 0x1c0   :  { %v1297_v58 = vand.u32 65535, %v751_v53  ;;  %v1298_v41 = vshrl.u32 %v751_v53, 16 }
 0x1c2   :  { %1255 = vadd.xlane.f32.xlu0 %v1252_v51  ;;  %v1276_v51 = vcvt.s32.f32 %v1274_v14  ;;  %v1299_v20 = vcvt.s32.f32 %v1297_v58 }
 0x1c3   :  { %1265 = vadd.xlane.f32.xlu1 %v1263_v55  ;;  %v846_v27 = vpop.xlane.xlu0 %845  ;;  %v752_v55 = vsel %vm620_vm9, %v3352_v18, 0  ;;  %vm2440_vm9 = vcmask 523712  }
 0x1c4   :  { %v849_v44 = vcvt.f32.s32 %v846_v27  ;;  %v3585_v27 = vsub.s32 %v3343_v1, %v3172_v2  ;;  %v1310_v61 = vshrl.u32 %v752_v55, 16 }
 0x1c6   :  { %1267 = vadd.xlane.f32.xlu0 %v1264_v47  ;;  %v1309_v47 = vand.u32 65535, %v752_v55 }
 0x1c7   :  { %1277 = vadd.xlane.f32.xlu1 %v1275_v48  ;;  %v858_v9 = vpop.xlane.xlu0 %857 }
 0x1c8   :  { %v848_v50 = vpop.xlane.xlu1 %847 }
 0x1c9   :  { %v850_v8 = vcvt.f32.s32 %v848_v50 }
 0x1ca   :  { %1279 = vadd.xlane.f32.xlu0 %v1276_v51  ;;  %v861_v51 = vcvt.f32.s32 %v858_v9  ;;  %v1311_v9 = vcvt.s32.f32 %v1309_v47 }
 0x1cb   :  { %v851_v59 = vshll.u32 %v850_v8, 16  ;;  %1289 = vadd.xlane.f32.xlu1 %v1287_v33  ;;  %v860_v48 = vpop.xlane.xlu0 %859  ;;  %v3588_v33 = vsub.s32 %v2393_v37, %v3172_v2  ;;  %v754_v8 = vsel %vm622_vm11, %v3352_v18, 0  ;;  %v3594_v37 = vsub.s32 %v2400_v60, %v3172_v2 }
 0x1cc   :  { %v862_v30 = vcvt.f32.s32 %v860_v48  ;;  %v870_v14 = vpop.xlane.xlu1 %869  ;;  %v1300_v48 = vcvt.s32.f32 %v1298_v41  ;;  %vm2447_vm11 = vcmask 589312  }
 0x1cd   :  { %v852_v50 = vadd.s32 %v851_v59, %v849_v44  ;;  %v1321_v44 = vand.u32 65535, %v753_v56 }
 0x1ce   :  { %v863_v53 = vshll.u32 %v862_v30, 16  ;;  %1291 = vadd.xlane.f32.xlu0 %v1288_v52  ;;  %v2407_v52 = vadd.s32 4294967272, %v3343_v1  ;;  %v873_v30 = vcvt.f32.s32 %v870_v14  ;;  %v755_v14 = vsel %vm623_vm12, %v3352_v18, 0 }
 0x1cf   :  { %1301 = vadd.xlane.f32.xlu1 %v1299_v20  ;;  %v872_v10 = vpop.xlane.xlu0 %871  ;;  %v2392_v55 = vrot.slane %v852_v50, %v3585_v27  ;;  %v1323_v50 = vcvt.s32.f32 %v1321_v44  ;;  %v1345_v46 = vand.u32 65535, %v755_v14 }
 0x1d0   :  { %v864_v58 = vadd.s32 %v863_v53, %v861_v51  ;;  %v874_v59 = vcvt.f32.s32 %v872_v10  ;;  %v882_v45 = vpop.xlane.xlu1 %881  ;;  %v1322_v51 = vshrl.u32 %v753_v56, 16  ;;  %v1333_v53 = vand.u32 65535, %v754_v8 }
 0x1d1   :  { %v1312_v10 = vcvt.s32.f32 %v1310_v61  ;;  %v2414_v56 = vadd.s32 4294967264, %v3343_v1  ;;  %v885_v61 = vcvt.f32.s32 %v882_v45 }
 0x1d2   :  { %v2397_v20 = vrot.slane %v864_v58, %v3588_v33  ;;  %v875_v41 = vshll.u32 %v874_v59, 16  ;;  %1303 = vadd.xlane.f32.xlu0 %v1300_v48  ;;  %v3609_v58 = vsub.s32 %v2407_v52, %v3172_v2  ;;  %v1334_v59 = vshrl.u32 %v754_v8, 16 }
 0x1d3   :  { %1313 = vadd.xlane.f32.xlu1 %v1311_v9  ;;  %v884_v47 = vpop.xlane.xlu0 %883  ;;  %v756_v9 = vsel %vm624_vm14, %v3352_v18, 0  ;;  %v2421_v52 = vadd.s32 4294967256, %v3343_v1  ;;  %vm2454_vm14 = vcmask 654912  }
 0x1d4   :  { %v2399_v60 = vsel %vm4334_vm13, %v2397_v20, %v2392_v55  ;;  %v876_v49 = vadd.s32 %v875_v41, %v873_v30  ;;  %v886_v16 = vcvt.f32.s32 %v884_v47  ;;  %v894_v42 = vpop.xlane.xlu1 %893  ;;  %v1324_v20 = vcvt.s32.f32 %v1322_v51 }
 0x1d5   :  { %v1335_v47 = vcvt.s32.f32 %v1333_v53  ;;  %v897_v45 = vcvt.f32.s32 %v894_v42  ;;  %v1346_v51 = vshrl.u32 %v755_v14, 16  ;;  %v1336_v53 = vcvt.s32.f32 %v1334_v59 }
 0x1d6   :  { %v2404_v48 = vrot.slane %v876_v49, %v3594_v37  ;;  %v887_v63 = vshll.u32 %v886_v16, 16  ;;  %1315 = vadd.xlane.f32.xlu0 %v1312_v10  ;;  %v3616_v16 = vsub.s32 %v2414_v56, %v3172_v2  ;;  %v1357_v10 = vand.u32 65535, %v756_v9 }
 0x1d7   :  { %1325 = vadd.xlane.f32.xlu1 %v1323_v50  ;;  %v896_v55 = vpop.xlane.xlu0 %895  ;;  %v757_v42 = vsel %vm625_vm0, %v3352_v18, 0  ;;  %v2428_v14 = vadd.s32 4294967248, %v3343_v1 }
 0x1d8   :  { %v2406_v62 = vsel %vm2405_vm15, %v2404_v48, %v2399_v60  ;;  %v888_v30 = vadd.s32 %v887_v63, %v885_v61  ;;  %v898_v44 = vcvt.f32.s32 %v896_v55  ;;  %v906_v41 = vpop.xlane.xlu1 %905  ;;  %v1347_v63 = vcvt.s32.f32 %v1345_v46 }
 0x1d9   :  { %v909_v59 = vcvt.f32.s32 %v906_v41  ;;  %v3637_v41 = vsub.s32 %v2428_v14, %v3172_v2 }
 0x1da   :  { %v2411_v49 = vrot.slane %v888_v30, %v3609_v58  ;;  %v899_v8 = vshll.u32 %v898_v44, 16  ;;  %1327 = vadd.xlane.f32.xlu0 %v1324_v20  ;;  %v3630_v20 = vsub.s32 %v2421_v52, %v3172_v2  ;;  %v758_v30 = vsel %vm626_vm2, %v3352_v18, 0 }
 0x1db   :  { %1337 = vadd.xlane.f32.xlu1 %v1335_v47  ;;  %v908_v60 = vpop.xlane.xlu0 %907  ;;  %v1348_v47 = vcvt.s32.f32 %v1346_v51  ;;  %v2435_v51 = vadd.s32 4294967240, %v3343_v1  ;;  %vm2461_vm2 = vcmask 720512  }
 0x1dc   :  { %v2413_v50 = vsel %vm2412_vm1, %v2411_v49, %v2406_v62  ;;  %v900_v48 = vadd.s32 %v899_v8, %v897_v45  ;;  %v910_v56 = vcvt.f32.s32 %v908_v60  ;;  %v918_v61 = vpop.xlane.xlu1 %917  ;;  %v1358_v62 = vshrl.u32 %v756_v9, 16 }
 0x1dd   :  { %v1359_v8 = vcvt.s32.f32 %v1357_v10  ;;  %v1369_v60 = vand.u32 65535, %v757_v42  ;;  %v921_v52 = vcvt.f32.s32 %v918_v61  ;;  %v759_v61 = vsel %vm627_vm4, %v3352_v18, 0 }
 0x1de   :  { %v2418_v55 = vrot.slane %v900_v48, %v3616_v16  ;;  %v911_v3 = vshll.u32 %v910_v56, 16  ;;  %1339 = vadd.xlane.f32.xlu0 %v1336_v53  ;;  %v1381_v48 = vand.u32 65535, %v758_v30  ;;  %v1360_v10 = vcvt.s32.f32 %v1358_v62 }
 0x1df   :  { %1349 = vadd.xlane.f32.xlu1 %v1347_v63  ;;  %v920_v44 = vpop.xlane.xlu0 %919 }
 0x1e0   :  { %v2420_v0 = vsel %vm2419_vm3, %v2418_v55, %v2413_v50  ;;  %v912_v49 = vadd.s32 %v911_v3, %v909_v59  ;;  %v922_v46 = vcvt.f32.s32 %v920_v44  ;;  %v930_v45 = vpop.xlane.xlu1 %929  ;;  %v1370_v50 = vshrl.u32 %v757_v42, 16 }
 0x1e1   :  { %v1371_v3 = vcvt.s32.f32 %v1369_v60  ;;  %v2442_v42 = vadd.s32 4294967232, %v3343_v1  ;;  %v933_v62 = vcvt.f32.s32 %v930_v45 }
 0x1e2   :  { %v2425_v9 = vrot.slane %v912_v49, %v3630_v20  ;;  %v923_v53 = vshll.u32 %v922_v46, 16  ;;  %1351 = vadd.xlane.f32.xlu0 %v1348_v47  ;;  %v3651_v47 = vsub.s32 %v2435_v51, %v3172_v2  ;;  %v760_v49 = vsel %vm628_vm6, %v3352_v18, 0 }
 0x1e3   :  { %1361 = vadd.xlane.f32.xlu1 %v1359_v8  ;;  %v932_v56 = vpop.xlane.xlu0 %931  ;;  %v1372_v8 = vcvt.s32.f32 %v1370_v50  ;;  %v3658_v45 = vsub.s32 %v2442_v42, %v3172_v2  ;;  %v2449_v50 = vadd.s32 4294967224, %v3343_v1  ;;  %vm2468_vm6 = vcmask 786112  }
 0x1e4   :  { %v2427_v63 = vsel %vm2426_vm5, %v2425_v9, %v2420_v0  ;;  %v924_v55 = vadd.s32 %v923_v53, %v921_v52  ;;  %v934_v14 = vcvt.f32.s32 %v932_v56  ;;  %v942_v59 = vpop.xlane.xlu1 %941  ;;  %v1382_v0 = vshrl.u32 %v758_v30, 16 }
 0x1e5   :  { %v1383_v53 = vcvt.s32.f32 %v1381_v48  ;;  %v1393_v56 = vand.u32 65535, %v759_v61  ;;  %v945_v18 = vcvt.f32.s32 %v942_v59  ;;  %v3668_v59 = vld [vmem:[%s4320_s3] ss:$0 sm:$0xff] }
 0x1e6   :  { %v2432_v44 = vrot.slane %v924_v55, %v3637_v41  ;;  %v935_v5 = vshll.u32 %v934_v14, 16  ;;  %1363 = vadd.xlane.f32.xlu0 %v1360_v10  ;;  %v1394_v10 = vshrl.u32 %v759_v61, 16  ;;  %v1384_v48 = vcvt.s32.f32 %v1382_v0  ;;  %v4395_v14 = vld [vmem:[#allocation8_spill] sm:$0xff] }
 0x1e7   :  { %1373 = vadd.xlane.f32.xlu1 %v1371_v3  ;;  %v944_v46 = vpop.xlane.xlu0 %943  ;;  %vm630_vm10 = vcmp.eq.s32.totalorder %v4395_v14, %v3343_v1  ;;  %v761_v61 = vsel %vm629_vm8, %v3668_v59, 0  ;;  %v2456_v0 = vadd.s32 4294967216, %v3343_v1 }
 0x1e8   :  { %v2434_v4 = vsel %vm2433_vm7, %v2432_v44, %v2427_v63  ;;  %v936_v9 = vadd.s32 %v935_v5, %v933_v62  ;;  %v946_v60 = vcvt.f32.s32 %v944_v46  ;;  %v954_v52 = vpop.xlane.xlu1 %953  ;;  %v1405_v63 = vand.u32 65535, %v760_v49 }
 0x1e9   :  { %v1395_v5 = vcvt.s32.f32 %v1393_v56 }
 0x1ea   :  { %v2439_v30 = vrot.slane %v936_v9, %v3651_v47  ;;  %v947_v51 = vshll.u32 %v946_v60, 16  ;;  %1375 = vadd.xlane.f32.xlu0 %v1372_v8  ;;  %v957_v8 = vcvt.f32.s32 %v954_v52  ;;  %v1406_v60 = vshrl.u32 %v760_v49, 16 }
 0x1eb   :  { %1385 = vadd.xlane.f32.xlu1 %v1383_v53  ;;  %v956_v55 = vpop.xlane.xlu0 %955  ;;  %v762_v53 = vsel %vm630_vm10, %v3668_v59, 0  ;;  %v1407_v52 = vcvt.s32.f32 %v1405_v63  ;;  %v3687_v49 = vsub.s32 %v2456_v0, %v3172_v2  ;;  %vm4333_vm10 = vcmask 851712  }
 0x1ec   :  { %v2441_v3 = vsel %vm2440_vm9, %v2439_v30, %v2434_v4  ;;  %v948_v44 = vadd.s32 %v947_v51, %v945_v18  ;;  %v958_v42 = vcvt.f32.s32 %v956_v55  ;;  %v966_v62 = vpop.xlane.xlu1 %965  ;;  %v3677_v4 = vsub.s32 %v2449_v50, %v3172_v2  ;;  %v4396_v50 = vld [vmem:[#allocation9_spill] sm:$0xff] }
 0x1ed   :  { %v1396_v30 = vcvt.s32.f32 %v1394_v10  ;;  %vm631_vm12 = vcmp.eq.s32.totalorder %v4396_v50, %v3343_v1  ;;  %v969_v14 = vcvt.f32.s32 %v966_v62  ;;  %v2463_v10 = vadd.s32 4294967208, %v3343_v1 }
 0x1ee   :  { %v2446_v46 = vrot.slane %v948_v44, %v3658_v45  ;;  %v959_v9 = vshll.u32 %v958_v42, 16  ;;  %1387 = vadd.xlane.f32.xlu0 %v1384_v48  ;;  %v1417_v44 = vand.u32 65535, %v761_v61  ;;  %v1408_v63 = vcvt.s32.f32 %v1406_v60 }
 0x1ef   :  { %1397 = vadd.xlane.f32.xlu1 %v1395_v5  ;;  %v968_v7 = vpop.xlane.xlu0 %967  ;;  %v1429_v5 = vand.u32 65535, %v762_v53  ;;  %v763_v62 = vsel %vm631_vm12, %v3668_v59, 0 }
 0x1f0   :  { %v2448_v56 = vsel %vm2447_vm11, %v2446_v46, %v2441_v3  ;;  %v960_v18 = vadd.s32 %v959_v9, %v957_v8  ;;  %v970_v51 = vcvt.f32.s32 %v968_v7  ;;  %v978_v55 = vpop.xlane.xlu1 %977  ;;  %v1418_v3 = vshrl.u32 %v761_v61, 16  ;;  %v4397_v8 = vld [vmem:[#allocation10_spill] sm:$0xff] }
 0x1f1   :  { %vm632_vm0 = vcmp.eq.s32.totalorder %v4397_v8, %v3343_v1  ;;  %v2470_v61 = vadd.s32 4294967200, %v3343_v1  ;;  %v981_v60 = vcvt.f32.s32 %v978_v55  ;;  %v1431_v24 = vcvt.s32.f32 %v1429_v5  ;;  %v4398_v55 = vld [vmem:[#allocation11_spill] sm:$0xff] }
 0x1f2   :  { %v2453_v48 = vrot.slane %v960_v18, %v3677_v4  ;;  %v971_v42 = vshll.u32 %v970_v51, 16  ;;  %1399 = vadd.xlane.f32.xlu0 %v1396_v30  ;;  %v1419_v30 = vcvt.s32.f32 %v1417_v44  ;;  %v3701_v51 = vsub.s32 %v2463_v10, %v3172_v2 }
 0x1f3   :  { %1409 = vadd.xlane.f32.xlu1 %v1407_v52  ;;  %v980_v46 = vpop.xlane.xlu0 %979  ;;  %v1441_v38 = vand.u32 65535, %v763_v62  ;;  %vm633_vm4 = vcmp.eq.s32.totalorder %v4398_v55, %v3343_v1  ;;  %v3708_v10 = vsub.s32 %v2470_v61, %v3172_v2 }
 0x1f4   :  { %v2455_v9 = vsel %vm2454_vm14, %v2453_v48, %v2448_v56  ;;  %v972_v7 = vadd.s32 %v971_v42, %v969_v14  ;;  %v982_v0 = vcvt.f32.s32 %v980_v46  ;;  %v990_v21 = vpop.xlane.xlu1 %989  ;;  %v1430_v56 = vshrl.u32 %v762_v53, 16 }
 0x1f5   :  { %v764_v48 = vsel %vm632_vm0, %v3668_v59, 0  ;;  %v1420_v42 = vcvt.s32.f32 %v1418_v3  ;;  %v2477_v3 = vadd.s32 4294967192, %v3343_v1  ;;  %vm4332_vm0 = vcmask 917312  }
 0x1f6   :  { %v2460_v18 = vrot.slane %v972_v7, %v3687_v49  ;;  %v983_v52 = vshll.u32 %v982_v0, 16  ;;  %1411 = vadd.xlane.f32.xlu0 %v1408_v63  ;;  %v993_v63 = vcvt.f32.s32 %v990_v21  ;;  %v1453_v0 = vand.u32 65535, %v764_v48 }
 0x1f7   :  { %1421 = vadd.xlane.f32.xlu1 %v1419_v30  ;;  %v992_v14 = vpop.xlane.xlu0 %991  ;;  %v1432_v5 = vcvt.s32.f32 %v1430_v56  ;;  %v765_v21 = vsel %vm633_vm4, %v3668_v59, 0  ;;  %vm2489_vm4 = vcmask 982912  }
 0x1f8   :  { %v2462_v50 = vsel %vm2461_vm2, %v2460_v18, %v2455_v9  ;;  %v984_v46 = vadd.s32 %v983_v52, %v981_v60  ;;  %v994_v44 = vcvt.f32.s32 %v992_v14  ;;  %v1002_v8 = vpop.xlane.xlu1 %1001  ;;  %v1442_v9 = vshrl.u32 %v763_v62, 16  ;;  %v4399_v18 = vld [vmem:[#allocation12_spill] sm:$0xff] }
 0x1f9   :  { %vm634_vm8 = vcmp.eq.s32.totalorder %v4399_v18, %v3343_v1  ;;  %v2484_v62 = vadd.s32 4294967184, %v3343_v1  ;;  %v1005_v56 = vcvt.f32.s32 %v1002_v8  ;;  %v1455_v43 = vcvt.s32.f32 %v1453_v0  ;;  %v4400_v8 = vld [vmem:[#allocation13_spill] sm:$0xff] }
 0x1fa   :  { %v2467_v53 = vrot.slane %v984_v46, %v3701_v51  ;;  %v995_v7 = vshll.u32 %v994_v44, 16  ;;  %1423 = vadd.xlane.f32.xlu0 %v1420_v42  ;;  %v1443_v42 = vcvt.s32.f32 %v1441_v38  ;;  %v3722_v46 = vsub.s32 %v2477_v3, %v3172_v2 }
 0x1fb   :  { %1433 = vadd.xlane.f32.xlu1 %v1431_v24  ;;  %v1004_v30 = vpop.xlane.xlu0 %1003  ;;  %v1465_v34 = vand.u32 65535, %v765_v21  ;;  %vm635_vm12 = vcmp.eq.s32.totalorder %v4400_v8, %v3343_v1  ;;  %v3729_v3 = vsub.s32 %v2484_v62, %v3172_v2 }
 0x1fc   :  { %v2469_v60 = vsel %vm2468_vm6, %v2467_v53, %v2462_v50  ;;  %v996_v52 = vadd.s32 %v995_v7, %v993_v63  ;;  %v1006_v61 = vcvt.f32.s32 %v1004_v30  ;;  %v1014_v14 = vpop.xlane.xlu1 %1013  ;;  %v1454_v50 = vshrl.u32 %v764_v48, 16 }
 0x1fd   :  { %v766_v53 = vsel %vm634_vm8, %v3668_v59, 0  ;;  %v1444_v7 = vcvt.s32.f32 %v1442_v9  ;;  %v2491_v9 = vadd.s32 4294967176, %v3343_v1  ;;  %v767_v62 = vsel %vm635_vm12, %v3668_v59, 0 }
 0x1fe   :  { %v2474_v24 = vrot.slane %v996_v52, %v3708_v10  ;;  %v1007_v44 = vshll.u32 %v1006_v61, 16  ;;  %1435 = vadd.xlane.f32.xlu0 %v1432_v5  ;;  %v1017_v5 = vcvt.f32.s32 %v1014_v14  ;;  %v1456_v61 = vcvt.s32.f32 %v1454_v50 }
 0x1ff   :  { %1445 = vadd.xlane.f32.xlu1 %v1443_v42  ;;  %v1016_v63 = vpop.xlane.xlu0 %1015  ;;  %v1466_v42 = vshrl.u32 %v765_v21, 16  ;;  %v1467_v14 = vcvt.s32.f32 %v1465_v34  ;;  %v1478_v50 = vshrl.u32 %v766_v53, 16  ;;  %vm2496_vm12 = vcmask 1048512  }
 0x200   :  { %v2476_v55 = vsel %vm4333_vm10, %v2474_v24, %v2469_v60  ;;  %v1008_v30 = vadd.s32 %v1007_v44, %v1005_v56  ;;  %v1018_v38 = vcvt.f32.s32 %v1016_v63  ;;  %v1026_v18 = vpop.xlane.xlu1 %1025  ;;  %v1477_v63 = vand.u32 65535, %v766_v53 }
 0x201   :  { %v1468_v34 = vcvt.s32.f32 %v1466_v42 }
 0x202   :  { %v2481_v48 = vrot.slane %v1008_v30, %v3722_v46  ;;  %v1019_v52 = vshll.u32 %v1018_v38, 16  ;;  %1447 = vadd.xlane.f32.xlu0 %v1444_v7  ;;  %v1029_v30 = vcvt.f32.s32 %v1026_v18  ;;  %v1479_v18 = vcvt.s32.f32 %v1477_v63 }
 0x203   :  { %1457 = vadd.xlane.f32.xlu1 %v1455_v43  ;;  %v1028_v60 = vpop.xlane.xlu0 %1027  ;;  %v3740_v43 = vsub.s32 %v2491_v9, %v3172_v2 }
 0x204   :  { %v2483_v0 = vsel %vm4332_vm0, %v2481_v48, %v2476_v55  ;;  %v1020_v24 = vadd.s32 %v1019_v52, %v1017_v5  ;;  %v1030_v56 = vcvt.f32.s32 %v1028_v60  ;;  %v1038_v44 = vpop.xlane.xlu1 %1037  ;;  %v4401_v55 = vld [vmem:[#allocation14_spill] sm:$0xff]  ;;  %v1489_v60 = vand.u32 65535, %v767_v62 }
 0x205   :  { %vm636_vm8 = vcmp.eq.s32.totalorder %v4401_v55, %v3343_v1 }
 0x206   :  { %v2488_v7 = vrot.slane %v1020_v24, %v3729_v3  ;;  %v1031_v21 = vshll.u32 %v1030_v56, 16  ;;  %1459 = vadd.xlane.f32.xlu0 %v1456_v61  ;;  %v768_v2 = vsel %vm636_vm8, %v3668_v59, 0  ;;  %v1041_v61 = vcvt.f32.s32 %v1038_v44  ;;  %v4402_v24 = vld [vmem:[#allocation15_spill] sm:$0xff]  ;;  %v4403_v44 = vld [vmem:[#allocation16_spill] sm:$0xff] }
 0x207   :  { %1469 = vadd.xlane.f32.xlu1 %v1467_v14  ;;  %v1040_v38 = vpop.xlane.xlu0 %1039  ;;  %vm637_vm0 = vcmp.eq.s32.totalorder %v4402_v24, %v3343_v1  ;;  %v1490_v14 = vshrl.u32 %v767_v62, 16  ;;  %v1491_v55 = vcvt.s32.f32 %v1489_v60  ;;  %vm638_vm8 = vcmp.eq.s32.totalorder %v4403_v44, %v3343_v1 }
 0x208   :  { %v2490_v48 = vsel %vm2489_vm4, %v2488_v7, %v2483_v0  ;;  %v1032_v8 = vadd.s32 %v1031_v21, %v1029_v30  ;;  %v1042_v5 = vcvt.f32.s32 %v1040_v38  ;;  %v1050_v52 = vpop.xlane.xlu1 %1049  ;;  %v1480_v0 = vcvt.s32.f32 %v1478_v50 }
 0x209   :  { %v1501_v21 = vand.u32 65535, %v768_v2  ;;  %v769_v38 = vsel %vm637_vm0, %v3668_v59, 0 }
 0x20a   :  { %v2495_v9 = vrot.slane %v1032_v8, %v3740_v43  ;;  %v1043_v53 = vshll.u32 %v1042_v5, 16  ;;  %1471 = vadd.xlane.f32.xlu0 %v1468_v34  ;;  %v1053_v8 = vcvt.f32.s32 %v1050_v52  ;;  %v1502_v34 = vshrl.u32 %v768_v2, 16  ;;  %v4404_v52 = vld [vmem:[#allocation17_spill] sm:$0xff] }
 0x20b   :  { %1481 = vadd.xlane.f32.xlu1 %v1479_v18  ;;  %v1052_v56 = vpop.xlane.xlu0 %1051  ;;  %v1503_v24 = vcvt.s32.f32 %v1501_v21  ;;  %vm639_vm0 = vcmp.eq.s32.totalorder %v4404_v52, %v3343_v1 }
 0x20c   :  { %v3750_v7 = vsel %vm2496_vm12, %v2495_v9, %v2490_v48  ;;  %v1044_v42 = vadd.s32 %v1043_v53, %v1041_v61  ;;  %v1054_v30 = vcvt.f32.s32 %v1052_v56  ;;  %v1062_v63 = vpop.xlane.xlu1 %1061  ;;  %v1492_v9 = vcvt.s32.f32 %v1490_v14 }
 0x20d   :  { %v1513_v61 = vand.u32 65535, %v769_v38  ;;  %v770_v53 = vsel %vm638_vm8, %v3668_v59, 0  ;;  %v1065_v40 = vcvt.f32.s32 %v1062_v63 }
 0x20e   :  { %v1055_v5 = vshll.u32 %v1054_v30, 16  ;;  %1483 = vadd.xlane.f32.xlu0 %v1480_v0  ;;  %v2501_v60 = vrot.slane %v1044_v42, %v3585_v27  ;;  %v1504_v0 = vcvt.s32.f32 %v1502_v34  ;;  %v1514_v30 = vshrl.u32 %v769_v38, 16 }
 0x20f   :  { %1493 = vadd.xlane.f32.xlu1 %v1491_v55  ;;  %v1064_v50 = vpop.xlane.xlu0 %1063  ;;  %v1525_v21 = vand.u32 65535, %v770_v53  ;;  %v771_v42 = vsel %vm639_vm0, %v3668_v59, 0 }
 0x210   :  { %v1056_v62 = vadd.s32 %v1055_v5, %v1053_v8  ;;  %v1066_v18 = vcvt.f32.s32 %v1064_v50  ;;  %v1074_v48 = vpop.xlane.xlu1 %1073  ;;  %v1515_v50 = vcvt.s32.f32 %v1513_v61  ;;  %v1537_v61 = vand.u32 65535, %v771_v42 }
 0x211   :  { %v1527_v52 = vcvt.s32.f32 %v1525_v21 }
 0x212   :  { %v2505_v56 = vrot.slane %v1056_v62, %v3588_v33  ;;  %v1067_v44 = vshll.u32 %v1066_v18, 16  ;;  %1495 = vadd.xlane.f32.xlu0 %v1492_v9  ;;  %v1077_v62 = vcvt.f32.s32 %v1074_v48  ;;  %v1526_v9 = vshrl.u32 %v770_v53, 16  ;;  %v4406_v53 = vld [vmem:[#allocation19_spill] sm:$0xff] }
 0x213   :  { %1505 = vadd.xlane.f32.xlu1 %v1503_v24  ;;  %v1076_v2 = vpop.xlane.xlu0 %1075  ;;  %v4405_v24 = vld [vmem:[#allocation18_spill] sm:$0xff]  ;;  %vm641_vm0 = vcmp.eq.s32.totalorder %v4406_v53, %v3343_v1 }
 0x214   :  { %v2506_v14 = vsel %vm4334_vm13, %v2505_v56, %v2501_v60  ;;  %v1068_v55 = vadd.s32 %v1067_v44, %v1065_v40  ;;  %v1078_v8 = vcvt.f32.s32 %v1076_v2  ;;  %v1086_v5 = vpop.xlane.xlu1 %1085  ;;  %vm640_vm8 = vcmp.eq.s32.totalorder %v4405_v24, %v3343_v1 }
 0x215   :  { %v1516_v44 = vcvt.s32.f32 %v1514_v30  ;;  %v772_v2 = vsel %vm640_vm8, %v3668_v59, 0  ;;  %v1539_v24 = vcvt.s32.f32 %v1537_v61 }
 0x216   :  { %v2510_v63 = vrot.slane %v1068_v55, %v3594_v37  ;;  %v1079_v18 = vshll.u32 %v1078_v8, 16  ;;  %1507 = vadd.xlane.f32.xlu0 %v1504_v0  ;;  %v1089_v55 = vcvt.f32.s32 %v1086_v5  ;;  %v1549_v21 = vand.u32 65535, %v772_v2 }
 0x217   :  { %1517 = vadd.xlane.f32.xlu1 %v1515_v50  ;;  %v1088_v38 = vpop.xlane.xlu0 %1087  ;;  %v1528_v50 = vcvt.s32.f32 %v1526_v9 }
 0x218   :  { %v2511_v34 = vsel %vm2405_vm15, %v2510_v63, %v2506_v14  ;;  %v1080_v40 = vadd.s32 %v1079_v18, %v1077_v62  ;;  %v1090_v60 = vcvt.f32.s32 %v1088_v38  ;;  %v1098_v56 = vpop.xlane.xlu1 %1097  ;;  %v1538_v14 = vshrl.u32 %v771_v42, 16 }
 0x219   :  { %v773_v38 = vsel %vm641_vm0, %v3668_v59, 0  ;;  %v1551_v53 = vcvt.s32.f32 %v1549_v21 }
 0x21a   :  { %v2515_v48 = vrot.slane %v1080_v40, %v3609_v58  ;;  %v1091_v0 = vshll.u32 %v1090_v60, 16  ;;  %1519 = vadd.xlane.f32.xlu0 %v1516_v44  ;;  %v1101_v40 = vcvt.f32.s32 %v1098_v56  ;;  %v1550_v44 = vshrl.u32 %v772_v2, 16  ;;  %v4408_v2 = vld [vmem:[#allocation21_spill] sm:$0xff] }
 0x21b   :  { %1529 = vadd.xlane.f32.xlu1 %v1527_v52  ;;  %v1100_v8 = vpop.xlane.xlu0 %1099  ;;  %v4407_v52 = vld [vmem:[#allocation20_spill] sm:$0xff]  ;;  %v1561_v61 = vand.u32 65535, %v773_v38  ;;  %vm643_vm0 = vcmp.eq.s32.totalorder %v4408_v2, %v3343_v1 }
 0x21c   :  { %v2516_v63 = vsel %vm2412_vm1, %v2515_v48, %v2511_v34  ;;  %v1092_v62 = vadd.s32 %v1091_v0, %v1089_v55  ;;  %v1102_v30 = vcvt.f32.s32 %v1100_v8  ;;  %v1110_v18 = vpop.xlane.xlu1 %1109  ;;  %vm642_vm8 = vcmp.eq.s32.totalorder %v4407_v52, %v3343_v1 }
 0x21d   :  { %v1540_v0 = vcvt.s32.f32 %v1538_v14  ;;  %v774_v8 = vsel %vm642_vm8, %v3668_v59, 0  ;;  %v1563_v52 = vcvt.s32.f32 %v1561_v61 }
 0x21e   :  { %v2520_v5 = vrot.slane %v1092_v62, %v3616_v16  ;;  %v1103_v60 = vshll.u32 %v1102_v30, 16  ;;  %1531 = vadd.xlane.f32.xlu0 %v1528_v50  ;;  %v1113_v62 = vcvt.f32.s32 %v1110_v18  ;;  %v1573_v21 = vand.u32 65535, %v774_v8 }
 0x21f   :  { %1541 = vadd.xlane.f32.xlu1 %v1539_v24  ;;  %v1112_v42 = vpop.xlane.xlu0 %1111  ;;  %v1552_v24 = vcvt.s32.f32 %v1550_v44 }
 0x220   :  { %v2521_v9 = vsel %vm2419_vm3, %v2520_v5, %v2516_v63  ;;  %v1104_v34 = vadd.s32 %v1103_v60, %v1101_v40  ;;  %v1114_v48 = vcvt.f32.s32 %v1112_v42  ;;  %v1122_v55 = vpop.xlane.xlu1 %1121  ;;  %v1562_v63 = vshrl.u32 %v773_v38, 16 }
 0x221   :  { %v775_v42 = vsel %vm643_vm0, %v3668_v59, 0  ;;  %v1575_v2 = vcvt.s32.f32 %v1573_v21 }
 0x222   :  { %v2525_v56 = vrot.slane %v1104_v34, %v3630_v20  ;;  %v1115_v50 = vshll.u32 %v1114_v48, 16  ;;  %1543 = vadd.xlane.f32.xlu0 %v1540_v0  ;;  %v1125_v34 = vcvt.f32.s32 %v1122_v55  ;;  %v1574_v0 = vshrl.u32 %v774_v8, 16  ;;  %v4410_v8 = vld [vmem:[#allocation23_spill] sm:$0xff] }
 0x223   :  { %1553 = vadd.xlane.f32.xlu1 %v1551_v53  ;;  %v1124_v30 = vpop.xlane.xlu0 %1123  ;;  %v4409_v53 = vld [vmem:[#allocation22_spill] sm:$0xff]  ;;  %v1585_v61 = vand.u32 65535, %v775_v42  ;;  %vm645_vm0 = vcmp.eq.s32.totalorder %v4410_v8, %v3343_v1 }
 0x224   :  { %v2526_v5 = vsel %vm2426_vm5, %v2525_v56, %v2521_v9  ;;  %v1116_v40 = vadd.s32 %v1115_v50, %v1113_v62  ;;  %v1126_v14 = vcvt.f32.s32 %v1124_v30  ;;  %v1134_v60 = vpop.xlane.xlu1 %1133  ;;  %vm644_vm8 = vcmp.eq.s32.totalorder %v4409_v53, %v3343_v1 }
 0x225   :  { %v1564_v50 = vcvt.s32.f32 %v1562_v63  ;;  %v776_v30 = vsel %vm644_vm8, %v3668_v59, 0  ;;  %v1587_v53 = vcvt.s32.f32 %v1585_v61 }
 0x226   :  { %v2530_v18 = vrot.slane %v1116_v40, %v3637_v41  ;;  %v1127_v48 = vshll.u32 %v1126_v14, 16  ;;  %1555 = vadd.xlane.f32.xlu0 %v1552_v24  ;;  %v1137_v40 = vcvt.f32.s32 %v1134_v60  ;;  %v1597_v21 = vand.u32 65535, %v776_v30 }
 0x227   :  { %1565 = vadd.xlane.f32.xlu1 %v1563_v52  ;;  %v1136_v38 = vpop.xlane.xlu0 %1135  ;;  %v1576_v52 = vcvt.s32.f32 %v1574_v0 }
 0x228   :  { %v2531_v44 = vsel %vm2433_vm7, %v2530_v18, %v2526_v5  ;;  %v1128_v9 = vadd.s32 %v1127_v48, %v1125_v34  ;;  %v1138_v56 = vcvt.f32.s32 %v1136_v38  ;;  %v1146_v62 = vpop.xlane.xlu1 %1145  ;;  %v1586_v5 = vshrl.u32 %v775_v42, 16 }
 0x229   :  { %v777_v38 = vsel %vm645_vm0, %v3668_v59, 0  ;;  %v1599_v8 = vcvt.s32.f32 %v1597_v21 }
 0x22a   :  { %v2535_v55 = vrot.slane %v1128_v9, %v3651_v47  ;;  %v1139_v24 = vshll.u32 %v1138_v56, 16  ;;  %1567 = vadd.xlane.f32.xlu0 %v1564_v50  ;;  %v1149_v9 = vcvt.f32.s32 %v1146_v62  ;;  %v1598_v50 = vshrl.u32 %v776_v30, 16  ;;  %v4412_v30 = vld [vmem:[#allocation25_spill] sm:$0xff] }
 0x22b   :  { %1577 = vadd.xlane.f32.xlu1 %v1575_v2  ;;  %v1148_v14 = vpop.xlane.xlu0 %1147  ;;  %v4411_v2 = vld [vmem:[#allocation24_spill] sm:$0xff]  ;;  %v1609_v61 = vand.u32 65535, %v777_v38  ;;  %vm647_vm0 = vcmp.eq.s32.totalorder %v4412_v30, %v3343_v1 }
 0x22c   :  { %v2536_v18 = vsel %vm2440_vm9, %v2535_v55, %v2531_v44  ;;  %v1140_v34 = vadd.s32 %v1139_v24, %v1137_v40  ;;  %v1150_v63 = vcvt.f32.s32 %v1148_v14  ;;  %v1158_v48 = vpop.xlane.xlu1 %1157  ;;  %vm646_vm8 = vcmp.eq.s32.totalorder %v4411_v2, %v3343_v1 }
 0x22d   :  { %v1588_v24 = vcvt.s32.f32 %v1586_v5  ;;  %v778_v14 = vsel %vm646_vm8, %v3668_v59, 0  ;;  %v1611_v2 = vcvt.s32.f32 %v1609_v61 }
 0x22e   :  { %v2540_v60 = vrot.slane %v1140_v34, %v3658_v45  ;;  %v1151_v56 = vshll.u32 %v1150_v63, 16  ;;  %1579 = vadd.xlane.f32.xlu0 %v1576_v52  ;;  %v1161_v34 = vcvt.f32.s32 %v1158_v48  ;;  %v1621_v21 = vand.u32 65535, %v778_v14 }
 0x22f   :  { %1589 = vadd.xlane.f32.xlu1 %v1587_v53  ;;  %v1160_v42 = vpop.xlane.xlu0 %1159  ;;  %v1600_v53 = vcvt.s32.f32 %v1598_v50 }
 0x230   :  { %v2541_v0 = vsel %vm2447_vm11, %v2540_v60, %v2536_v18  ;;  %v1152_v44 = vadd.s32 %v1151_v56, %v1149_v9  ;;  %v1162_v55 = vcvt.f32.s32 %v1160_v42  ;;  %v1170_v40 = vpop.xlane.xlu1 %1169  ;;  %v1610_v18 = vshrl.u32 %v777_v38, 16 }
 0x231   :  { %v779_v42 = vsel %vm647_vm0, %v3668_v59, 0  ;;  %v1623_v30 = vcvt.s32.f32 %v1621_v21 }
 0x232   :  { %v2545_v62 = vrot.slane %v1152_v44, %v3677_v4  ;;  %v1163_v52 = vshll.u32 %v1162_v55, 16  ;;  %1591 = vadd.xlane.f32.xlu0 %v1588_v24  ;;  %v1173_v44 = vcvt.f32.s32 %v1170_v40  ;;  %v1622_v24 = vshrl.u32 %v778_v14, 16  ;;  %v4414_v14 = vld [vmem:[#allocation27_spill] sm:$0xff] }
 0x233   :  { %1601 = vadd.xlane.f32.xlu1 %v1599_v8  ;;  %v1172_v63 = vpop.xlane.xlu0 %1171  ;;  %v4413_v8 = vld [vmem:[#allocation26_spill] sm:$0xff]  ;;  %v1633_v61 = vand.u32 65535, %v779_v42  ;;  %vm649_vm0 = vcmp.eq.s32.totalorder %v4414_v14, %v3343_v1 }
 0x234   :  { %v2546_v60 = vsel %vm2454_vm14, %v2545_v62, %v2541_v0  ;;  %v1164_v9 = vadd.s32 %v1163_v52, %v1161_v34  ;;  %v1174_v5 = vcvt.f32.s32 %v1172_v63  ;;  %v1182_v56 = vpop.xlane.xlu1 %1181  ;;  %vm648_vm8 = vcmp.eq.s32.totalorder %v4413_v8, %v3343_v1 }
 0x235   :  { %v1612_v52 = vcvt.s32.f32 %v1610_v18  ;;  %v780_v63 = vsel %vm648_vm8, %v3668_v59, 0  ;;  %v1635_v8 = vcvt.s32.f32 %v1633_v61 }
 0x236   :  { %v2550_v48 = vrot.slane %v1164_v9, %v3687_v49  ;;  %v1175_v55 = vshll.u32 %v1174_v5, 16  ;;  %1603 = vadd.xlane.f32.xlu0 %v1600_v53  ;;  %v1185_v9 = vcvt.f32.s32 %v1182_v56  ;;  %v1645_v21 = vand.u32 65535, %v780_v63 }
 0x237   :  { %1613 = vadd.xlane.f32.xlu1 %v1611_v2  ;;  %v1184_v38 = vpop.xlane.xlu0 %1183  ;;  %v1624_v2 = vcvt.s32.f32 %v1622_v24 }
 0x238   :  { %v2551_v50 = vsel %vm2461_vm2, %v2550_v48, %v2546_v60  ;;  %v1176_v0 = vadd.s32 %v1175_v55, %v1173_v44  ;;  %v1186_v62 = vcvt.f32.s32 %v1184_v38  ;;  %v1194_v34 = vpop.xlane.xlu1 %1193  ;;  %v1634_v60 = vshrl.u32 %v779_v42, 16 }
 0x239   :  { %v781_v38 = vsel %vm649_vm0, %v3668_v59, 0  ;;  %v1647_v14 = vcvt.s32.f32 %v1645_v21 }
 0x23a   :  { %v2555_v40 = vrot.slane %v1176_v0, %v3701_v51  ;;  %v1187_v53 = vshll.u32 %v1186_v62, 16  ;;  %1615 = vadd.xlane.f32.xlu0 %v1612_v52  ;;  %v1197_v0 = vcvt.f32.s32 %v1194_v34  ;;  %v1646_v52 = vshrl.u32 %v780_v63, 16  ;;  %v4416_v63 = vld [vmem:[#allocation29_spill] sm:$0xff] }
 0x23b   :  { %1625 = vadd.xlane.f32.xlu1 %v1623_v30  ;;  %v1196_v5 = vpop.xlane.xlu0 %1195  ;;  %v4415_v30 = vld [vmem:[#allocation28_spill] sm:$0xff]  ;;  %v1657_v61 = vand.u32 65535, %v781_v38  ;;  %vm651_vm0 = vcmp.eq.s32.totalorder %v4416_v63, %v3343_v1 }
 0x23c   :  { %v2556_v48 = vsel %vm2468_vm6, %v2555_v40, %v2551_v50  ;;  %v1188_v44 = vadd.s32 %v1187_v53, %v1185_v9  ;;  %v1198_v18 = vcvt.f32.s32 %v1196_v5  ;;  %v1206_v55 = vpop.xlane.xlu1 %1205  ;;  %vm650_vm8 = vcmp.eq.s32.totalorder %v4415_v30, %v3343_v1  ;;  %v4418_v30 = vld [vmem:[#allocation30_spill] sm:$0xff] }
 0x23d   :  { %v1636_v53 = vcvt.s32.f32 %v1634_v60  ;;  %v782_v5 = vsel %vm650_vm8, %v3668_v59, 0  ;;  %vm652_vm8 = vcmp.eq.s32.totalorder %v4418_v30, %v3343_v1 }
 0x23e   :  { %v2560_v56 = vrot.slane %v1188_v44, %v3708_v10  ;;  %v1199_v62 = vshll.u32 %v1198_v18, 16  ;;  %1627 = vadd.xlane.f32.xlu0 %v1624_v2  ;;  %v1209_v44 = vcvt.f32.s32 %v1206_v55  ;;  %v1669_v21 = vand.u32 65535, %v782_v5 }
 0x23f   :  { %1637 = vadd.xlane.f32.xlu1 %v1635_v8  ;;  %v1208_v42 = vpop.xlane.xlu0 %1207  ;;  %v1648_v8 = vcvt.s32.f32 %v1646_v52  ;;  %v783_v55 = vsel %vm651_vm0, %v3668_v59, 0 }
 0x240   :  { %v2561_v24 = vsel %vm4333_vm10, %v2560_v56, %v2556_v48  ;;  %v1200_v50 = vadd.s32 %v1199_v62, %v1197_v0  ;;  %v1210_v40 = vcvt.f32.s32 %v1208_v42  ;;  %v1218_v9 = vpop.xlane.xlu1 %1217  ;;  %v1658_v48 = vshrl.u32 %v781_v38, 16 }
 0x241   :  { %vm4417_vm10 = vcmask 917312   ;;  %v1659_v42 = vcvt.s32.f32 %v1657_v61  ;;  %v1681_v63 = vand.u32 65535, %v783_v55  ;;  %v784_v61 = vsel %vm652_vm8, %v3668_v59, 0 }
 0x242   :  { %v2565_v34 = vrot.slane %v1200_v50, %v3722_v46  ;;  %v1211_v2 = vshll.u32 %v1210_v40, 16  ;;  %1639 = vadd.xlane.f32.xlu0 %v1636_v53  ;;  %v1221_v40 = vcvt.f32.s32 %v1218_v9 }
 0x243   :  { %1649 = vadd.xlane.f32.xlu1 %v1647_v14  ;;  %v1220_v18 = vpop.xlane.xlu0 %1219  ;;  %v1670_v14 = vshrl.u32 %v782_v5, 16 }
 0x244   :  { %v2566_v56 = vsel %vm4417_vm10, %v2565_v34, %v2561_v24  ;;  %v1212_v0 = vadd.s32 %v1211_v2, %v1209_v44  ;;  %v1222_v60 = vcvt.f32.s32 %v1220_v18  ;;  %v1230_v62 = vpop.xlane.xlu1 %1229  ;;  %v1660_v2 = vcvt.s32.f32 %v1658_v48 }
 0x245   :  { %v1671_v18 = vcvt.s32.f32 %v1669_v21  ;;  %vm3051_vm10 = vcmask 1041409   ;;  %v1682_v48 = vshrl.u32 %v783_v55, 16 }
 0x246   :  { %v2570_v50 = vrot.slane %v1212_v0, %v3729_v3  ;;  %v1223_v53 = vshll.u32 %v1222_v60, 16  ;;  %1651 = vadd.xlane.f32.xlu0 %v1648_v8  ;;  %v1233_v8 = vcvt.f32.s32 %v1230_v62  ;;  %v4419_v0 = vld [vmem:[#allocation31_spill] sm:$0xff]  ;;  %v1672_v60 = vcvt.s32.f32 %v1670_v14 }
 0x247   :  { %1661 = vadd.xlane.f32.xlu1 %v1659_v42  ;;  %v1232_v38 = vpop.xlane.xlu0 %1231  ;;  %vm653_vm0 = vcmp.eq.s32.totalorder %v4419_v0, %v3343_v1  ;;  %v1694_v14 = vshrl.u32 %v784_v61, 16 }
 0x248   :  { %v2571_v52 = vsel %vm2489_vm4, %v2570_v50, %v2566_v56  ;;  %v1224_v24 = vadd.s32 %v1223_v53, %v1221_v40  ;;  %v1234_v34 = vcvt.f32.s32 %v1232_v38  ;;  %v1242_v44 = vpop.xlane.xlu1 %1241  ;;  %v1693_v53 = vand.u32 65535, %v784_v61 }
 0x249   :  { %v1683_v38 = vcvt.s32.f32 %v1681_v63  ;;  %v785_v62 = vsel %vm653_vm0, %v3668_v59, 0 }
 0x24a   :  { %v2575_v9 = vrot.slane %v1224_v24, %v3740_v43  ;;  %v1235_v5 = vshll.u32 %v1234_v34, 16  ;;  %1663 = vadd.xlane.f32.xlu0 %v1660_v2  ;;  %v4420_v24 = vld [vmem:[#allocation32_spill] sm:$0xff]  ;;  %v1245_v34 = vcvt.f32.s32 %v1242_v44  ;;  %v1695_v0 = vcvt.s32.f32 %v1693_v53  ;;  %v4421_v44 = vld [vmem:[#allocation33_spill] sm:$0xff] }
 0x24b   :  { %1673 = vadd.xlane.f32.xlu1 %v1671_v18  ;;  %v1244_v56 = vpop.xlane.xlu0 %1243  ;;  %vm654_vm8 = vcmp.eq.s32.totalorder %v4420_v24, %v3343_v1 }
 0x24c   :  { %v2576_v42 = vsel %vm2496_vm12, %v2575_v9, %v2571_v52  ;;  %v1236_v50 = vadd.s32 %v1235_v5, %v1233_v8  ;;  %v1246_v40 = vcvt.f32.s32 %v1244_v56  ;;  %v1254_v30 = vpop.xlane.xlu1 %1253  ;;  %v1684_v8 = vcvt.s32.f32 %v1682_v48 }
 0x24d   :  { %v3835_v21 = vsel %vm3051_vm10, %v2576_v42, %v3750_v7  ;;  %v1705_v5 = vand.u32 65535, %v785_v62  ;;  %v786_v7 = vsel %vm654_vm8, %v3668_v59, 0  ;;  %v1257_v42 = vcvt.f32.s32 %v1254_v30 }
 0x24e   :  { %v1247_v2 = vshll.u32 %v1246_v40, 16  ;;  %1675 = vadd.xlane.f32.xlu0 %v1672_v60  ;;  %v2580_v63 = vrot.slane %v1236_v50, %v3585_v27  ;;  %vm655_vm10 = vcmp.eq.s32.totalorder %v4421_v44, %v3343_v1  ;;  %v1696_v60 = vcvt.s32.f32 %v1694_v14 }
 0x24f   :  { %1685 = vadd.xlane.f32.xlu1 %v1683_v38  ;;  %v1256_v55 = vpop.xlane.xlu0 %1255  ;;  %v1706_v40 = vshrl.u32 %v785_v62, 16  ;;  %v1717_v53 = vand.u32 65535, %v786_v7  ;;  %v787_v50 = vsel %vm655_vm10, %v3668_v59, 0 }
 0x250   :  { %v1248_v52 = vadd.s32 %v1247_v2, %v1245_v34  ;;  %v1258_v18 = vcvt.f32.s32 %v1256_v55  ;;  %v1266_v9 = vpop.xlane.xlu1 %1265  ;;  %v1707_v55 = vcvt.s32.f32 %v1705_v5  ;;  %v1729_v5 = vand.u32 65535, %v787_v50 }
 0x251   :  { %v1719_v44 = vcvt.s32.f32 %v1717_v53 }
 0x252   :  { %v2584_v56 = vrot.slane %v1248_v52, %v3588_v33  ;;  %v1259_v24 = vshll.u32 %v1258_v18, 16  ;;  %1687 = vadd.xlane.f32.xlu0 %v1684_v8  ;;  %v1269_v52 = vcvt.f32.s32 %v1266_v9  ;;  %v1718_v8 = vshrl.u32 %v786_v7, 16  ;;  %v4423_v7 = vld [vmem:[#allocation35_spill] sm:$0xff] }
 0x253   :  { %1697 = vadd.xlane.f32.xlu1 %v1695_v0  ;;  %v1268_v61 = vpop.xlane.xlu0 %1267  ;;  %v4422_v0 = vld [vmem:[#allocation34_spill] sm:$0xff]  ;;  %vm657_vm8 = vcmp.eq.s32.totalorder %v4423_v7, %v3343_v1 }
 0x254   :  { %v2585_v48 = vsel %vm4334_vm13, %v2584_v56, %v2580_v63  ;;  %v1260_v38 = vadd.s32 %v1259_v24, %v1257_v42  ;;  %v1270_v34 = vcvt.f32.s32 %v1268_v61  ;;  %v1278_v2 = vpop.xlane.xlu1 %1277  ;;  %vm656_vm0 = vcmp.eq.s32.totalorder %v4422_v0, %v3343_v1 }
 0x255   :  { %v1708_v24 = vcvt.s32.f32 %v1706_v40  ;;  %v788_v61 = vsel %vm656_vm0, %v3668_v59, 0  ;;  %v1731_v0 = vcvt.s32.f32 %v1729_v5 }
 0x256   :  { %v2589_v30 = vrot.slane %v1260_v38, %v3594_v37  ;;  %v1271_v18 = vshll.u32 %v1270_v34, 16  ;;  %1699 = vadd.xlane.f32.xlu0 %v1696_v60  ;;  %v1281_v38 = vcvt.f32.s32 %v1278_v2  ;;  %v1741_v53 = vand.u32 65535, %v788_v61 }
 0x257   :  { %1709 = vadd.xlane.f32.xlu1 %v1707_v55  ;;  %v1280_v62 = vpop.xlane.xlu0 %1279  ;;  %v1720_v55 = vcvt.s32.f32 %v1718_v8 }
 0x258   :  { %v2590_v14 = vsel %vm2405_vm15, %v2589_v30, %v2585_v48  ;;  %v1272_v63 = vadd.s32 %v1271_v18, %v1269_v52  ;;  %v1282_v56 = vcvt.f32.s32 %v1280_v62  ;;  %v1290_v42 = vpop.xlane.xlu1 %1289  ;;  %v1730_v48 = vshrl.u32 %v787_v50, 16 }
 0x259   :  { %v789_v62 = vsel %vm657_vm8, %v3668_v59, 0  ;;  %v1743_v7 = vcvt.s32.f32 %v1741_v53 }
 0x25a   :  { %v2594_v9 = vrot.slane %v1272_v63, %v3609_v58  ;;  %v1283_v60 = vshll.u32 %v1282_v56, 16  ;;  %1711 = vadd.xlane.f32.xlu0 %v1708_v24  ;;  %v1293_v63 = vcvt.f32.s32 %v1290_v42  ;;  %v1742_v24 = vshrl.u32 %v788_v61, 16  ;;  %v4425_v61 = vld [vmem:[#allocation37_spill] sm:$0xff] }
 0x25b   :  { %1721 = vadd.xlane.f32.xlu1 %v1719_v44  ;;  %v1292_v34 = vpop.xlane.xlu0 %1291  ;;  %v4424_v44 = vld [vmem:[#allocation36_spill] sm:$0xff]  ;;  %v1753_v5 = vand.u32 65535, %v789_v62  ;;  %vm659_vm0 = vcmp.eq.s32.totalorder %v4425_v61, %v3343_v1 }
 0x25c   :  { %v2595_v30 = vsel %vm2412_vm1, %v2594_v9, %v2590_v14  ;;  %v1284_v52 = vadd.s32 %v1283_v60, %v1281_v38  ;;  %v1294_v40 = vcvt.f32.s32 %v1292_v34  ;;  %v1302_v18 = vpop.xlane.xlu1 %1301  ;;  %vm658_vm10 = vcmp.eq.s32.totalorder %v4424_v44, %v3343_v1 }
 0x25d   :  { %v1732_v60 = vcvt.s32.f32 %v1730_v48  ;;  %v790_v34 = vsel %vm658_vm10, %v3668_v59, 0  ;;  %v1755_v44 = vcvt.s32.f32 %v1753_v5 }
 0x25e   :  { %v2599_v2 = vrot.slane %v1284_v52, %v3616_v16  ;;  %v1295_v56 = vshll.u32 %v1294_v40, 16  ;;  %1723 = vadd.xlane.f32.xlu0 %v1720_v55  ;;  %v1305_v52 = vcvt.f32.s32 %v1302_v18  ;;  %v1765_v53 = vand.u32 65535, %v790_v34 }
 0x25f   :  { %1733 = vadd.xlane.f32.xlu1 %v1731_v0  ;;  %v1304_v50 = vpop.xlane.xlu0 %1303  ;;  %v1744_v0 = vcvt.s32.f32 %v1742_v24 }
 0x260   :  { %v2600_v8 = vsel %vm2419_vm3, %v2599_v2, %v2595_v30  ;;  %v1296_v14 = vadd.s32 %v1295_v56, %v1293_v63  ;;  %v1306_v9 = vcvt.f32.s32 %v1304_v50  ;;  %v1314_v38 = vpop.xlane.xlu1 %1313  ;;  %v1754_v30 = vshrl.u32 %v789_v62, 16 }
 0x261   :  { %v791_v50 = vsel %vm659_vm0, %v3668_v59, 0  ;;  %v1767_v61 = vcvt.s32.f32 %v1765_v53  ;;  %v3874_v59 = vld [vmem:[%s4320_s3] ss:$0 sm:$0xff]  ;;  %vm662_vm0 = vcmp.eq.s32.totalorder %v3374_v15, %v3343_v1 }
 0x262   :  { %v2604_v42 = vrot.slane %v1296_v14, %v3630_v20  ;;  %v1307_v55 = vshll.u32 %v1306_v9, 16  ;;  %1735 = vadd.xlane.f32.xlu0 %v1732_v60  ;;  %v1317_v14 = vcvt.f32.s32 %v1314_v38  ;;  %v1766_v60 = vshrl.u32 %v790_v34, 16 }
 0x263   :  { %1745 = vadd.xlane.f32.xlu1 %v1743_v7  ;;  %v1316_v40 = vpop.xlane.xlu0 %1315  ;;  %v4426_v7 = vld [vmem:[#allocation38_spill] sm:$0xff]  ;;  %v1777_v5 = vand.u32 65535, %v791_v50 }
 0x264   :  { %v2605_v2 = vsel %vm2426_vm5, %v2604_v42, %v2600_v8  ;;  %v1308_v63 = vadd.s32 %v1307_v55, %v1305_v52  ;;  %v1318_v48 = vcvt.f32.s32 %v1316_v40  ;;  %v1326_v56 = vpop.xlane.xlu1 %1325  ;;  %vm660_vm8 = vcmp.eq.s32.totalorder %v4426_v7, %v3343_v1 }
 0x265   :  { %v1756_v55 = vcvt.s32.f32 %v1754_v30  ;;  %v792_v38 = vsel %vm660_vm8, %v3874_v59, 0  ;;  %v1329_v40 = vcvt.f32.s32 %v1326_v56  ;;  %v1768_v30 = vcvt.s32.f32 %v1766_v60 }
 0x266   :  { %v2609_v18 = vrot.slane %v1308_v63, %v3637_v41  ;;  %v1319_v9 = vshll.u32 %v1318_v48, 16  ;;  %1747 = vadd.xlane.f32.xlu0 %v1744_v0  ;;  %v1778_v48 = vshrl.u32 %v791_v50, 16  ;;  %v1779_v7 = vcvt.s32.f32 %v1777_v5 }
 0x267   :  { %1757 = vadd.xlane.f32.xlu1 %v1755_v44  ;;  %v1328_v62 = vpop.xlane.xlu0 %1327 }
 0x268   :  { %v2610_v24 = vsel %vm2433_vm7, %v2609_v18, %v2605_v2  ;;  %v1320_v8 = vadd.s32 %v1319_v9, %v1317_v14  ;;  %v1330_v42 = vcvt.f32.s32 %v1328_v62  ;;  %v1338_v52 = vpop.xlane.xlu1 %1337  ;;  %v4427_v2 = vld [vmem:[#allocation39_spill] sm:$0xff]  ;;  %v1789_v9 = vand.u32 65535, %v792_v38 }
 0x269   :  { %vm661_vm10 = vcmp.eq.s32.totalorder %v4427_v2, %v3343_v1  ;;  %v794_v2 = vsel %vm662_vm0, %v3874_v59, 0  ;;  %vm665_vm0 = vcmp.eq.s32.totalorder %v3385_v19, %v3343_v1 }
 0x26a   :  { %v2614_v34 = vrot.slane %v1320_v8, %v3651_v47  ;;  %v1331_v0 = vshll.u32 %v1330_v42, 16  ;;  %1759 = vadd.xlane.f32.xlu0 %v1756_v55  ;;  %v793_v62 = vsel %vm661_vm10, %v3874_v59, 0  ;;  %v1341_v8 = vcvt.f32.s32 %v1338_v52 }
 0x26b   :  { %1769 = vadd.xlane.f32.xlu1 %v1767_v61  ;;  %v1340_v63 = vpop.xlane.xlu0 %1339  ;;  %v1790_v55 = vshrl.u32 %v792_v38, 16  ;;  %v1801_v5 = vand.u32 65535, %v793_v62  ;;  %v4428_v38 = vld [vmem:[#allocation40_spill] sm:$0xff]  ;;  %vm664_vm10 = vcmp.eq.s32.totalorder %v3383_v6, %v3343_v1 }
 0x26c   :  { %v2615_v53 = vsel %vm2440_vm9, %v2614_v34, %v2610_v24  ;;  %v1332_v44 = vadd.s32 %v1331_v0, %v1329_v40  ;;  %v1342_v18 = vcvt.f32.s32 %v1340_v63  ;;  %v1350_v14 = vpop.xlane.xlu1 %1349  ;;  %v1780_v40 = vcvt.s32.f32 %v1778_v48 }
 0x26d   :  { %v1791_v0 = vcvt.s32.f32 %v1789_v9  ;;  %v1353_v63 = vcvt.f32.s32 %v1350_v14  ;;  %vm663_vm8 = vcmp.eq.s32.totalorder %v4428_v38, %v3343_v1  ;;  %v1813_v9 = vand.u32 65535, %v794_v2 }
 0x26e   :  { %v2619_v56 = vrot.slane %v1332_v44, %v3658_v45  ;;  %v1343_v42 = vshll.u32 %v1342_v18, 16  ;;  %1771 = vadd.xlane.f32.xlu0 %v1768_v30  ;;  %v1792_v44 = vcvt.s32.f32 %v1790_v55 }
 0x26f   :  { %1781 = vadd.xlane.f32.xlu1 %v1779_v7  ;;  %v1352_v50 = vpop.xlane.xlu0 %1351 }
 0x270   :  { %v2620_v60 = vsel %vm2447_vm11, %v2619_v56, %v2615_v53  ;;  %v1344_v24 = vadd.s32 %v1343_v42, %v1341_v8  ;;  %v1354_v61 = vcvt.f32.s32 %v1352_v50  ;;  %v1362_v34 = vpop.xlane.xlu1 %1361  ;;  %v1802_v53 = vshrl.u32 %v793_v62, 16 }
 0x271   :  { %v1803_v8 = vcvt.s32.f32 %v1801_v5  ;;  %v795_v42 = vsel %vm663_vm8, %v3874_v59, 0  ;;  %v1365_v50 = vcvt.f32.s32 %v1362_v34  ;;  %vm666_vm8 = vcmp.eq.s32.totalorder %v3391_v11, %v3343_v1 }
 0x272   :  { %v2624_v52 = vrot.slane %v1344_v24, %v3677_v4  ;;  %v1355_v30 = vshll.u32 %v1354_v61, 16  ;;  %1783 = vadd.xlane.f32.xlu0 %v1780_v40  ;;  %v1814_v61 = vshrl.u32 %v794_v2, 16  ;;  %v1825_v5 = vand.u32 65535, %v795_v42 }
 0x273   :  { %1793 = vadd.xlane.f32.xlu1 %v1791_v0  ;;  %v1364_v15 = vpop.xlane.xlu0 %1363 }
 0x274   :  { %v2625_v18 = vsel %vm2454_vm14, %v2624_v52, %v2620_v60  ;;  %v1356_v7 = vadd.s32 %v1355_v30, %v1353_v63  ;;  %v1366_v48 = vcvt.f32.s32 %v1364_v15  ;;  %v1374_v56 = vpop.xlane.xlu1 %1373  ;;  %v1804_v52 = vcvt.s32.f32 %v1802_v53 }
 0x275   :  { %v1815_v63 = vcvt.s32.f32 %v1813_v9  ;;  %v796_v30 = vsel %vm664_vm10, %v3874_v59, 0  ;;  %v1377_v38 = vcvt.f32.s32 %v1374_v56  ;;  %v1816_v2 = vcvt.s32.f32 %v1814_v61 }
 0x276   :  { %v2629_v14 = vrot.slane %v1356_v7, %v3687_v49  ;;  %v1367_v24 = vshll.u32 %v1366_v48, 16  ;;  %1795 = vadd.xlane.f32.xlu0 %v1792_v44  ;;  %v1826_v44 = vshrl.u32 %v795_v42, 16  ;;  %v1837_v9 = vand.u32 65535, %v796_v30 }
 0x277   :  { %1805 = vadd.xlane.f32.xlu1 %v1803_v8  ;;  %v1376_v62 = vpop.xlane.xlu0 %1375  ;;  %v1827_v8 = vcvt.s32.f32 %v1825_v5  ;;  %vm4429_vm10 = vcmask 851712  }
 0x278   :  { %v2630_v55 = vsel %vm2461_vm2, %v2629_v14, %v2625_v18  ;;  %v1368_v60 = vadd.s32 %v1367_v24, %v1365_v50  ;;  %v1378_v40 = vcvt.f32.s32 %v1376_v62  ;;  %v1386_v0 = vpop.xlane.xlu1 %1385  ;;  %v797_v14 = vsel %vm665_vm0, %v3874_v59, 0 }
 0x279   :  { %v1389_v50 = vcvt.f32.s32 %v1386_v0  ;;  %v1838_v62 = vshrl.u32 %v796_v30, 16  ;;  %v1839_v5 = vcvt.s32.f32 %v1837_v9  ;;  %v4430_v30 = vld [vmem:[#allocation41_spill] sm:$0xff] }
 0x27a   :  { %v2634_v34 = vrot.slane %v1368_v60, %v3701_v51  ;;  %v1379_v15 = vshll.u32 %v1378_v40, 16  ;;  %1807 = vadd.xlane.f32.xlu0 %v1804_v52  ;;  %v1828_v40 = vcvt.s32.f32 %v1826_v44  ;;  %v1849_v52 = vand.u32 65535, %v797_v14 }
 0x27b   :  { %1817 = vadd.xlane.f32.xlu1 %v1815_v63  ;;  %v1388_v6 = vpop.xlane.xlu0 %1387  ;;  %v798_v63 = vsel %vm666_vm8, %v3874_v59, 0  ;;  %vm667_vm0 = vcmp.eq.s32.totalorder %v4430_v30, %v3343_v1  ;;  %vm668_vm8 = vcmp.eq.s32.totalorder %v3400_v39, %v3343_v1 }
 0x27c   :  { %v2635_v18 = vsel %vm2468_vm6, %v2634_v34, %v2630_v55  ;;  %v1380_v7 = vadd.s32 %v1379_v15, %v1377_v38  ;;  %v1390_v53 = vcvt.f32.s32 %v1388_v6  ;;  %v1398_v48 = vpop.xlane.xlu1 %1397  ;;  %v1840_v15 = vcvt.s32.f32 %v1838_v62 }
 0x27d   :  { %v1401_v34 = vcvt.f32.s32 %v1398_v48  ;;  %v1850_v6 = vshrl.u32 %v797_v14, 16  ;;  %v1851_v9 = vcvt.s32.f32 %v1849_v52  ;;  %v799_v48 = vsel %vm667_vm0, %v3874_v59, 0 }
 0x27e   :  { %v2639_v56 = vrot.slane %v1380_v7, %v3708_v10  ;;  %v1391_v24 = vshll.u32 %v1390_v53, 16  ;;  %1819 = vadd.xlane.f32.xlu0 %v1816_v2  ;;  %v1861_v53 = vand.u32 65535, %v798_v63  ;;  %v800_v52 = vsel %vm668_vm8, %v3874_v59, 0 }
 0x27f   :  { %1829 = vadd.xlane.f32.xlu1 %v1827_v8  ;;  %v1400_v19 = vpop.xlane.xlu0 %1399  ;;  %vm3053_vm0 = vcmask 1042434   ;;  %v1874_v30 = vshrl.u32 %v799_v48, 16  ;;  %vm670_vm8 = vcmp.eq.s32.totalorder %v3408_v36, %v3343_v1 }
 0x280   :  { %v2640_v42 = vsel %vm4429_vm10, %v2639_v56, %v2635_v18  ;;  %v1392_v61 = vadd.s32 %v1391_v24, %v1389_v50  ;;  %v1402_v55 = vcvt.f32.s32 %v1400_v19  ;;  %v1410_v60 = vpop.xlane.xlu1 %1409  ;;  %vm4431_vm10 = vcmask 917312  }
 0x281   :  { %v1413_v56 = vcvt.f32.s32 %v1410_v60  ;;  %v1862_v24 = vshrl.u32 %v798_v63, 16 }
 0x282   :  { %v2644_v0 = vrot.slane %v1392_v61, %v3722_v46  ;;  %v1403_v38 = vshll.u32 %v1402_v55, 16  ;;  %1831 = vadd.xlane.f32.xlu0 %v1828_v40  ;;  %v1852_v55 = vcvt.s32.f32 %v1850_v6  ;;  %v1873_v40 = vand.u32 65535, %v799_v48 }
 0x283   :  { %1841 = vadd.xlane.f32.xlu1 %v1839_v5  ;;  %v1412_v11 = vpop.xlane.xlu0 %1411  ;;  %v1863_v5 = vcvt.s32.f32 %v1861_v53 }
 0x284   :  { %v2645_v2 = vsel %vm4431_vm10, %v2644_v0, %v2640_v42  ;;  %v1404_v18 = vadd.s32 %v1403_v38, %v1401_v34  ;;  %v1414_v44 = vcvt.f32.s32 %v1412_v11  ;;  %v1422_v7 = vpop.xlane.xlu1 %1421  ;;  %vm669_vm10 = vcmp.eq.s32.totalorder %v3402_v23, %v3343_v1 }
 0x285   :  { %v1425_v0 = vcvt.f32.s32 %v1422_v7  ;;  %v1864_v38 = vcvt.s32.f32 %v1862_v24  ;;  %v801_v7 = vsel %vm669_vm10, %v3874_v59, 0  ;;  %v1876_v24 = vcvt.s32.f32 %v1874_v30 }
 0x286   :  { %v2649_v8 = vrot.slane %v1404_v18, %v3729_v3  ;;  %v1415_v50 = vshll.u32 %v1414_v44, 16  ;;  %1843 = vadd.xlane.f32.xlu0 %v1840_v15  ;;  %v1875_v44 = vcvt.s32.f32 %v1873_v40  ;;  %vm672_vm10 = vcmp.eq.s32.totalorder %v3417_v17, %v3343_v1 }
 0x287   :  { %1853 = vadd.xlane.f32.xlu1 %v1851_v9  ;;  %v1424_v14 = vpop.xlane.xlu0 %1423  ;;  %v1886_v9 = vshrl.u32 %v800_v52, 16 }
 0x288   :  { %v2650_v62 = vsel %vm2489_vm4, %v2649_v8, %v2645_v2  ;;  %v1416_v19 = vadd.s32 %v1415_v50, %v1413_v56  ;;  %v1426_v42 = vcvt.f32.s32 %v1424_v14  ;;  %v1434_v61 = vpop.xlane.xlu1 %1433  ;;  %v1885_v2 = vand.u32 65535, %v800_v52 }
 0x289   :  { %v1437_v23 = vcvt.f32.s32 %v1434_v61  ;;  %v1897_v14 = vand.u32 65535, %v801_v7  ;;  %v4432_v61 = vld [vmem:[#allocation42_spill] sm:$0xff]  ;;  %v1888_v52 = vcvt.s32.f32 %v1886_v9 }
 0x28a   :  { %v2654_v60 = vrot.slane %v1416_v19, %v3740_v43  ;;  %v1427_v63 = vshll.u32 %v1426_v42, 16  ;;  %1855 = vadd.xlane.f32.xlu0 %v1852_v55 }
 0x28b   :  { %1865 = vadd.xlane.f32.xlu1 %v1863_v5  ;;  %v1436_v34 = vpop.xlane.xlu0 %1435  ;;  %v1898_v5 = vshrl.u32 %v801_v7, 16  ;;  %v1899_v30 = vcvt.s32.f32 %v1897_v14 }
 0x28c   :  { %v2655_v11 = vsel %vm2496_vm12, %v2654_v60, %v2650_v62  ;;  %v1428_v15 = vadd.s32 %v1427_v63, %v1425_v0  ;;  %v1438_v6 = vcvt.f32.s32 %v1436_v34  ;;  %v1446_v39 = vpop.xlane.xlu1 %1445  ;;  %v1887_v62 = vcvt.s32.f32 %v1885_v2 }
 0x28d   :  { %v3925_v18 = vsel %vm3053_vm0, %v2655_v11, %v3835_v21  ;;  %v802_v21 = vsel %vm670_vm8, %v3874_v59, 0  ;;  %v1449_v55 = vcvt.f32.s32 %v1446_v39  ;;  %vm671_vm0 = vcmp.eq.s32.totalorder %v4432_v61, %v3343_v1 }
 0x28e   :  { %v1439_v53 = vshll.u32 %v1438_v6, 16  ;;  %1867 = vadd.xlane.f32.xlu0 %v1864_v38  ;;  %v2659_v19 = vrot.slane %v1428_v15, %v3585_v27  ;;  %v1909_v38 = vand.u32 65535, %v802_v21  ;;  %v803_v11 = vsel %vm671_vm0, %v3874_v59, 0 }
 0x28f   :  { %1877 = vadd.xlane.f32.xlu1 %v1875_v44  ;;  %v1448_v48 = vpop.xlane.xlu0 %1447  ;;  %v1910_v2 = vshrl.u32 %v802_v21, 16  ;;  %vm673_vm8 = vcmp.eq.s32.totalorder %v3419_v26, %v3343_v1  ;;  %vm674_vm0 = vcmp.eq.s32.totalorder %v3425_v22, %v3343_v1 }
 0x290   :  { %v1440_v8 = vadd.s32 %v1439_v53, %v1437_v23  ;;  %v1450_v56 = vcvt.f32.s32 %v1448_v48  ;;  %v1458_v50 = vpop.xlane.xlu1 %1457  ;;  %v1900_v48 = vcvt.s32.f32 %v1898_v5  ;;  %v805_v5 = vsel %vm673_vm8, %v3874_v59, 0 }
 0x291   :  { %v1461_v6 = vcvt.f32.s32 %v1458_v50  ;;  %v1912_v21 = vcvt.s32.f32 %v1910_v2  ;;  %vm676_vm8 = vcmp.eq.s32.totalorder %v3434_v13, %v3343_v1 }
 0x292   :  { %v2663_v42 = vrot.slane %v1440_v8, %v3588_v33  ;;  %v1451_v36 = vshll.u32 %v1450_v56, 16  ;;  %1879 = vadd.xlane.f32.xlu0 %v1876_v24  ;;  %v1921_v8 = vand.u32 65535, %v803_v11  ;;  %v1911_v56 = vcvt.s32.f32 %v1909_v38 }
 0x293   :  { %1889 = vadd.xlane.f32.xlu1 %v1887_v62  ;;  %v1460_v40 = vpop.xlane.xlu0 %1459  ;;  %v804_v24 = vsel %vm672_vm10, %v3874_v59, 0 }
 0x294   :  { %v2664_v60 = vsel %vm4334_vm13, %v2663_v42, %v2659_v19  ;;  %v1452_v0 = vadd.s32 %v1451_v36, %v1449_v55  ;;  %v1462_v63 = vcvt.f32.s32 %v1460_v40  ;;  %v1470_v34 = vpop.xlane.xlu1 %1469  ;;  %v1922_v19 = vshrl.u32 %v803_v11, 16 }
 0x295   :  { %v1473_v14 = vcvt.f32.s32 %v1470_v34  ;;  %v1933_v40 = vand.u32 65535, %v804_v24  ;;  %v1934_v34 = vshrl.u32 %v804_v24, 16 }
 0x296   :  { %v2668_v15 = vrot.slane %v1452_v0, %v3594_v37  ;;  %v1463_v39 = vshll.u32 %v1462_v63, 16  ;;  %1891 = vadd.xlane.f32.xlu0 %v1888_v52  ;;  %v1923_v52 = vcvt.s32.f32 %v1921_v8  ;;  %v1946_v8 = vshrl.u32 %v805_v5, 16 }
 0x297   :  { %1901 = vadd.xlane.f32.xlu1 %v1899_v30  ;;  %v1472_v44 = vpop.xlane.xlu0 %1471  ;;  %v1935_v2 = vcvt.s32.f32 %v1933_v40 }
 0x298   :  { %v2669_v7 = vsel %vm2405_vm15, %v2668_v15, %v2664_v60  ;;  %v1464_v23 = vadd.s32 %v1463_v39, %v1461_v6  ;;  %v1474_v53 = vcvt.f32.s32 %v1472_v44  ;;  %v1482_v9 = vpop.xlane.xlu1 %1481  ;;  %v1924_v6 = vcvt.s32.f32 %v1922_v19 }
 0x299   :  { %v1485_v0 = vcvt.f32.s32 %v1482_v9  ;;  %v1945_v39 = vand.u32 65535, %v805_v5  ;;  %v806_v44 = vsel %vm674_vm0, %v3874_v59, 0  ;;  %v4433_v9 = vld [vmem:[#allocation43_spill] sm:$0xff]  ;;  %vm677_vm0 = vcmp.eq.s32.totalorder %v3436_v29, %v3343_v1 }
 0x29a   :  { %v2673_v50 = vrot.slane %v1464_v23, %v3609_v58  ;;  %v1475_v62 = vshll.u32 %v1474_v53, 16  ;;  %1903 = vadd.xlane.f32.xlu0 %v1900_v48  ;;  %vm675_vm10 = vcmp.eq.s32.totalorder %v4433_v9, %v3343_v1  ;;  %v1936_v48 = vcvt.s32.f32 %v1934_v34 }
 0x29b   :  { %1913 = vadd.xlane.f32.xlu1 %v1911_v56  ;;  %v1484_v17 = vpop.xlane.xlu0 %1483  ;;  %v809_v9 = vsel %vm677_vm0, %v3874_v59, 0  ;;  %vm680_vm0 = vcmp.eq.s32.totalorder %v3451_v57, %v3343_v1 }
 0x29c   :  { %v2674_v42 = vsel %vm2412_vm1, %v2673_v50, %v2669_v7  ;;  %v1476_v55 = vadd.s32 %v1475_v62, %v1473_v14  ;;  %v1486_v36 = vcvt.f32.s32 %v1484_v17  ;;  %v1494_v61 = vpop.xlane.xlu1 %1493  ;;  %v1957_v62 = vand.u32 65535, %v806_v44 }
 0x29d   :  { %v1497_v23 = vcvt.f32.s32 %v1494_v61  ;;  %v1947_v17 = vcvt.s32.f32 %v1945_v39 }
 0x29e   :  { %v2678_v60 = vrot.slane %v1476_v55, %v3616_v16  ;;  %v1487_v63 = vshll.u32 %v1486_v36, 16  ;;  %1915 = vadd.xlane.f32.xlu0 %v1912_v21  ;;  %v807_v21 = vsel %vm675_vm10, %v3874_v59, 0  ;;  %v1958_v36 = vshrl.u32 %v806_v44, 16 }
 0x29f   :  { %1925 = vadd.xlane.f32.xlu1 %v1923_v52  ;;  %v1496_v26 = vpop.xlane.xlu0 %1495  ;;  %v1959_v34 = vcvt.s32.f32 %v1957_v62  ;;  %vm678_vm10 = vcmp.eq.s32.totalorder %v3442_v25, %v3343_v1  ;;  %v4434_v25 = vld [vmem:[#allocation44_spill] sm:$0xff] }
 0x2a0   :  { %v2679_v38 = vsel %vm2419_vm3, %v2678_v60, %v2674_v42  ;;  %v1488_v30 = vadd.s32 %v1487_v63, %v1485_v0  ;;  %v1498_v11 = vcvt.f32.s32 %v1496_v26  ;;  %v1506_v15 = vpop.xlane.xlu1 %1505  ;;  %v1948_v0 = vcvt.s32.f32 %v1946_v8 }
 0x2a1   :  { %v1509_v42 = vcvt.f32.s32 %v1506_v15  ;;  %v1969_v63 = vand.u32 65535, %v807_v21  ;;  %v808_v26 = vsel %vm676_vm8, %v3874_v59, 0  ;;  %v1960_v15 = vcvt.s32.f32 %v1958_v36 }
 0x2a2   :  { %v2683_v7 = vrot.slane %v1488_v30, %v3630_v20  ;;  %v1499_v53 = vshll.u32 %v1498_v11, 16  ;;  %1927 = vadd.xlane.f32.xlu0 %v1924_v6  ;;  %v1970_v6 = vshrl.u32 %v807_v21, 16  ;;  %v1993_v21 = vand.u32 65535, %v809_v9 }
 0x2a3   :  { %1937 = vadd.xlane.f32.xlu1 %v1935_v2  ;;  %v1508_v22 = vpop.xlane.xlu0 %1507  ;;  %vm679_vm8 = vcmp.eq.s32.totalorder %v4434_v25, %v3343_v1 }
 0x2a4   :  { %v2684_v56 = vsel %vm2426_vm5, %v2683_v7, %v2679_v38  ;;  %v1500_v24 = vadd.s32 %v1499_v53, %v1497_v23  ;;  %v1510_v50 = vcvt.f32.s32 %v1508_v22  ;;  %v1518_v14 = vpop.xlane.xlu1 %1517  ;;  %v1981_v23 = vand.u32 65535, %v808_v26 }
 0x2a5   :  { %v1521_v30 = vcvt.f32.s32 %v1518_v14  ;;  %v1971_v53 = vcvt.s32.f32 %v1969_v63 }
 0x2a6   :  { %v2688_v19 = vrot.slane %v1500_v24, %v3637_v41  ;;  %v1511_v55 = vshll.u32 %v1510_v50, 16  ;;  %1939 = vadd.xlane.f32.xlu0 %v1936_v48 }
 0x2a7   :  { %1949 = vadd.xlane.f32.xlu1 %v1947_v17  ;;  %v1520_v61 = vpop.xlane.xlu0 %1519  ;;  %v1972_v17 = vcvt.s32.f32 %v1970_v6 }
 0x2a8   :  { %v2689_v40 = vsel %vm2433_vm7, %v2688_v19, %v2684_v56  ;;  %v1512_v52 = vadd.s32 %v1511_v55, %v1509_v42  ;;  %v1522_v5 = vcvt.f32.s32 %v1520_v61  ;;  %v1530_v60 = vpop.xlane.xlu1 %1529  ;;  %v1982_v56 = vshrl.u32 %v808_v26, 16 }
 0x2a9   :  { %v1533_v48 = vcvt.f32.s32 %v1530_v60  ;;  %v1983_v19 = vcvt.s32.f32 %v1981_v23  ;;  %v810_v42 = vsel %vm678_vm10, %v3874_v59, 0  ;;  %vm681_vm10 = vcmp.eq.s32.totalorder %v3453_v32, %v3343_v1 }
 0x2aa   :  { %v2693_v38 = vrot.slane %v1512_v52, %v3651_v47  ;;  %v1523_v11 = vshll.u32 %v1522_v5, 16  ;;  %1951 = vadd.xlane.f32.xlu0 %v1948_v0  ;;  %v2005_v26 = vand.u32 65535, %v810_v42  ;;  %v2006_v6 = vshrl.u32 %v810_v42, 16 }
 0x2ab   :  { %1961 = vadd.xlane.f32.xlu1 %v1959_v34  ;;  %v1532_v13 = vpop.xlane.xlu0 %1531  ;;  %v1984_v34 = vcvt.s32.f32 %v1982_v56 }
 0x2ac   :  { %v2694_v39 = vsel %vm2440_vm9, %v2693_v38, %v2689_v40  ;;  %v1524_v2 = vadd.s32 %v1523_v11, %v1521_v30  ;;  %v1534_v44 = vcvt.f32.s32 %v1532_v13  ;;  %v1542_v7 = vpop.xlane.xlu1 %1541  ;;  %v1994_v40 = vshrl.u32 %v809_v9, 16 }
 0x2ad   :  { %v1545_v36 = vcvt.f32.s32 %v1542_v7  ;;  %v1995_v38 = vcvt.s32.f32 %v1993_v21  ;;  %v811_v30 = vsel %vm679_vm8, %v3874_v59, 0  ;;  %v2008_v21 = vcvt.s32.f32 %v2006_v6 }
 0x2ae   :  { %v2698_v22 = vrot.slane %v1524_v2, %v3658_v45  ;;  %v1535_v8 = vshll.u32 %v1534_v44, 16  ;;  %1963 = vadd.xlane.f32.xlu0 %v1960_v15  ;;  %v2017_v9 = vand.u32 65535, %v811_v30  ;;  %vm682_vm8 = vcmp.eq.s32.totalorder %v3459_v28, %v3343_v1  ;;  %v4436_v28 = vld [vmem:[#allocation45_spill] sm:$0xff] }
 0x2af   :  { %1973 = vadd.xlane.f32.xlu1 %v1971_v53  ;;  %v1544_v29 = vpop.xlane.xlu0 %1543  ;;  %v1996_v53 = vcvt.s32.f32 %v1994_v40 }
 0x2b0   :  { %v2699_v24 = vsel %vm2447_vm11, %v2698_v22, %v2694_v39  ;;  %v1536_v50 = vadd.s32 %v1535_v8, %v1533_v48  ;;  %v1546_v14 = vcvt.f32.s32 %v1544_v29  ;;  %v1554_v62 = vpop.xlane.xlu1 %1553  ;;  %v2007_v22 = vcvt.s32.f32 %v2005_v26 }
 0x2b1   :  { %v1557_v13 = vcvt.f32.s32 %v1554_v62  ;;  %v812_v48 = vsel %vm680_vm0, %v3874_v59, 0  ;;  %v2019_v42 = vcvt.s32.f32 %v2017_v9  ;;  %vm4435_vm0 = vcmask 851712  }
 0x2b2   :  { %v2703_v55 = vrot.slane %v1536_v50, %v3677_v4  ;;  %v1547_v61 = vshll.u32 %v1546_v14, 16  ;;  %1975 = vadd.xlane.f32.xlu0 %v1972_v17  ;;  %v2030_v25 = vshrl.u32 %v812_v48, 16 }
 0x2b3   :  { %1985 = vadd.xlane.f32.xlu1 %v1983_v19  ;;  %v1556_v52 = vpop.xlane.xlu0 %1555  ;;  %v2029_v19 = vand.u32 65535, %v812_v48 }
 0x2b4   :  { %v2704_v5 = vsel %vm2454_vm14, %v2703_v55, %v2699_v24  ;;  %v1548_v60 = vadd.s32 %v1547_v61, %v1545_v36  ;;  %v1558_v0 = vcvt.f32.s32 %v1556_v52  ;;  %v1566_v63 = vpop.xlane.xlu1 %1565  ;;  %v2018_v24 = vshrl.u32 %v811_v30, 16 }
 0x2b5   :  { %v1569_v56 = vcvt.f32.s32 %v1566_v63  ;;  %v813_v55 = vsel %vm681_vm10, %v3874_v59, 0  ;;  %v2031_v26 = vcvt.s32.f32 %v2029_v19  ;;  %vm683_vm10 = vcmp.eq.s32.totalorder %v4436_v28, %v3343_v1 }
 0x2b6   :  { %v2708_v11 = vrot.slane %v1548_v60, %v3687_v49  ;;  %v1559_v15 = vshll.u32 %v1558_v0, 16  ;;  %1987 = vadd.xlane.f32.xlu0 %v1984_v34  ;;  %v2020_v63 = vcvt.s32.f32 %v2018_v24  ;;  %v2041_v34 = vand.u32 65535, %v813_v55 }
 0x2b7   :  { %1997 = vadd.xlane.f32.xlu1 %v1995_v38  ;;  %v1568_v39 = vpop.xlane.xlu0 %1567  ;;  %v814_v38 = vsel %vm682_vm8, %v3874_v59, 0  ;;  %vm684_vm8 = vcmp.eq.s32.totalorder %v3468_v54, %v3343_v1 }
 0x2b8   :  { %v2709_v2 = vsel %vm2461_vm2, %v2708_v11, %v2704_v5  ;;  %v1560_v44 = vadd.s32 %v1559_v15, %v1557_v13  ;;  %v1570_v7 = vcvt.f32.s32 %v1568_v39  ;;  %v1578_v23 = vpop.xlane.xlu1 %1577  ;;  %v2042_v15 = vshrl.u32 %v813_v55, 16 }
 0x2b9   :  { %v1581_v61 = vcvt.f32.s32 %v1578_v23  ;;  %v2032_v23 = vcvt.s32.f32 %v2030_v25  ;;  %v2043_v9 = vcvt.s32.f32 %v2041_v34  ;;  %v816_v19 = vsel %vm684_vm8, %v3874_v59, 0 }
 0x2ba   :  { %v2713_v8 = vrot.slane %v1560_v44, %v3701_v51  ;;  %v1571_v29 = vshll.u32 %v1570_v7, 16  ;;  %1999 = vadd.xlane.f32.xlu0 %v1996_v53  ;;  %v2053_v53 = vand.u32 65535, %v814_v38  ;;  %vm686_vm8 = vcmp.eq.s32.totalorder %v3476_v31, %v3343_v1 }
 0x2bb   :  { %2009 = vadd.xlane.f32.xlu1 %v2007_v22  ;;  %v1580_v57 = vpop.xlane.xlu0 %1579  ;;  %v815_v22 = vsel %vm683_vm10, %v3874_v59, 0  ;;  %vm3055_vm10 = vcmask 1043459  }
 0x2bc   :  { %v2714_v50 = vsel %vm2468_vm6, %v2713_v8, %v2709_v2  ;;  %v1572_v14 = vadd.s32 %v1571_v29, %v1569_v56  ;;  %v1582_v62 = vcvt.f32.s32 %v1580_v57  ;;  %v1590_v17 = vpop.xlane.xlu1 %1589  ;;  %v2054_v29 = vshrl.u32 %v814_v38, 16 }
 0x2bd   :  { %v1593_v11 = vcvt.f32.s32 %v1590_v17  ;;  %v2044_v17 = vcvt.s32.f32 %v2042_v15 }
 0x2be   :  { %v2718_v36 = vrot.slane %v1572_v14, %v3708_v10  ;;  %v1583_v40 = vshll.u32 %v1582_v62, 16  ;;  %2011 = vadd.xlane.f32.xlu0 %v2008_v21  ;;  %v2065_v21 = vand.u32 65535, %v815_v22 }
 0x2bf   :  { %2021 = vadd.xlane.f32.xlu1 %v2019_v42  ;;  %v1592_v32 = vpop.xlane.xlu0 %1591  ;;  %v2055_v42 = vcvt.s32.f32 %v2053_v53 }
 0x2c0   :  { %v2719_v52 = vsel %vm4435_vm0, %v2718_v36, %v2714_v50  ;;  %v1584_v5 = vadd.s32 %v1583_v40, %v1581_v61  ;;  %v1594_v60 = vcvt.f32.s32 %v1592_v32  ;;  %v1602_v0 = vpop.xlane.xlu1 %1601  ;;  %vm4437_vm0 = vcmask 917312  }
 0x2c1   :  { %v1605_v8 = vcvt.f32.s32 %v1602_v0  ;;  %v2066_v40 = vshrl.u32 %v815_v22, 16  ;;  %v3138_v32 = vmov 0   ;;  %v2056_v0 = vcvt.s32.f32 %v2054_v29  ;;  %v4438_v22 = vld [vmem:[#allocation46_spill] sm:$0xff] }
 0x2c2   :  { %v2723_v30 = vrot.slane %v1584_v5, %v3722_v46  ;;  %v1595_v13 = vshll.u32 %v1594_v60, 16  ;;  %2023 = vadd.xlane.f32.xlu0 %v2020_v63  ;;  %3094 = vset.pattern.permute.xlu1 %v3138_v32  ;;  %v2077_v63 = vand.u32 65535, %v816_v19 }
 0x2c3   :  { %2033 = vadd.xlane.f32.xlu1 %v2031_v26  ;;  %v1604_v6 = vpop.xlane.xlu0 %1603  ;;  %3095 = vset.pattern.permute.xlu0 %v3138_v32  ;;  %v2067_v26 = vcvt.s32.f32 %v2065_v21 }
 0x2c4   :  { %v2724_v39 = vsel %vm4437_vm0, %v2723_v30, %v2719_v52  ;;  %v1596_v2 = vadd.s32 %v1595_v13, %v1593_v11  ;;  %v1606_v44 = vcvt.f32.s32 %v1604_v6  ;;  %v1614_v7 = vpop.xlane.xlu1 %1613  ;;  %vm685_vm0 = vcmp.eq.s32.totalorder %v3470_v35, %v3343_v1 }
 0x2c5   :  { %v1617_v36 = vcvt.f32.s32 %v1614_v7  ;;  %v817_v38 = vsel %vm685_vm0, %v3874_v59, 0  ;;  %v2078_v13 = vshrl.u32 %v816_v19, 16  ;;  %vm688_vm0 = vcmp.eq.s32.totalorder %v3485_v12, %v3343_v1  ;;  %v4439_v12 = vld [vmem:[#allocation47_spill] sm:$0xff] }
 0x2c6   :  { %v2728_v48 = vrot.slane %v1596_v2, %v3729_v3  ;;  %v1607_v56 = vshll.u32 %v1606_v44, 16  ;;  %2035 = vadd.xlane.f32.xlu0 %v2032_v23  ;;  %v2089_v2 = vand.u32 65535, %v817_v38  ;;  %v2079_v44 = vcvt.s32.f32 %v2077_v63 }
 0x2c7   :  { %2045 = vadd.xlane.f32.xlu1 %v2043_v9  ;;  %v1616_v24 = vpop.xlane.xlu0 %1615  ;;  %v2090_v9 = vshrl.u32 %v817_v38, 16 }
 0x2c8   :  { %v2729_v57 = vsel %vm2489_vm4, %v2728_v48, %v2724_v39  ;;  %v1608_v50 = vadd.s32 %v1607_v56, %v1605_v8  ;;  %v1618_v14 = vcvt.f32.s32 %v1616_v24  ;;  %v1626_v62 = vpop.xlane.xlu1 %1625  ;;  %v2068_v39 = vcvt.s32.f32 %v2066_v40 }
 0x2c9   :  { %v1629_v35 = vcvt.f32.s32 %v1626_v62  ;;  %v2092_v32 = vcvt.s32.f32 %v2090_v9 }
 0x2ca   :  { %v2733_v55 = vrot.slane %v1608_v50, %v3740_v43  ;;  %v1619_v61 = vshll.u32 %v1618_v14, 16  ;;  %2047 = vadd.xlane.f32.xlu0 %v2044_v17  ;;  %v2091_v14 = vcvt.s32.f32 %v2089_v2 }
 0x2cb   :  { %2057 = vadd.xlane.f32.xlu1 %v2055_v42  ;;  %v1628_v25 = vpop.xlane.xlu0 %1627 }
 0x2cc   :  { %v2734_v52 = vsel %vm2496_vm12, %v2733_v55, %v2729_v57  ;;  %v1620_v5 = vadd.s32 %v1619_v61, %v1617_v36  ;;  %v1630_v54 = vcvt.f32.s32 %v1628_v25  ;;  %v1638_v60 = vpop.xlane.xlu1 %1637  ;;  %v2080_v57 = vcvt.s32.f32 %v2078_v13 }
 0x2cd   :  { %v4011_v34 = vsel %vm3055_vm10, %v2734_v52, %v3925_v18  ;;  %v818_v18 = vsel %vm686_vm8, %v3874_v59, 0  ;;  %v1641_v53 = vcvt.f32.s32 %v1638_v60  ;;  %vm687_vm10 = vcmp.eq.s32.totalorder %v4438_v22, %v3343_v1 }
 0x2ce   :  { %v1631_v30 = vshll.u32 %v1630_v54, 16  ;;  %2059 = vadd.xlane.f32.xlu0 %v2056_v0  ;;  %v2738_v7 = vrot.slane %v1620_v5, %v3585_v27  ;;  %v2101_v50 = vand.u32 65535, %v818_v18  ;;  %v819_v62 = vsel %vm687_vm10, %v3874_v59, 0 }
 0x2cf   :  { %2069 = vadd.xlane.f32.xlu1 %v2067_v26  ;;  %v1640_v11 = vpop.xlane.xlu0 %1639  ;;  %v2102_v42 = vshrl.u32 %v818_v18, 16  ;;  %v2113_v52 = vand.u32 65535, %v819_v62  ;;  %v820_v54 = vsel %vm688_vm0, %v3874_v59, 0  ;;  %v2114_v26 = vshrl.u32 %v819_v62, 16 }
 0x2d0   :  { %v1632_v15 = vadd.s32 %v1631_v30, %v1629_v35  ;;  %v1642_v28 = vcvt.f32.s32 %v1640_v11  ;;  %v1650_v6 = vpop.xlane.xlu1 %1649  ;;  %v2103_v5 = vcvt.s32.f32 %v2101_v50  ;;  %vm689_vm8 = vcmp.eq.s32.totalorder %v4439_v12, %v3343_v1  ;;  %v4442_v50 = vld [vmem:[#allocation52_spill] sm:$0xff] }
 0x2d1   :  { %v1653_v21 = vcvt.f32.s32 %v1650_v6  ;;  %v4440_v6 = vld [vmem:[#allocation48_spill] sm:$0xff]  ;;  %v821_v2 = vsel %vm689_vm8, %v3874_v59, 0  ;;  %vm694_vm8 = vcmp.eq.s32.totalorder %v4442_v50, %v3343_v1 }
 0x2d2   :  { %v2742_v23 = vrot.slane %v1632_v15, %v3588_v33  ;;  %v1643_v31 = vshll.u32 %v1642_v28, 16  ;;  %2071 = vadd.xlane.f32.xlu0 %v2068_v39  ;;  %v2104_v15 = vcvt.s32.f32 %v2102_v42  ;;  %v2125_v28 = vand.u32 65535, %v820_v54 }
 0x2d3   :  { %2081 = vadd.xlane.f32.xlu1 %v2079_v44  ;;  %v1652_v48 = vpop.xlane.xlu0 %1651  ;;  %vm690_vm10 = vcmp.eq.s32.totalorder %v4440_v6, %v3343_v1  ;;  %v2115_v39 = vcvt.s32.f32 %v2113_v52  ;;  %v4052_v52 = vsel %vm694_vm8, %v3874_v59, 0 }
 0x2d4   :  { %v2743_v8 = vsel %vm4334_vm13, %v2742_v23, %v2738_v7  ;;  %v1644_v56 = vadd.s32 %v1643_v31, %v1641_v53  ;;  %v1654_v29 = vcvt.f32.s32 %v1652_v48  ;;  %v1662_v24 = vpop.xlane.xlu1 %1661  ;;  %v2126_v23 = vshrl.u32 %v820_v54, 16  ;;  %v4443_v54 = vld [vmem:[#allocation53_spill] sm:$0xff] }
 0x2d5   :  { %v1665_v0 = vcvt.f32.s32 %v1662_v24  ;;  %v4441_v24 = vld [vmem:[#allocation51_spill] sm:$0xff] }
 0x2d6   :  { %v2747_v17 = vrot.slane %v1644_v56, %v3594_v37  ;;  %v1655_v19 = vshll.u32 %v1654_v29, 16  ;;  %2083 = vadd.xlane.f32.xlu0 %v2080_v57  ;;  %v2137_v56 = vand.u32 65535, %v821_v2  ;;  %v4041_v29 = vsel %vm690_vm10, %v3874_v59, 0 }
 0x2d7   :  { %2093 = vadd.xlane.f32.xlu1 %v2091_v14  ;;  %v1664_v55 = vpop.xlane.xlu0 %1663  ;;  %vm693_vm0 = vcmp.eq.s32.totalorder %v4441_v24, %v3343_v1  ;;  %v2127_v57 = vcvt.s32.f32 %v2125_v28  ;;  %v2128_v42 = vcvt.s32.f32 %v2126_v23  ;;  %vm695_vm10 = vcmp.eq.s32.totalorder %v4443_v54, %v3343_v1 }
 0x2d8   :  { %v2748_v36 = vsel %vm2405_vm15, %v2747_v17, %v2743_v8  ;;  %v1656_v61 = vadd.s32 %v1655_v19, %v1653_v21  ;;  %v1666_v40 = vcvt.f32.s32 %v1664_v55  ;;  %v1674_v25 = vpop.xlane.xlu1 %1673  ;;  %v2116_v8 = vcvt.s32.f32 %v2114_v26 }
 0x2d9   :  { %v1677_v44 = vcvt.f32.s32 %v1674_v25  ;;  %v2138_v21 = vshrl.u32 %v821_v2, 16  ;;  %v825_v55 = vsel %vm693_vm0, %v3874_v59, 0  ;;  %v2198_v59 = vshrl.u32 %v4052_v52, 16 }
 0x2da   :  { %v2752_v60 = vrot.slane %v1656_v61, %v3609_v58  ;;  %v1667_v63 = vshll.u32 %v1666_v40, 16  ;;  %2095 = vadd.xlane.f32.xlu0 %v2092_v32  ;;  %v2149_v32 = vand.u32 65535, %v4041_v29  ;;  %v2186_v26 = vshrl.u32 %v825_v55, 16 }
 0x2db   :  { %2105 = vadd.xlane.f32.xlu1 %v2103_v5  ;;  %v1676_v38 = vpop.xlane.xlu0 %1675  ;;  %v2139_v5 = vcvt.s32.f32 %v2137_v56  ;;  %v2200_v56 = vcvt.s32.f32 %v2198_v59 }
 0x2dc   :  { %v2753_v35 = vsel %vm2412_vm1, %v2752_v60, %v2748_v36  ;;  %v1668_v30 = vadd.s32 %v1667_v63, %v1665_v0  ;;  %v1678_v11 = vcvt.f32.s32 %v1676_v38  ;;  %v1686_v13 = vpop.xlane.xlu1 %1685  ;;  %v2151_v6 = vcvt.s32.f32 %v2149_v32 }
 0x2dd   :  { %v1689_v62 = vcvt.f32.s32 %v1686_v13  ;;  %v2140_v13 = vcvt.s32.f32 %v2138_v21  ;;  %v2188_v23 = vcvt.s32.f32 %v2186_v26 }
 0x2de   :  { %v2757_v18 = vrot.slane %v1668_v30, %v3616_v16  ;;  %v1679_v7 = vshll.u32 %v1678_v11, 16  ;;  %2107 = vadd.xlane.f32.xlu0 %v2104_v15  ;;  %v4062_v15 = vld [vmem:[%s4320_s3] ss:$0 sm:$0xff] }
 0x2df   :  { %2117 = vadd.xlane.f32.xlu1 %v2115_v39  ;;  %v1688_v53 = vpop.xlane.xlu0 %1687  ;;  %v827_v28 = vsel %vm695_vm10, %v4062_v15, 0 }
 0x2e0   :  { %v2758_v31 = vsel %vm2419_vm3, %v2757_v18, %v2753_v35  ;;  %v1680_v9 = vadd.s32 %v1679_v7, %v1677_v44  ;;  %v1690_v22 = vcvt.f32.s32 %v1688_v53  ;;  %v1698_v48 = vpop.xlane.xlu1 %1697  ;;  %v4444_v44 = vld [vmem:[#allocation54_spill] sm:$0xff]  ;;  %v2210_v53 = vshrl.u32 %v827_v28, 16 }
 0x2e1   :  { %v1701_v0 = vcvt.f32.s32 %v1698_v48  ;;  %vm696_vm0 = vcmp.eq.s32.totalorder %v4444_v44, %v3343_v1 }
 0x2e2   :  { %v2762_v14 = vrot.slane %v1680_v9, %v3630_v20  ;;  %v1691_v17 = vshll.u32 %v1690_v22, 16  ;;  %2119 = vadd.xlane.f32.xlu0 %v2116_v8  ;;  %v2185_v8 = vand.u32 65535, %v825_v55  ;;  %v828_v24 = vsel %vm696_vm0, %v4062_v15, 0 }
 0x2e3   :  { %2129 = vadd.xlane.f32.xlu1 %v2127_v57  ;;  %v1700_v19 = vpop.xlane.xlu0 %1699 }
 0x2e4   :  { %v2763_v36 = vsel %vm2426_vm5, %v2762_v14, %v2758_v31  ;;  %v1692_v61 = vadd.s32 %v1691_v17, %v1689_v62  ;;  %v1702_v40 = vcvt.f32.s32 %v1700_v19  ;;  %v1710_v25 = vpop.xlane.xlu1 %1709  ;;  %v2197_v62 = vand.u32 65535, %v4052_v52  ;;  %v4445_v17 = vld [vmem:[#allocation55_spill] sm:$0xff] }
 0x2e5   :  { %v1713_v2 = vcvt.f32.s32 %v1710_v25  ;;  %vm697_vm8 = vcmp.eq.s32.totalorder %v4445_v17, %v3343_v1  ;;  %v2187_v25 = vcvt.s32.f32 %v2185_v8  ;;  %v2209_v52 = vand.u32 65535, %v827_v28 }
 0x2e6   :  { %v2767_v60 = vrot.slane %v1692_v61, %v3637_v41  ;;  %v1703_v63 = vshll.u32 %v1702_v40, 16  ;;  %2131 = vadd.xlane.f32.xlu0 %v2128_v42  ;;  %v2212_v61 = vcvt.s32.f32 %v2210_v53  ;;  %v2222_v40 = vshrl.u32 %v828_v24, 16 }
 0x2e7   :  { %2141 = vadd.xlane.f32.xlu1 %v2139_v5  ;;  %v1712_v12 = vpop.xlane.xlu0 %1711  ;;  %v829_v32 = vsel %vm697_vm8, %v4062_v15, 0  ;;  %v2221_v28 = vand.u32 65535, %v828_v24 }
 0x2e8   :  { %v2768_v38 = vsel %vm2433_vm7, %v2767_v60, %v2763_v36  ;;  %v1704_v35 = vadd.s32 %v1703_v63, %v1701_v0  ;;  %v1714_v30 = vcvt.f32.s32 %v1712_v12  ;;  %v1722_v11 = vpop.xlane.xlu1 %1721  ;;  %v4446_v0 = vld [vmem:[#allocation56_spill] sm:$0xff]  ;;  %v2233_v24 = vand.u32 65535, %v829_v32 }
 0x2e9   :  { %v1725_v50 = vcvt.f32.s32 %v1722_v11  ;;  %vm698_vm10 = vcmp.eq.s32.totalorder %v4446_v0, %v3343_v1  ;;  %v2234_v11 = vshrl.u32 %v829_v32, 16 }
 0x2ea   :  { %v2772_v39 = vrot.slane %v1704_v35, %v3651_v47  ;;  %v1715_v18 = vshll.u32 %v1714_v30, 16  ;;  %2143 = vadd.xlane.f32.xlu0 %v2140_v13  ;;  %v2199_v30 = vcvt.s32.f32 %v2197_v62  ;;  %v2224_v13 = vcvt.s32.f32 %v2222_v40 }
 0x2eb   :  { %2153 = vadd.xlane.f32.xlu1 %v2151_v6  ;;  %v1724_v7 = vpop.xlane.xlu0 %1723  ;;  %v830_v59 = vsel %vm698_vm10, %v4062_v15, 0 }
 0x2ec   :  { %v2773_v31 = vsel %vm2440_vm9, %v2772_v39, %v2768_v38  ;;  %v1716_v9 = vadd.s32 %v1715_v18, %v1713_v2  ;;  %v1726_v22 = vcvt.f32.s32 %v1724_v7  ;;  %v1734_v48 = vpop.xlane.xlu1 %1733  ;;  %v4447_v18 = vld [vmem:[#allocation57_spill] sm:$0xff]  ;;  %v2245_v32 = vand.u32 65535, %v830_v59 }
 0x2ed   :  { %v1737_v54 = vcvt.f32.s32 %v1734_v48  ;;  %vm699_vm0 = vcmp.eq.s32.totalorder %v4447_v18, %v3343_v1  ;;  %v2236_v48 = vcvt.s32.f32 %v2234_v11 }
 0x2ee   :  { %v2777_v57 = vrot.slane %v1716_v9, %v3658_v45  ;;  %v1727_v14 = vshll.u32 %v1726_v22, 16  ;;  %2191 = vadd.xlane.f32.xlu0 %v2188_v23  ;;  %v2211_v9 = vcvt.s32.f32 %v2209_v52  ;;  %v2246_v22 = vshrl.u32 %v830_v59, 16 }
 0x2ef   :  { %2203 = vadd.xlane.f32.xlu1 %v2200_v56  ;;  %v1736_v21 = vpop.xlane.xlu0 %1735  ;;  %v831_v8 = vsel %vm699_vm0, %v4062_v15, 0  ;;  %vm4450_vm0 = vcmask 851712  }
 0x2f0   :  { %v2778_v19 = vsel %vm2447_vm11, %v2777_v57, %v2773_v31  ;;  %v1728_v42 = vadd.s32 %v1727_v14, %v1725_v50  ;;  %v1738_v36 = vcvt.f32.s32 %v1736_v21  ;;  %v1746_v55 = vpop.xlane.xlu1 %1745  ;;  %v4448_v14 = vld [vmem:[#allocation58_spill] sm:$0xff] }
 0x2f1   :  { %v1749_v39 = vcvt.f32.s32 %v1746_v55  ;;  %vm700_vm8 = vcmp.eq.s32.totalorder %v4448_v14, %v3343_v1  ;;  %v2258_v55 = vshrl.u32 %v831_v8, 16 }
 0x2f2   :  { %v2782_v5 = vrot.slane %v1728_v42, %v3677_v4  ;;  %v1739_v60 = vshll.u32 %v1738_v36, 16  ;;  %2215 = vadd.xlane.f32.xlu0 %v2212_v61  ;;  %v2223_v36 = vcvt.s32.f32 %v2221_v28  ;;  %v2248_v61 = vcvt.s32.f32 %v2246_v22 }
 0x2f3   :  { %2189 = vadd.xlane.f32.xlu1 %v2187_v25  ;;  %v1748_v63 = vpop.xlane.xlu0 %1747  ;;  %v832_v40 = vsel %vm700_vm8, %v4062_v15, 0  ;;  %v2260_v11 = vcvt.s32.f32 %v2258_v55 }
 0x2f4   :  { %v2783_v26 = vsel %vm2454_vm14, %v2782_v5, %v2778_v19  ;;  %v1740_v12 = vadd.s32 %v1739_v60, %v1737_v54  ;;  %v1750_v38 = vcvt.f32.s32 %v1748_v63  ;;  %v1758_v35 = vpop.xlane.xlu1 %1757  ;;  %v4449_v60 = vld [vmem:[#allocation59_spill] sm:$0xff] }
 0x2f5   :  { %v1761_v57 = vcvt.f32.s32 %v1758_v35  ;;  %vm701_vm10 = vcmp.eq.s32.totalorder %v4449_v60, %v3343_v1  ;;  %v2270_v35 = vshrl.u32 %v832_v40, 16 }
 0x2f6   :  { %v2787_v6 = vrot.slane %v1740_v12, %v3687_v49  ;;  %v1751_v2 = vshll.u32 %v1750_v38, 16  ;;  %2201 = vadd.xlane.f32.xlu0 %v2199_v30  ;;  %v2235_v38 = vcvt.s32.f32 %v2233_v24  ;;  %v4451_v30 = vld [vmem:[#allocation60_spill] sm:$0xff] }
 0x2f7   :  { %2227 = vadd.xlane.f32.xlu1 %v2224_v13  ;;  %v1760_v44 = vpop.xlane.xlu0 %1759  ;;  %vm702_vm8 = vcmp.eq.s32.totalorder %v4451_v30, %v3343_v1  ;;  %v833_v13 = vsel %vm701_vm10, %v4062_v15, 0  ;;  %v2272_v22 = vcvt.s32.f32 %v2270_v35 }
 0x2f8   :  { %v2788_v7 = vsel %vm2461_vm2, %v2787_v6, %v2783_v26  ;;  %v1752_v23 = vadd.s32 %v1751_v2, %v1749_v39  ;;  %v1762_v53 = vcvt.f32.s32 %v1760_v44  ;;  %v1770_v31 = vpop.xlane.xlu1 %1769  ;;  %v2257_v2 = vand.u32 65535, %v831_v8 }
 0x2f9   :  { %v1773_v5 = vcvt.f32.s32 %v1770_v31  ;;  %v2282_v31 = vshrl.u32 %v833_v13, 16 }
 0x2fa   :  { %v2792_v56 = vrot.slane %v1752_v23, %v3701_v51  ;;  %v1763_v50 = vshll.u32 %v1762_v53, 16  ;;  %2213 = vadd.xlane.f32.xlu0 %v2211_v9  ;;  %v2247_v53 = vcvt.s32.f32 %v2245_v32  ;;  %v834_v9 = vsel %vm702_vm8, %v4062_v15, 0 }
 0x2fb   :  { %2239 = vadd.xlane.f32.xlu1 %v2236_v48  ;;  %v1772_v62 = vpop.xlane.xlu0 %1771  ;;  %v4453_v48 = vld [vmem:[#allocation61_spill] sm:$0xff]  ;;  %v2284_v55 = vcvt.s32.f32 %v2282_v31  ;;  %vm3057_vm8 = vcmask 1044484  }
 0x2fc   :  { %v2793_v17 = vsel %vm2468_vm6, %v2792_v56, %v2788_v7  ;;  %v1764_v21 = vadd.s32 %v1763_v50, %v1761_v57  ;;  %v1774_v19 = vcvt.f32.s32 %v1772_v62  ;;  %v1782_v42 = vpop.xlane.xlu1 %1781  ;;  %vm703_vm10 = vcmp.eq.s32.totalorder %v4453_v48, %v3343_v1 }
 0x2fd   :  { %v1785_v6 = vcvt.f32.s32 %v1782_v42  ;;  %v2269_v50 = vand.u32 65535, %v832_v40  ;;  %v2294_v42 = vshrl.u32 %v834_v9, 16  ;;  %v2281_v40 = vand.u32 65535, %v833_v13 }
 0x2fe   :  { %v2797_v25 = vrot.slane %v1764_v21, %v3708_v10  ;;  %v1775_v54 = vshll.u32 %v1774_v19, 16  ;;  %2225 = vadd.xlane.f32.xlu0 %v2223_v36  ;;  %v2259_v19 = vcvt.s32.f32 %v2257_v2  ;;  %v4109_v36 = vsel %vm703_vm10, %v4062_v15, 0 }
 0x2ff   :  { %2251 = vadd.xlane.f32.xlu1 %v2248_v61  ;;  %v1784_v52 = vpop.xlane.xlu0 %1783  ;;  %v2150_v48 = vshrl.u32 %v4041_v29, 16 }
 0x300   :  { %v2798_v0 = vsel %vm4450_vm0, %v2797_v25, %v2793_v17  ;;  %v1776_v63 = vadd.s32 %v1775_v54, %v1773_v5  ;;  %v1786_v26 = vcvt.f32.s32 %v1784_v52  ;;  %v1794_v12 = vpop.xlane.xlu1 %1793  ;;  %vm4452_vm0 = vcmask 917312   ;;  %v4454_v54 = vld [vmem:[#allocation62_spill] sm:$0xff] }
 0x301   :  { %v1797_v56 = vcvt.f32.s32 %v1794_v12  ;;  %v2306_v12 = vshrl.u32 %v4109_v36, 16 }
 0x302   :  { %v2802_v59 = vrot.slane %v1776_v63, %v3722_v46  ;;  %v1787_v39 = vshll.u32 %v1786_v26, 16  ;;  %2237 = vadd.xlane.f32.xlu0 %v2235_v38  ;;  %v2271_v26 = vcvt.s32.f32 %v2269_v50  ;;  %v2296_v38 = vcvt.s32.f32 %v2294_v42 }
 0x303   :  { %2263 = vadd.xlane.f32.xlu1 %v2260_v11  ;;  %v1796_v28 = vpop.xlane.xlu0 %1795 }
 0x304   :  { %v2803_v18 = vsel %vm4452_vm0, %v2802_v59, %v2798_v0  ;;  %v1788_v44 = vadd.s32 %v1787_v39, %v1785_v6  ;;  %v1798_v7 = vcvt.f32.s32 %v1796_v28  ;;  %v1806_v23 = vpop.xlane.xlu1 %1805  ;;  %vm704_vm0 = vcmp.eq.s32.totalorder %v4454_v54, %v3343_v1 }
 0x305   :  { %v1809_v25 = vcvt.f32.s32 %v1806_v23  ;;  %v4120_v30 = vsel %vm704_vm0, %v4062_v15, 0  ;;  %v2293_v6 = vand.u32 65535, %v834_v9  ;;  %v4456_v9 = vld [vmem:[#allocation49_spill] sm:$0xff] }
 0x306   :  { %v2807_v8 = vrot.slane %v1788_v44, %v3729_v3  ;;  %v1799_v57 = vshll.u32 %v1798_v7, 16  ;;  %2249 = vadd.xlane.f32.xlu0 %v2247_v53  ;;  %v2318_v44 = vshrl.u32 %v4120_v30, 16  ;;  %v4455_v7 = vld [vmem:[#allocation63_spill] sm:$0xff] }
 0x307   :  { %2275 = vadd.xlane.f32.xlu1 %v2272_v22  ;;  %v1808_v24 = vpop.xlane.xlu0 %1807  ;;  %vm705_vm10 = vcmp.eq.s32.totalorder %v4455_v7, %v3343_v1 }
 0x308   :  { %v2808_v14 = vsel %vm2489_vm4, %v2807_v8, %v2803_v18  ;;  %v1800_v62 = vadd.s32 %v1799_v57, %v1797_v56  ;;  %v1810_v17 = vcvt.f32.s32 %v1808_v24  ;;  %v1818_v21 = vpop.xlane.xlu1 %1817  ;;  %v2283_v18 = vcvt.s32.f32 %v2281_v40 }
 0x309   :  { %v1821_v11 = vcvt.f32.s32 %v1818_v21  ;;  %v2320_v29 = vcvt.s32.f32 %v2318_v44 }
 0x30a   :  { %v2812_v61 = vrot.slane %v1800_v62, %v3740_v43  ;;  %v1811_v5 = vshll.u32 %v1810_v17, 16  ;;  %2261 = vadd.xlane.f32.xlu0 %v2259_v19  ;;  %v2305_v62 = vand.u32 65535, %v4109_v36  ;;  %v4136_v17 = vsel %vm705_vm10, %v4062_v15, 0  ;;  %v4458_v36 = vld [vmem:[#allocation64_spill] sm:$0xff] }
 0x30b   :  { %2287 = vadd.xlane.f32.xlu1 %v2284_v55  ;;  %v1820_v32 = vpop.xlane.xlu0 %1819  ;;  %v2330_v40 = vshrl.u32 %v4136_v17, 16 }
 0x30c   :  { %v2813_v60 = vsel %vm2496_vm12, %v2812_v61, %v2808_v14  ;;  %v1812_v52 = vadd.s32 %v1811_v5, %v1809_v25  ;;  %v1822_v0 = vcvt.f32.s32 %v1820_v32  ;;  %v1830_v63 = vpop.xlane.xlu1 %1829  ;;  %v2295_v14 = vcvt.s32.f32 %v2293_v6  ;;  %v4457_v61 = vld [vmem:[#allocation50_spill] sm:$0xff] }
 0x30d   :  { %v4117_v35 = vsel %vm3057_vm8, %v2813_v60, %v4011_v34  ;;  %v2308_v34 = vcvt.s32.f32 %v2306_v12  ;;  %v1833_v31 = vcvt.f32.s32 %v1830_v63  ;;  %vm691_vm8 = vcmp.eq.s32.totalorder %v4456_v9, %v3343_v1 }
 0x30e   :  { %v1823_v13 = vshll.u32 %v1822_v0, 16  ;;  %2273 = vadd.xlane.f32.xlu0 %v2271_v26  ;;  %v2817_v23 = vrot.slane %v1812_v52, %v3585_v27  ;;  %v4139_v21 = vsel %vm691_vm8, %v4062_v15, 0  ;;  %vm692_vm0 = vcmp.eq.s32.totalorder %v4457_v61, %v3343_v1 }
 0x30f   :  { %2299 = vadd.xlane.f32.xlu1 %v2296_v38  ;;  %v1832_v59 = vpop.xlane.xlu0 %1831  ;;  %v2152_v5 = vcvt.s32.f32 %v2150_v48  ;;  %v2162_v0 = vshrl.u32 %v4139_v21, 16  ;;  %v2307_v63 = vcvt.s32.f32 %v2305_v62  ;;  %v2332_v44 = vcvt.s32.f32 %v2330_v40 }
 0x310   :  { %v1824_v39 = vadd.s32 %v1823_v13, %v1821_v11  ;;  %v1834_v2 = vcvt.f32.s32 %v1832_v59  ;;  %v1842_v28 = vpop.xlane.xlu1 %1841  ;;  %v4157_v13 = vsel %vm692_vm0, %v4062_v15, 0  ;;  %v2317_v59 = vand.u32 65535, %v4120_v30 }
 0x311   :  { %v1845_v42 = vcvt.f32.s32 %v1842_v28  ;;  %v2174_v30 = vshrl.u32 %v4157_v13, 16  ;;  %vm4461_vm8 = vcmask 851712   ;;  %vm4462_vm0 = vcmask 917312  }
 0x312   :  { %v2821_v53 = vrot.slane %v1824_v39, %v3588_v33  ;;  %v1835_v22 = vshll.u32 %v1834_v2, 16  ;;  %2285 = vadd.xlane.f32.xlu0 %v2283_v18 }
 0x313   :  { %2311 = vadd.xlane.f32.xlu1 %v2308_v34  ;;  %v1844_v8 = vpop.xlane.xlu0 %1843  ;;  %v2164_v34 = vcvt.s32.f32 %v2162_v0 }
 0x314   :  { %v2822_v56 = vsel %vm4334_vm13, %v2821_v53, %v2817_v23  ;;  %v1836_v57 = vadd.s32 %v1835_v22, %v1833_v31  ;;  %v1846_v50 = vcvt.f32.s32 %v1844_v8  ;;  %v1854_v24 = vpop.xlane.xlu1 %1853  ;;  %vm706_vm13 = vcmp.eq.s32.totalorder %v4458_v36, %v3343_v1  ;;  %v4459_v23 = vld [vmem:[#allocation65_spill] sm:$0xff] }
 0x315   :  { %v4150_v26 = vsel %vm706_vm13, %v4062_v15, 0  ;;  %v1857_v38 = vcvt.f32.s32 %v1854_v24  ;;  %vm707_vm13 = vcmp.eq.s32.totalorder %v4459_v23, %v3343_v1  ;;  %v2329_v24 = vand.u32 65535, %v4136_v17 }
 0x316   :  { %v2826_v19 = vrot.slane %v1836_v57, %v3594_v37  ;;  %v1847_v55 = vshll.u32 %v1846_v50, 16  ;;  %2297 = vadd.xlane.f32.xlu0 %v2295_v14  ;;  %v2342_v7 = vshrl.u32 %v4150_v26, 16  ;;  %v2319_v50 = vcvt.s32.f32 %v2317_v59 }
 0x317   :  { %2323 = vadd.xlane.f32.xlu1 %v2320_v29  ;;  %v1856_v25 = vpop.xlane.xlu0 %1855  ;;  %v839_v14 = vsel %vm707_vm13, %v4062_v15, 0  ;;  %v2176_v36 = vcvt.s32.f32 %v2174_v30  ;;  %vm3059_vm13 = vcmask 1045509  }
 0x318   :  { %v2827_v54 = vsel %vm2405_vm15, %v2826_v19, %v2822_v56  ;;  %v1848_v32 = vadd.s32 %v1847_v55, %v1845_v42  ;;  %v1858_v60 = vcvt.f32.s32 %v1856_v25  ;;  %v1866_v52 = vpop.xlane.xlu1 %1865  ;;  %v2344_v62 = vcvt.s32.f32 %v2342_v7  ;;  %v4460_v55 = vld [vmem:[#allocation66_spill] sm:$0xff] }
 0x319   :  { %v1869_v31 = vcvt.f32.s32 %v1866_v52  ;;  %vm708_vm10 = vcmp.eq.s32.totalorder %v4460_v55, %v3343_v1  ;;  %v2354_v25 = vshrl.u32 %v839_v14, 16 }
 0x31a   :  { %v2831_v12 = vrot.slane %v1848_v32, %v3609_v58  ;;  %v1859_v11 = vshll.u32 %v1858_v60, 16  ;;  %2155 = vadd.xlane.f32.xlu0 %v2152_v5  ;;  %v2161_v32 = vand.u32 65535, %v4139_v21  ;;  %v2331_v60 = vcvt.s32.f32 %v2329_v24 }
 0x31b   :  { %2309 = vadd.xlane.f32.xlu1 %v2307_v63  ;;  %v1868_v6 = vpop.xlane.xlu0 %1867  ;;  %v840_v52 = vsel %vm708_vm10, %v4062_v15, 0  ;;  %vm4463_vm10 = vcmask 130112  }
 0x31c   :  { %v2832_v39 = vsel %vm2412_vm1, %v2831_v12, %v2827_v54  ;;  %v1860_v2 = vadd.s32 %v1859_v11, %v1857_v38  ;;  %v1870_v28 = vcvt.f32.s32 %v1868_v6  ;;  %v1878_v18 = vpop.xlane.xlu1 %1877  ;;  %v2341_v38 = vand.u32 65535, %v4150_v26 }
 0x31d   :  { %v1881_v19 = vcvt.f32.s32 %v1878_v18  ;;  %v2366_v18 = vshrl.u32 %v840_v52, 16  ;;  %v2163_v21 = vcvt.s32.f32 %v2161_v32 }
 0x31e   :  { %v2836_v53 = vrot.slane %v1860_v2, %v3616_v16  ;;  %v1871_v22 = vshll.u32 %v1870_v28, 16  ;;  %2335 = vadd.xlane.f32.xlu0 %v2332_v44  ;;  %v2356_v28 = vcvt.s32.f32 %v2354_v25  ;;  %v2343_v30 = vcvt.s32.f32 %v2341_v38 }
 0x31f   :  { %2167 = vadd.xlane.f32.xlu1 %v2164_v34  ;;  %v1880_v48 = vpop.xlane.xlu0 %1879  ;;  %v2173_v34 = vand.u32 65535, %v4157_v13 }
 0x320   :  { %v2837_v9 = vsel %vm2419_vm3, %v2836_v53, %v2832_v39  ;;  %v1872_v8 = vadd.s32 %v1871_v22, %v1869_v31  ;;  %v1882_v56 = vcvt.f32.s32 %v1880_v48  ;;  %v1890_v57 = vpop.xlane.xlu1 %1889  ;;  %v2353_v48 = vand.u32 65535, %v839_v14 }
 0x321   :  { %v1893_v63 = vcvt.f32.s32 %v1890_v57  ;;  %v2175_v24 = vcvt.s32.f32 %v2173_v34 }
 0x322   :  { %v2841_v29 = vrot.slane %v1872_v8, %v3630_v20  ;;  %v1883_v42 = vshll.u32 %v1882_v56, 16  ;;  %2321 = vadd.xlane.f32.xlu0 %v2319_v50  ;;  %v2355_v55 = vcvt.s32.f32 %v2353_v48  ;;  %v2377_v48 = vld [vmem:[%s4318_s1] sm:$0xff]  ;;  %s4275_s1 = sld [smem:[#allocation2 + $0x2]] }
 0x323   :  { %2347 = vadd.xlane.f32.xlu1 %v2344_v62  ;;  %v1892_v61 = vpop.xlane.xlu0 %1891  ;;  %v2365_v62 = vand.u32 65535, %v840_v52 }
 0x324   :  { %v2842_v5 = vsel %vm2426_vm5, %v2841_v29, %v2837_v9  ;;  %v1884_v40 = vadd.s32 %v1883_v42, %v1881_v19  ;;  %v1894_v54 = vcvt.f32.s32 %v1892_v61  ;;  %v1902_v17 = vpop.xlane.xlu1 %1901  ;;  %v2368_v9 = vcvt.s32.f32 %v2366_v18 }
 0x325   :  { %v1905_v15 = vcvt.f32.s32 %v1902_v17  ;;  %v2367_v32 = vcvt.s32.f32 %v2365_v62 }
 0x326   :  { %v2846_v0 = vrot.slane %v1884_v40, %v3637_v41  ;;  %v1895_v12 = vshll.u32 %v1894_v54, 16  ;;  %2179 = vadd.xlane.f32.xlu0 %v2176_v36 }
 0x327   :  { %2333 = vadd.xlane.f32.xlu1 %v2331_v60  ;;  %v1904_v11 = vpop.xlane.xlu0 %1903 }
 0x328   :  { %v2847_v59 = vsel %vm2433_vm7, %v2846_v0, %v2842_v5  ;;  %v1896_v6 = vadd.s32 %v1895_v12, %v1893_v63  ;;  %v1906_v39 = vcvt.f32.s32 %v1904_v11  ;;  %v1914_v2 = vpop.xlane.xlu1 %1913 }
 0x329   :  { %v1917_v56 = vcvt.f32.s32 %v1914_v2 }
 0x32a   :  { %v2851_v44 = vrot.slane %v1896_v6, %v3651_v47  ;;  %v1907_v7 = vshll.u32 %v1906_v39, 16  ;;  %2359 = vadd.xlane.f32.xlu0 %v2356_v28 }
 0x32b   :  { %2165 = vadd.xlane.f32.xlu1 %v2163_v21  ;;  %v1916_v23 = vpop.xlane.xlu0 %1915 }
 0x32c   :  { %v2852_v26 = vsel %vm2440_vm9, %v2851_v44, %v2847_v59  ;;  %v1908_v53 = vadd.s32 %v1907_v7, %v1905_v15  ;;  %v1918_v31 = vcvt.f32.s32 %v1916_v23  ;;  %v1926_v22 = vpop.xlane.xlu1 %1925 }
 0x32d   :  { %v1929_v36 = vcvt.f32.s32 %v1926_v22 }
 0x32e   :  { %v2856_v8 = vrot.slane %v1908_v53, %v3658_v45  ;;  %v1919_v57 = vshll.u32 %v1918_v31, 16  ;;  %2345 = vadd.xlane.f32.xlu0 %v2343_v30 }
 0x32f   :  { %2371 = vadd.xlane.f32.xlu1 %v2368_v9  ;;  %v1928_v50 = vpop.xlane.xlu0 %1927 }
 0x330   :  { %v2857_v13 = vsel %vm2447_vm11, %v2856_v8, %v2852_v26  ;;  %v1920_v29 = vadd.s32 %v1919_v57, %v1917_v56  ;;  %v1930_v19 = vcvt.f32.s32 %v1928_v50  ;;  %v1938_v42 = vpop.xlane.xlu1 %1937 }
 0x331   :  { %v1941_v52 = vcvt.f32.s32 %v1938_v42 }
 0x332   :  { %v2861_v61 = vrot.slane %v1920_v29, %v3677_v4  ;;  %v1931_v14 = vshll.u32 %v1930_v19, 16  ;;  %2177 = vadd.xlane.f32.xlu0 %v2175_v24 }
 0x333   :  { %2357 = vadd.xlane.f32.xlu1 %v2355_v55  ;;  %v1940_v25 = vpop.xlane.xlu0 %1939 }
 0x334   :  { %v2862_v5 = vsel %vm2454_vm14, %v2861_v61, %v2857_v13  ;;  %v1932_v40 = vadd.s32 %v1931_v14, %v1929_v36  ;;  %v1942_v54 = vcvt.f32.s32 %v1940_v25  ;;  %v1950_v17 = vpop.xlane.xlu1 %1949 }
 0x335   :  { %v1953_v39 = vcvt.f32.s32 %v1950_v17 }
 0x336   :  { %v2866_v60 = vrot.slane %v1932_v40, %v3687_v49  ;;  %v1943_v0 = vshll.u32 %v1942_v54, 16  ;;  %2369 = vadd.xlane.f32.xlu0 %v2367_v32 }
 0x337   :  { %v1952_v63 = vpop.xlane.xlu0 %1951 }
 0x338   :  { %v2867_v12 = vsel %vm2461_vm2, %v2866_v60, %v2862_v5  ;;  %v1944_v38 = vadd.s32 %v1943_v0, %v1941_v52  ;;  %v1954_v11 = vcvt.f32.s32 %v1952_v63  ;;  %v1962_v59 = vpop.xlane.xlu1 %1961  ;;  %v2379_v5 = vadd.s32 1, %v2377_v48 }
 0x339   :  { %v1965_v34 = vcvt.f32.s32 %v1962_v59 }
 0x33a   :  { %v2871_v6 = vrot.slane %v1944_v38, %v3701_v51  ;;  %v1955_v2 = vshll.u32 %v1954_v11, 16 }
 0x33b   :  { %v1964_v28 = vpop.xlane.xlu0 %1963 }
 0x33c   :  { %v2872_v18 = vsel %vm2468_vm6, %v2871_v6, %v2867_v12  ;;  %v1956_v21 = vadd.s32 %v1955_v2, %v1953_v39  ;;  %v1966_v44 = vcvt.f32.s32 %v1964_v28  ;;  %v1974_v15 = vpop.xlane.xlu1 %1973 }
 0x33d   :  { %v1977_v8 = vcvt.f32.s32 %v1974_v15 }
 0x33e   :  { %v2876_v7 = vrot.slane %v1956_v21, %v3708_v10  ;;  %v1967_v23 = vshll.u32 %v1966_v44, 16 }
 0x33f   :  { %v1976_v26 = vpop.xlane.xlu0 %1975 }
 0x340   :  { %v2877_v53 = vsel %vm4461_vm8, %v2876_v7, %v2872_v18  ;;  %v1968_v31 = vadd.s32 %v1967_v23, %v1965_v34  ;;  %v1978_v22 = vcvt.f32.s32 %v1976_v26  ;;  %v1986_v30 = vpop.xlane.xlu1 %1985 }
 0x341   :  { %v1989_v19 = vcvt.f32.s32 %v1986_v30 }
 0x342   :  { %v2881_v9 = vrot.slane %v1968_v31, %v3722_v46  ;;  %v1979_v56 = vshll.u32 %v1978_v22, 16 }
 0x343   :  { %v1988_v57 = vpop.xlane.xlu0 %1987 }
 0x344   :  { %v2882_v50 = vsel %vm4462_vm0, %v2881_v9, %v2877_v53  ;;  %v1980_v24 = vadd.s32 %v1979_v56, %v1977_v8  ;;  %v1990_v62 = vcvt.f32.s32 %v1988_v57  ;;  %v1998_v13 = vpop.xlane.xlu1 %1997  ;;  %2385 = vperm.xlu1 %3094, %v2377_v48  }
 0x345   :  { %v2001_v54 = vcvt.f32.s32 %v1998_v13 }
 0x346   :  { %v2886_v29 = vrot.slane %v1980_v24, %v3729_v3  ;;  %v1991_v42 = vshll.u32 %v1990_v62, 16 }
 0x347   :  { %v2000_v55 = vpop.xlane.xlu0 %1999 }
 0x348   :  { %v2887_v61 = vsel %vm2489_vm4, %v2886_v29, %v2882_v50  ;;  %v1992_v36 = vadd.s32 %v1991_v42, %v1989_v19  ;;  %v2002_v14 = vcvt.f32.s32 %v2000_v55  ;;  %v2010_v25 = vpop.xlane.xlu1 %2009 }
 0x349   :  { %v2013_v38 = vcvt.f32.s32 %v2010_v25 }
 0x34a   :  { %v2891_v40 = vrot.slane %v1992_v36, %v3740_v43  ;;  %v2003_v17 = vshll.u32 %v2002_v14, 16 }
 0x34b   :  { %v2012_v32 = vpop.xlane.xlu0 %2011 }
 0x34c   :  { %v2892_v60 = vsel %vm2496_vm12, %v2891_v40, %v2887_v61  ;;  %v2004_v52 = vadd.s32 %v2003_v17, %v2001_v54  ;;  %v2014_v0 = vcvt.f32.s32 %v2012_v32  ;;  %v2022_v63 = vpop.xlane.xlu1 %2021  ;;  %2381 = vperm.xlu0 %3095, %v2379_v5  }
 0x34d   :  { %v4201_v12 = vsel %vm3059_vm13, %v2892_v60, %v4117_v35  ;;  %v2025_v21 = vcvt.f32.s32 %v2022_v63  ;;  %vm4464_vm13 = vmmov %vm4463_vm10 }
 0x34e   :  { %v2015_v11 = vshll.u32 %v2014_v0, 16  ;;  %v2896_v28 = vrot.slane %v2004_v52, %v3585_v27 }
 0x34f   :  { %v2024_v59 = vpop.xlane.xlu0 %2023 }
 0x350   :  { %v2016_v6 = vadd.s32 %v2015_v11, %v2013_v38  ;;  %v2026_v39 = vcvt.f32.s32 %v2024_v59  ;;  %v2034_v2 = vpop.xlane.xlu1 %2033 }
 0x351   :  { %v2037_v53 = vcvt.f32.s32 %v2034_v2 }
 0x352   :  { %v2900_v18 = vrot.slane %v2016_v6, %v3588_v33  ;;  %v2027_v44 = vshll.u32 %v2026_v39, 16 }
 0x353   :  { %v2036_v15 = vpop.xlane.xlu0 %2035 }
 0x354   :  { %v2901_v7 = vsel %vm4463_vm10, %v2900_v18, %v2896_v28  ;;  %v2028_v34 = vadd.s32 %v2027_v44, %v2025_v21  ;;  %v2038_v23 = vcvt.f32.s32 %v2036_v15  ;;  %v2046_v26 = vpop.xlane.xlu1 %2045 }
 0x355   :  { %v2049_v57 = vcvt.f32.s32 %v2046_v26 }
 0x356   :  { %v2905_v35 = vrot.slane %v2028_v34, %v3594_v37  ;;  %v2039_v31 = vshll.u32 %v2038_v23, 16 }
 0x357   :  { %v2048_v22 = vpop.xlane.xlu0 %2047 }
 0x358   :  { %v2906_v30 = vsel %vm2405_vm15, %v2905_v35, %v2901_v7  ;;  %v2040_v48 = vadd.s32 %v2039_v31, %v2037_v53  ;;  %v2050_v9 = vcvt.f32.s32 %v2048_v22  ;;  %v2058_v8 = vpop.xlane.xlu1 %2057 }
 0x359   :  { %v2061_v55 = vcvt.f32.s32 %v2058_v8 }
 0x35a   :  { %v2910_v56 = vrot.slane %v2040_v48, %v3609_v58  ;;  %v2051_v50 = vshll.u32 %v2050_v9, 16 }
 0x35b   :  { %v2060_v24 = vpop.xlane.xlu0 %2059 }
 0x35c   :  { %v2911_v62 = vsel %vm2412_vm1, %v2910_v56, %v2906_v30  ;;  %v2052_v13 = vadd.s32 %v2051_v50, %v2049_v57  ;;  %v2062_v29 = vcvt.f32.s32 %v2060_v24  ;;  %v2070_v19 = vpop.xlane.xlu1 %2069 }
 0x35d   :  { %v2073_v17 = vcvt.f32.s32 %v2070_v19 }
 0x35e   :  { %v2915_v42 = vrot.slane %v2052_v13, %v3616_v16  ;;  %v2063_v61 = vshll.u32 %v2062_v29, 16 }
 0x35f   :  { %v2072_v36 = vpop.xlane.xlu0 %2071 }
 0x360   :  { %v2916_v14 = vsel %vm2419_vm3, %v2915_v42, %v2911_v62  ;;  %v2064_v25 = vadd.s32 %v2063_v61, %v2061_v55  ;;  %v2074_v5 = vcvt.f32.s32 %v2072_v36  ;;  %v2082_v40 = vpop.xlane.xlu1 %2081 }
 0x361   :  { %v2085_v59 = vcvt.f32.s32 %v2082_v40 }
 0x362   :  { %v2920_v54 = vrot.slane %v2064_v25, %v3630_v20  ;;  %v2075_v32 = vshll.u32 %v2074_v5, 16 }
 0x363   :  { %v2084_v60 = vpop.xlane.xlu0 %2083 }
 0x364   :  { %v2921_v52 = vsel %vm2426_vm5, %v2920_v54, %v2916_v14  ;;  %v2076_v0 = vadd.s32 %v2075_v32, %v2073_v17  ;;  %v2086_v63 = vcvt.f32.s32 %v2084_v60  ;;  %v2094_v38 = vpop.xlane.xlu1 %2093 }
 0x365   :  { %v2097_v15 = vcvt.f32.s32 %v2094_v38 }
 0x366   :  { %v2925_v11 = vrot.slane %v2076_v0, %v3637_v41  ;;  %v2087_v6 = vshll.u32 %v2086_v63, 16 }
 0x367   :  { %v2096_v39 = vpop.xlane.xlu0 %2095 }
 0x368   :  { %v2926_v2 = vsel %vm2433_vm7, %v2925_v11, %v2921_v52  ;;  %v2088_v28 = vadd.s32 %v2087_v6, %v2085_v59  ;;  %v2098_v18 = vcvt.f32.s32 %v2096_v39  ;;  %v2106_v21 = vpop.xlane.xlu1 %2105 }
 0x369   :  { %v2109_v22 = vcvt.f32.s32 %v2106_v21 }
 0x36a   :  { %v2930_v44 = vrot.slane %v2088_v28, %v3651_v47  ;;  %v2099_v7 = vshll.u32 %v2098_v18, 16 }
 0x36b   :  { %v2108_v34 = vpop.xlane.xlu0 %2107 }
 0x36c   :  { %v2931_v23 = vsel %vm2440_vm9, %v2930_v44, %v2926_v2  ;;  %v2100_v26 = vadd.s32 %v2099_v7, %v2097_v15  ;;  %v2110_v35 = vcvt.f32.s32 %v2108_v34  ;;  %v2118_v53 = vpop.xlane.xlu1 %2117 }
 0x36d   :  { %v2121_v24 = vcvt.f32.s32 %v2118_v53 }
 0x36e   :  { %v2935_v31 = vrot.slane %v2100_v26, %v3658_v45  ;;  %v2111_v30 = vshll.u32 %v2110_v35, 16 }
 0x36f   :  { %v2120_v48 = vpop.xlane.xlu0 %2119 }
 0x370   :  { %v2936_v9 = vsel %vm2447_vm11, %v2935_v31, %v2931_v23  ;;  %v2112_v8 = vadd.s32 %v2111_v30, %v2109_v22  ;;  %v2122_v56 = vcvt.f32.s32 %v2120_v48  ;;  %v2130_v57 = vpop.xlane.xlu1 %2129 }
 0x371   :  { %v2133_v36 = vcvt.f32.s32 %v2130_v57 }
 0x372   :  { %v2940_v50 = vrot.slane %v2112_v8, %v3677_v4  ;;  %v2123_v62 = vshll.u32 %v2122_v56, 16 }
 0x373   :  { %v2132_v13 = vpop.xlane.xlu0 %2131 }
 0x374   :  { %v2941_v29 = vsel %vm2454_vm14, %v2940_v50, %v2936_v9  ;;  %v2124_v19 = vadd.s32 %v2123_v62, %v2121_v24  ;;  %v2134_v42 = vcvt.f32.s32 %v2132_v13  ;;  %v2142_v55 = vpop.xlane.xlu1 %2141 }
 0x375   :  { %v2145_v60 = vcvt.f32.s32 %v2142_v55 }
 0x376   :  { %v2945_v61 = vrot.slane %v2124_v19, %v3687_v49  ;;  %v2135_v14 = vshll.u32 %v2134_v42, 16 }
 0x377   :  { %v2144_v25 = vpop.xlane.xlu0 %2143 }
 0x378   :  { %v2946_v5 = vsel %vm2461_vm2, %v2945_v61, %v2941_v29  ;;  %v2136_v40 = vadd.s32 %v2135_v14, %v2133_v36  ;;  %v2146_v54 = vcvt.f32.s32 %v2144_v25  ;;  %v2154_v17 = vpop.xlane.xlu1 %2153 }
 0x379   :  { %v2157_v25 = vcvt.f32.s32 %v2154_v17 }
 0x37a   :  { %v2950_v32 = vrot.slane %v2136_v40, %v3701_v51  ;;  %v2147_v52 = vshll.u32 %v2146_v54, 16 }
 0x37b   :  { %v2192_v0 = vpop.xlane.xlu0 %2191 }
 0x37c   :  { %v2951_v63 = vsel %vm2468_vm6, %v2950_v32, %v2946_v5  ;;  %v2148_v38 = vadd.s32 %v2147_v52, %v2145_v60  ;;  %v2204_v11 = vpop.xlane.xlu1 %2203  ;;  %v2194_v50 = vcvt.f32.s32 %v2192_v0 }
 0x37d   :  { %v2206_v57 = vcvt.f32.s32 %v2204_v11 }
 0x37e   :  { %v2955_v59 = vrot.slane %v2148_v38, %v3708_v10  ;;  %v2195_v54 = vshll.u32 %v2194_v50, 16 }
 0x37f   :  { %v2216_v6 = vpop.xlane.xlu0 %2215  ;;  %v2207_v55 = vshll.u32 %v2206_v57, 16 }
 0x380   :  { %v2956_v39 = vsel %vm4461_vm8, %v2955_v59, %v2951_v63  ;;  %v2190_v2 = vpop.xlane.xlu1 %2189  ;;  %v2218_v24 = vcvt.f32.s32 %v2216_v6 }
 0x381   :  { %v2193_v61 = vcvt.f32.s32 %v2190_v2 }
 0x382   :  { %v2219_v32 = vshll.u32 %v2218_v24, 16 }
 0x383   :  { %v2202_v28 = vpop.xlane.xlu0 %2201  ;;  %v2196_v59 = vadd.s32 %v2195_v54, %v2193_v61 }
 0x384   :  { %v2228_v18 = vpop.xlane.xlu1 %2227  ;;  %v2205_v62 = vcvt.f32.s32 %v2202_v28 }
 0x385   :  { %v2230_v29 = vcvt.f32.s32 %v2228_v18 }
 0x386   :  { %v2208_v60 = vadd.s32 %v2207_v55, %v2205_v62 }
 0x387   :  { %v2214_v21 = vpop.xlane.xlu0 %2213  ;;  %v2231_v0 = vshll.u32 %v2230_v29, 16  ;;  %v2975_v29 = vrot.slane %v2196_v59, %v3585_v27 }
 0x388   :  { %v2240_v44 = vpop.xlane.xlu1 %2239  ;;  %v2217_v36 = vcvt.f32.s32 %v2214_v21  ;;  %v2979_v17 = vrot.slane %v2208_v60, %v3588_v33 }
 0x389   :  { %v2242_v14 = vcvt.f32.s32 %v2240_v44 }
 0x38a   :  { %v2220_v6 = vadd.s32 %v2219_v32, %v2217_v36  ;;  %v2980_v33 = vsel %vm4464_vm13, %v2979_v17, %v2975_v29 }
 0x38b   :  { %v2226_v15 = vpop.xlane.xlu0 %2225  ;;  %v2243_v28 = vshll.u32 %v2242_v14, 16 }
 0x38c   :  { %v2252_v7 = vpop.xlane.xlu1 %2251  ;;  %v2229_v5 = vcvt.f32.s32 %v2226_v15 }
 0x38d   :  { %v2254_v57 = vcvt.f32.s32 %v2252_v7 }
 0x38e   :  { %v2232_v18 = vadd.s32 %v2231_v0, %v2229_v5 }
 0x38f   :  { %v2238_v34 = vpop.xlane.xlu0 %2237 }
 0x390   :  { %v2264_v23 = vpop.xlane.xlu1 %2263  ;;  %v2241_v52 = vcvt.f32.s32 %v2238_v34  ;;  %v2989_v7 = vrot.slane %v2232_v18, %v3609_v58 }
 0x391   :  { %v2266_v2 = vcvt.f32.s32 %v2264_v23  ;;  %v2255_v23 = vshll.u32 %v2254_v57, 16 }
 0x392   :  { %v2244_v44 = vadd.s32 %v2243_v28, %v2241_v52 }
 0x393   :  { %v2250_v26 = vpop.xlane.xlu0 %2249  ;;  %v2267_v55 = vshll.u32 %v2266_v2, 16 }
 0x394   :  { %v2276_v35 = vpop.xlane.xlu1 %2275  ;;  %v2253_v50 = vcvt.f32.s32 %v2250_v26  ;;  %v2994_v36 = vrot.slane %v2244_v44, %v3616_v16 }
 0x395   :  { %v2278_v24 = vcvt.f32.s32 %v2276_v35 }
 0x396   :  { %v2256_v35 = vadd.s32 %v2255_v23, %v2253_v50 }
 0x397   :  { %v2262_v53 = vpop.xlane.xlu0 %2261 }
 0x398   :  { %v4228_v31 = vpop.xlane.xlu1 %2287  ;;  %v2265_v34 = vcvt.f32.s32 %v2262_v53  ;;  %v2279_v53 = vshll.u32 %v2278_v24, 16 }
 0x39a   :  { %v2268_v14 = vadd.s32 %v2267_v55, %v2265_v34 }
 0x39b   :  { %v2274_v22 = vpop.xlane.xlu0 %2273 }
 0x39c   :  { %v4230_v30 = vpop.xlane.xlu1 %2299  ;;  %v2277_v61 = vcvt.f32.s32 %v2274_v22  ;;  %v3004_v52 = vrot.slane %v2268_v14, %v3637_v41 }
 0x39e   :  { %v2280_v5 = vadd.s32 %v2279_v53, %v2277_v61 }
 0x39f   :  { %v4232_v48 = vpop.xlane.xlu0 %2285 }
 0x3a0   :  { %v4234_v9 = vpop.xlane.xlu1 %2311  ;;  %v2289_v22 = vcvt.f32.s32 %v4232_v48 }
 0x3a1   :  { %v2314_v16 = vcvt.f32.s32 %v4234_v9  ;;  %v3009_v9 = vrot.slane %v2280_v5, %v3651_v47 }
 0x3a3   :  { %v4236_v8 = vpop.xlane.xlu0 %2297  ;;  %v2315_v57 = vshll.u32 %v2314_v16, 16 }
 0x3a4   :  { %v4238_v56 = vpop.xlane.xlu1 %2323  ;;  %v2301_v54 = vcvt.f32.s32 %v4236_v8 }
 0x3a7   :  { %v2156_v13 = vpop.xlane.xlu0 %2155 }
 0x3a8   :  { %v2158_v19 = vcvt.f32.s32 %v2156_v13  ;;  %v4240_v42 = vpop.xlane.xlu1 %2309 }
 0x3aa   :  { %v2159_v40 = vshll.u32 %v2158_v19, 16  ;;  %v2984_v19 = vrot.slane %v2220_v6, %v3594_v37  ;;  %v2302_v37 = vcvt.f32.s32 %v4230_v30  ;;  %v2326_v30 = vcvt.f32.s32 %v4238_v56 }
 0x3ab   :  { %v4242_v63 = vpop.xlane.xlu0 %2335  ;;  %v2313_v6 = vcvt.f32.s32 %v4240_v42 }
 0x3ac   :  { %v2160_v38 = vadd.s32 %v2159_v40, %v2157_v25  ;;  %v2168_v11 = vpop.xlane.xlu1 %2167  ;;  %v2985_v27 = vsel %vm2405_vm15, %v2984_v19, %v2980_v33  ;;  %v2303_v59 = vshll.u32 %v2302_v37, 16  ;;  %v2338_v48 = vcvt.f32.s32 %v4242_v63 }
 0x3ad   :  { %v2990_v58 = vsel %vm2412_vm1, %v2989_v7, %v2985_v27  ;;  %v2170_v32 = vcvt.f32.s32 %v2168_v11  ;;  %v2327_v56 = vshll.u32 %v2326_v30, 16  ;;  %v2316_v42 = vadd.s32 %v2315_v57, %v2313_v6  ;;  %vm4465_vm1 = vmmov %vm4461_vm8 }
 0x3ae   :  { %v2960_v21 = vrot.slane %v2160_v38, %v3722_v46  ;;  %v2995_v40 = vsel %vm2419_vm3, %v2994_v36, %v2990_v58  ;;  %v2304_v2 = vadd.s32 %v2303_v59, %v2301_v54  ;;  %v2339_v34 = vshll.u32 %v2338_v48, 16  ;;  %vm4466_vm3 = vmmov %vm4462_vm0 }
 0x3af   :  { %v2322_v15 = vpop.xlane.xlu0 %2321  ;;  %v3024_v14 = vrot.slane %v2316_v42, %v3687_v49  ;;  %vm3061_vm15 = vcmask 1046534  }
 0x3b0   :  { %v4247_v62 = vsel %vm4462_vm0, %v2960_v21, %v2956_v39  ;;  %v2348_v13 = vpop.xlane.xlu1 %2347  ;;  %v2290_v39 = vcvt.f32.s32 %v4228_v31  ;;  %v2999_v31 = vrot.slane %v2256_v35, %v3630_v20  ;;  %v2325_v8 = vcvt.f32.s32 %v2322_v15 }
 0x3b1   :  { %v2350_v11 = vcvt.f32.s32 %v2348_v13  ;;  %v2171_v20 = vshll.u32 %v2170_v32, 16  ;;  %v3019_v23 = vrot.slane %v2304_v2, %v3677_v4 }
 0x3b2   :  { %v2291_v0 = vshll.u32 %v2290_v39, 16  ;;  %v3000_v17 = vsel %vm2426_vm5, %v2999_v31, %v2995_v40  ;;  %v2328_v13 = vadd.s32 %v2327_v56, %v2325_v8  ;;  %vm3063_vm5 = vcmask 1047559  }
 0x3b3   :  { %v2180_v26 = vpop.xlane.xlu0 %2179  ;;  %v3005_v47 = vsel %vm2433_vm7, %v3004_v52, %v3000_v17  ;;  %v2351_v19 = vshll.u32 %v2350_v11, 16 }
 0x3b4   :  { %v2334_v25 = vpop.xlane.xlu1 %2333  ;;  %v2292_v18 = vadd.s32 %v2291_v0, %v2289_v22  ;;  %v2182_v44 = vcvt.f32.s32 %v2180_v26  ;;  %v3010_v7 = vsel %vm2440_vm9, %v3009_v9, %v3005_v47  ;;  %v3029_v37 = vrot.slane %v2328_v13, %v3701_v51 }
 0x3b5   :  { %v2337_v21 = vcvt.f32.s32 %v2334_v25  ;;  %vm2378_vm9 = vcmp.eq.s32.totalorder %v3343_v1, 0 }
 0x3b6   :  { %v3014_v15 = vrot.slane %v2292_v18, %v3658_v45  ;;  %v2183_v33 = vshll.u32 %v2182_v44, 16 }
 0x3b7   :  { %v2360_v60 = vpop.xlane.xlu0 %2359  ;;  %v2340_v55 = vadd.s32 %v2339_v34, %v2337_v21 }
 0x3b8   :  { %v2166_v38 = vpop.xlane.xlu1 %2165  ;;  %v2362_v63 = vcvt.f32.s32 %v2360_v60  ;;  %v3015_v45 = vsel %vm2447_vm11, %v3014_v15, %v3010_v7 }
 0x3b9   :  { %v2169_v28 = vcvt.f32.s32 %v2166_v38  ;;  %v3020_v58 = vsel %vm2454_vm14, %v3019_v23, %v3015_v45  ;;  %v3034_v5 = vrot.slane %v2340_v55, %v3708_v10 }
 0x3ba   :  { %v2363_v39 = vshll.u32 %v2362_v63, 16  ;;  %v3025_v51 = vsel %vm2461_vm2, %v3024_v14, %v3020_v58 }
 0x3bb   :  { %v2346_v41 = vpop.xlane.xlu0 %2345  ;;  %v2172_v29 = vadd.s32 %v2171_v20, %v2169_v28  ;;  %v3030_v31 = vsel %vm2468_vm6, %v3029_v37, %v3025_v51  ;;  %v3066_v28 = vstv %s4279_s5 }
 0x3bc   :  { %v2349_v50 = vcvt.f32.s32 %v2346_v41  ;;  %v2372_v24 = vpop.xlane.xlu1 %2371 }
 0x3bd   :  { %v2374_v26 = vcvt.f32.s32 %v2372_v24  ;;  %v2965_v25 = vrot.slane %v2172_v29, %v3729_v3 }
 0x3be   :  { %v2352_v36 = vadd.s32 %v2351_v19, %v2349_v50 }
 0x3bf   :  { %v2178_v61 = vpop.xlane.xlu0 %2177  ;;  %v2375_v16 = vshll.u32 %v2374_v26, 16  ;;  %v2966_v60 = vsel %vm2489_vm4, %v2965_v25, %v4247_v62 }
 0x3c0   :  { %v2181_v35 = vcvt.f32.s32 %v2178_v61  ;;  %v2358_v53 = vpop.xlane.xlu1 %2357  ;;  %v3039_v49 = vrot.slane %v2352_v36, %v3722_v46  ;;  %v3035_v46 = vsel %vm4465_vm1, %v3034_v5, %v3030_v31 }
 0x3c1   :  { %v2361_v27 = vcvt.f32.s32 %v2358_v53 }
 0x3c2   :  { %v2184_v4 = vadd.s32 %v2183_v33, %v2181_v35  ;;  %v3040_v59 = vsel %vm4466_vm3, %v3039_v49, %v3035_v46 }
 0x3c3   :  { %v2364_v22 = vadd.s32 %v2363_v39, %v2361_v27  ;;  %v2370_v40 = vpop.xlane.xlu0 %2369 }
 0x3c4   :  { %v2970_v54 = vrot.slane %v2184_v4, %v3740_v43  ;;  %v2373_v32 = vcvt.f32.s32 %v2370_v40  ;;  %v2386_v30 = vpop.permute.xlu1 %2385 }
 0x3c5   :  { %v3044_v10 = vrot.slane %v2364_v22, %v3729_v3  ;;  %vm2387_vm7 = vcmp.le.s32.totalorder %v3343_v1, %v2386_v30  ;;  %v2388_v3 = vstv %s4275_s1 }
 0x3c6   :  { %v2971_v52 = vsel %vm2496_vm12, %v2970_v54, %v2966_v60  ;;  %v2376_v0 = vadd.s32 %v2375_v16, %v2373_v32 }
 0x3c7   :  { %v3062_v38 = vsel %vm3061_vm15, %v2971_v52, %v4201_v12  ;;  %v3045_v62 = vsel %vm2489_vm4, %v3044_v10, %v3040_v59  ;;  %v3068_v12 = vstv %s4283_s6 }
 0x3c8   :  { %v3049_v6 = vrot.slane %v2376_v0, %v3740_v43 }
 0x3ca   :  { %v3050_v48 = vsel %vm2496_vm12, %v3049_v6, %v3045_v62 }
 0x3cb   :  { %v3064_v9 = vsel %vm3063_vm5, %v3050_v48, %v3062_v38  ;;  %v2382_v18 = vpop.permute.xlu0 %2381 }
 0x3cc   :  { %v3065_v8 = vsel %vm2387_vm7, %v3064_v9, %v2388_v3  ;;  %vm2383_vm11 = vcmp.eq.s32.totalorder %v3343_v1, %v2382_v18 }
 0x3cd   :  { %v3067_v43 = vsel %vm2383_vm11, %v3066_v28, %v3065_v8 }
 0x3ce   :  { %v3069_v11 = vsel %vm2378_vm9, %v3068_v12, %v3067_v43 }
 0x3cf   :  { %3070 = vst [vmem:[#allocation5] sm:$0xff] %v3069_v11 }
 0x3d0   :  { %3122 = shalt.err (!%p3119_p9)
}
 0x3d1   :  { %s3123_s12 = scalar_lea.hbm %s4321_s4, 128 }
 0x3d2   :  { %p3124_p10 = scmp.ne.s32.totalorder %s4321_s4, %s3123_s12  ;;  %p3127_p11 = scmp.lt.u32.totalorder %s3123_s12, %s4321_s4 }
 0x3d4   :  { %p3129_p12 = pnand %p3127_p11, %p3124_p10 }
 0x3d6   :  { %3132 = shalt.err (!%p3129_p12)
}
 0x3d7   :  { %3080 = dma.vmem_to_hbm [thread:$0]  %s3078_s8, 128, %s4321_s4, [#allocation3]  }
 0x3d8   :  { %3135 = dma.done.wait [#allocation3], 128  }
 0x3d9   :  { %3136 = vsyncadd [#allocation3], 4294967168 }
 0x3da   :  { %3084 = vsyncpa [#allocation3], 1 }
 0x3db   :  { %3085 = vsyncpa [#allocation4], 1 }

</bundles_post_ra>
